<compile_context>
chip_gen: v7x
topology: tpu7x:2x2x1
jax: 0.10.0
libtpu: 0.0.40
codegen_flags: <defaults>
</compile_context>

<pallas_src>
import jax
import jax.numpy as jnp
from jax import lax
from jax.experimental import pallas as pl
from jax.experimental.pallas import tpu as pltpu


def _silu(z):
    # exp and the approximate reciprocal both issue to the EUP slot, so the
    # SiLU largely disappears from the VPU-bound path.
    return z * pl.reciprocal(1.0 + jnp.exp(-z), approx=True)


# --------------------------- fused embedding kernel -------------------------
# sensor_embedding + time_embedding (continuous + sinusoidal + combiner)
# + static_embedding + nonlinear_merger, on (T*N, .) time-major rows.
def _embedding_kernel(xin_ref, tn_ref, sin_ref, tmask_ref, stat_ref,
                      sw_ref, sb_ref, tew_ref, teb_ref,
                      cwa_ref, cwb_ref, cb_ref,
                      stw_ref, stb_ref,
                      mwa_ref, mwb_ref, mb_ref,
                      o_ref):
    f32 = jnp.float32
    TN, E = o_ref.shape
    N = stat_ref.shape[0]
    T = TN // N
    # sensor embedding over all (t, n) rows at once
    xs = jnp.dot(xin_ref[...], sw_ref[...], preferred_element_type=f32) + sb_ref[...]
    # time embedding: Linear(1, D) is a broadcast multiply (no K=1 matmul)
    cont = tn_ref[...] * tew_ref[...] + teb_ref[...]                   # (TN, D)
    temb = (jnp.dot(cont, cwa_ref[...], preferred_element_type=f32)
            + jnp.dot(sin_ref[...], cwb_ref[...], preferred_element_type=f32)
            + cb_ref[...])
    temb = temb * tmask_ref[...]
    x_concat = xs + temb                                               # (TN, D)
    # merger main path on all rows
    main = jnp.dot(x_concat, mwa_ref[...], preferred_element_type=f32) + mb_ref[...]
    # static path evaluated ONCE for N batch rows, then row-broadcast over T
    stat_e = (jnp.dot(stat_ref[...], stw_ref[...], preferred_element_type=f32)
              + stb_ref[...])                                          # (N, SO)
    stat_m = jnp.dot(stat_e, mwb_ref[...], preferred_element_type=f32)  # (N, E)
    o_ref[...] = main + jnp.broadcast_to(stat_m[None, :, :], (T, N, E)).reshape(TN, E)


def embedding_fwd(p, x, static, times, mask):
    N, F, T = x.shape
    D = 2 * F
    E = p["merge_wa"].shape[1]
    # glue (transposes / concats / sinusoids) stays in XLA
    x_time = jnp.transpose(x, (0, 2, 1))                               # (N,T,F)
    tmask = (jnp.count_nonzero(x_time, axis=2) > 0).astype(jnp.float32)
    m_time = jnp.transpose(mask, (0, 2, 1))
    xin = jnp.concatenate([x_time, m_time], axis=2)                    # (N,T,2F)
    tn = times / (jnp.max(times, axis=1, keepdims=True) + 1e-8)        # (N,T)
    # time-major rows: row = t*N + n
    xin_tm = jnp.transpose(xin, (1, 0, 2)).reshape(T * N, D)
    tn_tm = jnp.transpose(tn, (1, 0)).reshape(T * N, 1)
    tmask_tm = jnp.transpose(tmask, (1, 0)).reshape(T * N, 1)
    sinus = jnp.concatenate(
        [jnp.sin(2.0 * jnp.pi * tn_tm * 1.0), jnp.sin(2.0 * jnp.pi * tn_tm * 24.0),
         jnp.cos(2.0 * jnp.pi * tn_tm * 1.0), jnp.cos(2.0 * jnp.pi * tn_tm * 24.0)],
        axis=-1)                                                       # (TN, 4)
    return pl.pallas_call(
        _embedding_kernel,
        out_shape=jax.ShapeDtypeStruct((T * N, E), jnp.float32),
    )(xin_tm, tn_tm, sinus, tmask_tm, static,
      p["sensor_w"], p["sensor_b"], p["te_w"], p["te_b"],
      p["comb_wa"], p["comb_wb"], p["comb_b"],
      p["static_w"], p["static_b"],
      p["merge_wa"], p["merge_wb"], p["merge_b"])


# ----------------- single fused backbone (+ head) kernel --------------------
def _backbone_kernel(h_in_ref, nw_ref, inpw_ref, cw_ref, cb_ref,
                     xdt_ref, xb_ref, xc_ref, dtw_ref, dtb_ref,
                     a_ref, dd_ref, outw_ref,
                     nf_ref, hw_ref, hb_ref,
                     o_ref,
                     hbuf, dA_ref, dBu_ref, c_ref, y_ref):
    f32 = jnp.float32
    bf16 = jnp.bfloat16
    T, N, S = c_ref.shape
    TN, E = hbuf.shape
    K = cw_ref.shape[1]
    Din = cw_ref.shape[2]
    layer = pl.program_id(0)

    @pl.when(layer == 0)
    def _():
        hbuf[...] = h_in_ref[...]          # residual slab stays resident in VMEM

    h = hbuf[...]                          # (TN, E), time-major rows

    # ---- RMSNorm (eps = 1e-5) ----
    var = jnp.mean(h * h, axis=-1, keepdims=True)
    xn = h * lax.rsqrt(var + 1e-5) * nw_ref[0]

    # ---- in_proj (HF use_bias=False); bf16 operands, f32 accumulate ----
    proj = jnp.dot(xn.astype(bf16), inpw_ref[0], preferred_element_type=f32)
    hidden = proj[:, :Din]                 # lane-aligned (Din = 128) slices
    gate = proj[:, Din:]

    # ---- causal depthwise conv1d + SiLU.  In time-major rows a shift of one
    # timestep == a shift of N rows; each tap is a pltpu.roll (XLU slot) plus
    # an iota row-mask for the first shift rows (causal zero padding).  Tap
    # K-1 multiplies the current timestep (PyTorch Conv1d cross-correlation
    # with left padding K-1).
    cw = cw_ref[0]                         # (K, Din)
    row_idx = lax.broadcasted_iota(jnp.int32, (TN, 1), 0)
    acc = hidden * cw[K - 1:K, :]
    for k in range(K - 1):                 # static, K = 4
        shift = (K - 1 - k) * N
        tap = pltpu.roll(hidden, shift=shift, axis=0)
        tap = jnp.where(row_idx >= shift, tap, 0.0)
        acc = acc + tap * cw[k:k + 1, :]
    u = _silu(acc + cb_ref[0])             # (TN, Din)

    # ---- input-dependent SSM params: three lane-clean matmuls (dt / B / C),
    # kept f32 (tiny K, feeds exponentials) ----
    dt_low = jnp.dot(u, xdt_ref[0], preferred_element_type=f32)        # (TN, R)
    B = jnp.dot(u, xb_ref[0], preferred_element_type=f32)              # (TN, S)
    Cm = jnp.dot(u, xc_ref[0], preferred_element_type=f32)             # (TN, S)
    dt = jnp.dot(dt_low, dtw_ref[0], preferred_element_type=f32) + dtb_ref[0]
    dt = jnp.maximum(dt, 0.0) + jnp.log1p(jnp.exp(-jnp.abs(dt)))       # softplus
    A = a_ref[0]                           # (S, Din), already -exp(A_log)

    # Precompute all non-recurrent scan terms lane-dense as (rows, S, Din).
    dA_ref[...] = jnp.exp(dt[:, None, :] * A[None, :, :])              # (TN,S,Din)
    dBu_ref[...] = (dt * u)[:, None, :] * B[:, :, None]                # (TN,S,Din)
    c_ref[...] = Cm.reshape(T, N, S)

    # ---- selective scan: only serial part.  The C-contraction is fused into
    # the step so only an (N, Din) slab is stored per step (16x less in-loop
    # store traffic, no (TN,S,Din) state scratch).
    def step(t, state):                    # state: (N, S, Din)
        rows = pl.ds(pl.multiple_of(t * N, N), N)
        state = dA_ref[rows] * state + dBu_ref[rows]
        y_ref[t] = jnp.sum(state * c_ref[t][:, :, None], axis=1)       # (N, Din)
        return state

    # TODO(synk): switch to a partial unroll (4-8) once T grows (vreg pressure).
    lax.fori_loop(0, T, step, jnp.zeros((N, S, Din), f32), unroll=True)

    # ---- skip path, SiLU gate, out_proj (bf16), residual add ----
    y = y_ref[...].reshape(TN, Din)
    y = y + u * dd_ref[0]
    y = y * _silu(gate)
    out = jnp.dot(y.astype(bf16), outw_ref[0], preferred_element_type=f32)
    h_new = h + out
    hbuf[...] = h_new

    # ---- last layer: norm_f + mean-pool over time + classification head,
    # fused so only the (N, num_classes) logits go back to HBM.
    @pl.when(layer == pl.num_programs(0) - 1)
    def _():
        var_f = jnp.mean(h_new * h_new, axis=-1, keepdims=True)
        hn = h_new * lax.rsqrt(var_f + 1e-5) * nf_ref[...]
        pooled = jnp.mean(hn.reshape(T, N, E), axis=0)                 # (N, E)
        o_ref[...] = (jnp.dot(pooled, hw_ref[...], preferred_element_type=f32)
                      + hb_ref[...])


def backbone_and_head_fwd(bp, head_w, head_b, h_rows, *, n_batch, seq_len):
    TN, E = h_rows.shape
    L, K, Din = bp["conv_w"].shape
    S = bp["A"].shape[1]
    R = bp["dt_proj_w"].shape[1]
    C = head_w.shape[1]
    N, T = n_batch, seq_len

    def per_layer(tail):                   # stacked weights, streamed per grid step
        return pl.BlockSpec((1,) + tail, lambda l: (l, 0, 0))

    def resident(shape):                   # same block for every grid step
        return pl.BlockSpec(shape, lambda l: (0, 0))

    grid_spec = pltpu.PrefetchScalarGridSpec(
        num_scalar_prefetch=0,
        grid=(L,),
        in_specs=[
            resident((TN, E)),             # embeddings (read once at layer 0)
            per_layer((1, E)),             # norm_w
            per_layer((E, 2 * Din)),       # in_proj_w  (bf16)
            per_layer((K, Din)),           # conv_w
            per_layer((1, Din)),           # conv_b
            per_layer((Din, R)),           # x_proj dt slab
            per_layer((Din, S)),           # x_proj B slab
            per_layer((Din, S)),           # x_proj C slab
            per_layer((R, Din)),           # dt_proj_w
            per_layer((1, Din)),           # dt_proj_b
            per_layer((S, Din)),           # A = -exp(A_log), lane-dense
            per_layer((1, Din)),           # D skip
            per_layer((Din, E)),           # out_proj_w (bf16)
            resident((1, E)),              # norm_f_w
            resident((E, C)),              # head_w
            resident((1, C)),              # head_b
        ],
        out_specs=pl.BlockSpec((N, C), lambda l: (0, 0)),
        scratch_shapes=[
            pltpu.VMEM((TN, E), jnp.float32),        # resident residual slab
            pltpu.VMEM((TN, S, Din), jnp.float32),   # exp(dt*A)
            pltpu.VMEM((TN, S, Din), jnp.float32),   # dt*B*u
            pltpu.VMEM((T, N, S), jnp.float32),      # C per timestep
            pltpu.VMEM((T, N, Din), jnp.float32),    # per-step scan outputs
        ],
    )
    # NOTE: layer axis is a carried reduction -> "arbitrary".  At these toy
    # shapes scratch use is <1 MiB, so no vmem_limit_bytes override is needed
    # (set it explicitly on v5e once T*N grows; tile the scan over time chunks
    # on v7x's 64 MiB VMEM for large T*N).
    return pl.pallas_call(
        _backbone_kernel,
        grid_spec=grid_spec,
        out_shape=jax.ShapeDtypeStruct((N, C), jnp.float32),
        compiler_params=pltpu.CompilerParams(dimension_semantics=("arbitrary",)),
    )(h_rows, bp["norm_w"], bp["in_proj_w"], bp["conv_w"], bp["conv_b"],
      bp["x_proj_dt_w"], bp["x_proj_B_w"], bp["x_proj_C_w"],
      bp["dt_proj_w"], bp["dt_proj_b"], bp["A"], bp["D"], bp["out_proj_w"],
      bp["norm_f_w"], head_w, head_b)


# ------------------------------- model forward -------------------------------
def model_fwd(p, x, static, times, sensor_mask):
    N, _, T = x.shape
    h = embedding_fwd(p["embedding"], x, static, times, sensor_mask)    # (T*N, E)
    return backbone_and_head_fwd(p["backbone"], p["head_w"], p["head_b"],
                                 h, n_batch=N, seq_len=T)


# ------------------------------ parameter init --------------------------------
def init_params(key, *, sensor_count, static_size, d_model, num_classes,
                num_layers, state_size, conv_kernel, dt_rank, intermediate):
    keys = iter(jax.random.split(key, 64))

    def w(shape, scale=0.02, dtype=jnp.float32):
        return (scale * jax.random.normal(next(keys), shape)).astype(dtype)

    D = 2 * sensor_count
    SO = static_size + 4
    E = d_model
    emb = dict(
        sensor_w=w((D, D)), sensor_b=w((1, D)),
        te_w=w((1, D)), te_b=w((1, D)),
        comb_wa=w((D, D)), comb_wb=w((4, D)), comb_b=w((1, D)),
        static_w=w((static_size, SO)), static_b=w((1, SO)),
        merge_wa=w((D, E)), merge_wb=w((SO, E)), merge_b=w((1, E)),
    )
    L, S, K, R, Din = num_layers, state_size, conv_kernel, dt_rank, intermediate
    # A = -exp(A_log): input-independent, precomputed once, stored lane-dense.
    a_log = jnp.log(jnp.broadcast_to(
        jnp.arange(1, S + 1, dtype=jnp.float32)[:, None], (S, Din)))
    backbone = dict(
        norm_w=jnp.ones((L, 1, E), jnp.float32),
        in_proj_w=w((L, E, 2 * Din), dtype=jnp.bfloat16),   # bf16 MXU + half DMA
        conv_w=w((L, K, Din)),                              # tap K-1 = current step
        conv_b=w((L, 1, Din)),
        x_proj_dt_w=w((L, Din, R)),
        x_proj_B_w=w((L, Din, S)),
        x_proj_C_w=w((L, Din, S)),
        dt_proj_w=w((L, R, Din)),
        dt_proj_b=w((L, 1, Din)),
        A=jnp.broadcast_to((-jnp.exp(a_log))[None], (L, S, Din)).astype(jnp.float32),
        D=jnp.ones((L, 1, Din), jnp.float32),
        out_proj_w=w((L, Din, E), dtype=jnp.bfloat16),
        norm_f_w=jnp.ones((1, E), jnp.float32),
    )
    return dict(embedding=emb, backbone=backbone,
                head_w=w((E, num_classes)), head_b=w((1, num_classes)))


# ----------------------------------- main -------------------------------------
if __name__ == "__main__":
    # small shapes consistent with the module's forward
    N, F, T = 2, 4, 8                # batch, sensor_count, seq_len
    static_size = 8
    d_model = 32                     # = embedding_dim = hidden_size
    num_classes = 2
    num_layers = 8                   # MambaConfig(num_hidden_layers=8)
    intermediate = 4 * d_model       # intermediate_size = 4*d_model (=128, lane-dense)
    state_size = 16                  # HF MambaConfig default
    conv_kernel = 4                  # HF MambaConfig default
    dt_rank = -(-d_model // 16)      # "auto" = ceil(hidden/16)
    # TODO(synk): config dropout=0.2 / num_attention_heads are unused by the
    #             HF Mamba forward; vocab embedding table bypassed via inputs_embeds.

    key = jax.random.PRNGKey(0)
    kx, ks, kt, km, kp = jax.random.split(key, 5)
    x = jax.random.normal(kx, (N, F, T), jnp.float32)
    static = jax.random.normal(ks, (N, static_size), jnp.float32)
    times = jnp.abs(jax.random.normal(kt, (N, T), jnp.float32)) * 10.0
    sensor_mask = (jax.random.uniform(km, (N, F, T)) > 0.3).astype(jnp.float32)

    params = init_params(kp, sensor_count=F, static_size=static_size,
                         d_model=d_model, num_classes=num_classes,
                         num_layers=num_layers, state_size=state_size,
                         conv_kernel=conv_kernel, dt_rank=dt_rank,
                         intermediate=intermediate)

    fwd = jax.jit(model_fwd)
    logits = jax.block_until_ready(fwd(params, x, static, times, sensor_mask))
    assert logits.shape == (N, num_classes)
    assert bool(jnp.all(jnp.isfinite(logits)))
    print("KERNEL_OK")
</pallas_src>

<mosaic_0001>
module attributes {stable_mosaic.version = 11 : i64} {
  func.func @_embedding_kernel(%arg0: memref<16x8xf32, #tpu.memory_space<vmem>>, %arg1: memref<16x1xf32, #tpu.memory_space<vmem>>, %arg2: memref<16x4xf32, #tpu.memory_space<vmem>>, %arg3: memref<16x1xf32, #tpu.memory_space<vmem>>, %arg4: memref<2x8xf32, #tpu.memory_space<vmem>>, %arg5: memref<8x8xf32, #tpu.memory_space<vmem>>, %arg6: memref<1x8xf32, #tpu.memory_space<vmem>>, %arg7: memref<1x8xf32, #tpu.memory_space<vmem>>, %arg8: memref<1x8xf32, #tpu.memory_space<vmem>>, %arg9: memref<8x8xf32, #tpu.memory_space<vmem>>, %arg10: memref<4x8xf32, #tpu.memory_space<vmem>>, %arg11: memref<1x8xf32, #tpu.memory_space<vmem>>, %arg12: memref<8x12xf32, #tpu.memory_space<vmem>>, %arg13: memref<1x12xf32, #tpu.memory_space<vmem>>, %arg14: memref<8x32xf32, #tpu.memory_space<vmem>>, %arg15: memref<12x32xf32, #tpu.memory_space<vmem>>, %arg16: memref<1x32xf32, #tpu.memory_space<vmem>>, %arg17: memref<16x32xf32, #tpu.memory_space<vmem>>) attributes {dimension_semantics = [], scalar_prefetch = 0 : i64, scratch_operands = 0 : i64, tpu.core_type = #tpu.core_type<tc>} {
    %c0 = arith.constant 0 : index
    %c0_0 = arith.constant 0 : index
    %0 = vector.load %arg0[%c0, %c0_0] : memref<16x8xf32, #tpu.memory_space<vmem>>, vector<16x8xf32>
    %c0_1 = arith.constant 0 : index
    %c0_2 = arith.constant 0 : index
    %1 = vector.load %arg5[%c0_1, %c0_2] : memref<8x8xf32, #tpu.memory_space<vmem>>, vector<8x8xf32>
    %cst = arith.constant dense<0.000000e+00> : vector<16x8xf32>
    %2 = tpu.matmul %0, %1, %cst {dimension_numbers = #tpu.dot_dimension_numbers<[1], [0], [0], [1], [0, 0, 1, 1], [], []>} : vector<16x8xf32>, vector<8x8xf32>, vector<16x8xf32> -> vector<16x8xf32>
    %c0_3 = arith.constant 0 : index
    %c0_4 = arith.constant 0 : index
    %3 = vector.load %arg6[%c0_3, %c0_4] : memref<1x8xf32, #tpu.memory_space<vmem>>, vector<1x8xf32>
    %4 = vector.broadcast %3 : vector<1x8xf32> to vector<16x8xf32>
    %5 = arith.addf %2, %4 : vector<16x8xf32>
    %c0_5 = arith.constant 0 : index
    %c0_6 = arith.constant 0 : index
    %6 = vector.load %arg1[%c0_5, %c0_6] : memref<16x1xf32, #tpu.memory_space<vmem>>, vector<16x1xf32>
    %c0_7 = arith.constant 0 : index
    %c0_8 = arith.constant 0 : index
    %7 = vector.load %arg7[%c0_7, %c0_8] : memref<1x8xf32, #tpu.memory_space<vmem>>, vector<1x8xf32>
    %8 = vector.broadcast %6 : vector<16x1xf32> to vector<16x8xf32>
    %9 = vector.broadcast %7 : vector<1x8xf32> to vector<16x8xf32>
    %10 = arith.mulf %8, %9 : vector<16x8xf32>
    %c0_9 = arith.constant 0 : index
    %c0_10 = arith.constant 0 : index
    %11 = vector.load %arg8[%c0_9, %c0_10] : memref<1x8xf32, #tpu.memory_space<vmem>>, vector<1x8xf32>
    %12 = vector.broadcast %11 : vector<1x8xf32> to vector<16x8xf32>
    %13 = arith.addf %10, %12 : vector<16x8xf32>
    %c0_11 = arith.constant 0 : index
    %c0_12 = arith.constant 0 : index
    %14 = vector.load %arg9[%c0_11, %c0_12] : memref<8x8xf32, #tpu.memory_space<vmem>>, vector<8x8xf32>
    %cst_13 = arith.constant dense<0.000000e+00> : vector<16x8xf32>
    %15 = tpu.matmul %13, %14, %cst_13 {dimension_numbers = #tpu.dot_dimension_numbers<[1], [0], [0], [1], [0, 0, 1, 1], [], []>} : vector<16x8xf32>, vector<8x8xf32>, vector<16x8xf32> -> vector<16x8xf32>
    %c0_14 = arith.constant 0 : index
    %c0_15 = arith.constant 0 : index
    %16 = vector.load %arg2[%c0_14, %c0_15] : memref<16x4xf32, #tpu.memory_space<vmem>>, vector<16x4xf32>
    %c0_16 = arith.constant 0 : index
    %c0_17 = arith.constant 0 : index
    %17 = vector.load %arg10[%c0_16, %c0_17] : memref<4x8xf32, #tpu.memory_space<vmem>>, vector<4x8xf32>
    %cst_18 = arith.constant dense<0.000000e+00> : vector<16x8xf32>
    %18 = tpu.matmul %16, %17, %cst_18 {dimension_numbers = #tpu.dot_dimension_numbers<[1], [0], [0], [1], [0, 0, 1, 1], [], []>} : vector<16x4xf32>, vector<4x8xf32>, vector<16x8xf32> -> vector<16x8xf32>
    %19 = arith.addf %15, %18 : vector<16x8xf32>
    %c0_19 = arith.constant 0 : index
    %c0_20 = arith.constant 0 : index
    %20 = vector.load %arg11[%c0_19, %c0_20] : memref<1x8xf32, #tpu.memory_space<vmem>>, vector<1x8xf32>
    %21 = vector.broadcast %20 : vector<1x8xf32> to vector<16x8xf32>
    %22 = arith.addf %19, %21 : vector<16x8xf32>
    %c0_21 = arith.constant 0 : index
    %c0_22 = arith.constant 0 : index
    %23 = vector.load %arg3[%c0_21, %c0_22] : memref<16x1xf32, #tpu.memory_space<vmem>>, vector<16x1xf32>
    %24 = vector.broadcast %23 : vector<16x1xf32> to vector<16x8xf32>
    %25 = arith.mulf %22, %24 : vector<16x8xf32>
    %26 = arith.addf %5, %25 : vector<16x8xf32>
    %c0_23 = arith.constant 0 : index
    %c0_24 = arith.constant 0 : index
    %27 = vector.load %arg14[%c0_23, %c0_24] : memref<8x32xf32, #tpu.memory_space<vmem>>, vector<8x32xf32>
    %cst_25 = arith.constant dense<0.000000e+00> : vector<16x32xf32>
    %28 = tpu.matmul %26, %27, %cst_25 {dimension_numbers = #tpu.dot_dimension_numbers<[1], [0], [0], [1], [0, 0, 1, 1], [], []>} : vector<16x8xf32>, vector<8x32xf32>, vector<16x32xf32> -> vector<16x32xf32>
    %c0_26 = arith.constant 0 : index
    %c0_27 = arith.constant 0 : index
    %29 = vector.load %arg16[%c0_26, %c0_27] : memref<1x32xf32, #tpu.memory_space<vmem>>, vector<1x32xf32>
    %30 = vector.broadcast %29 : vector<1x32xf32> to vector<16x32xf32>
    %31 = arith.addf %28, %30 : vector<16x32xf32>
    %c0_28 = arith.constant 0 : index
    %c0_29 = arith.constant 0 : index
    %32 = vector.load %arg4[%c0_28, %c0_29] : memref<2x8xf32, #tpu.memory_space<vmem>>, vector<2x8xf32>
    %c0_30 = arith.constant 0 : index
    %c0_31 = arith.constant 0 : index
    %33 = vector.load %arg12[%c0_30, %c0_31] : memref<8x12xf32, #tpu.memory_space<vmem>>, vector<8x12xf32>
    %cst_32 = arith.constant dense<0.000000e+00> : vector<2x12xf32>
    %34 = tpu.matmul %32, %33, %cst_32 {dimension_numbers = #tpu.dot_dimension_numbers<[1], [0], [0], [1], [0, 0, 1, 1], [], []>} : vector<2x8xf32>, vector<8x12xf32>, vector<2x12xf32> -> vector<2x12xf32>
    %c0_33 = arith.constant 0 : index
    %c0_34 = arith.constant 0 : index
    %35 = vector.load %arg13[%c0_33, %c0_34] : memref<1x12xf32, #tpu.memory_space<vmem>>, vector<1x12xf32>
    %36 = vector.broadcast %35 : vector<1x12xf32> to vector<2x12xf32>
    %37 = arith.addf %34, %36 : vector<2x12xf32>
    %c0_35 = arith.constant 0 : index
    %c0_36 = arith.constant 0 : index
    %38 = vector.load %arg15[%c0_35, %c0_36] : memref<12x32xf32, #tpu.memory_space<vmem>>, vector<12x32xf32>
    %cst_37 = arith.constant dense<0.000000e+00> : vector<2x32xf32>
    %39 = tpu.matmul %37, %38, %cst_37 {dimension_numbers = #tpu.dot_dimension_numbers<[1], [0], [0], [1], [0, 0, 1, 1], [], []>} : vector<2x12xf32>, vector<12x32xf32>, vector<2x32xf32> -> vector<2x32xf32>
    %40 = vector.shape_cast %39 : vector<2x32xf32> to vector<1x2x32xf32>
    %41 = vector.shape_cast %40 : vector<1x2x32xf32> to vector<1x2x32xf32>
    %42 = vector.broadcast %41 : vector<1x2x32xf32> to vector<8x2x32xf32>
    %43 = vector.shape_cast %42 : vector<8x2x32xf32> to vector<16x32xf32>
    %44 = arith.addf %31, %43 : vector<16x32xf32>
    %c0_38 = arith.constant 0 : index
    %c0_39 = arith.constant 0 : index
    %45 = vector.load %arg17[%c0_38, %c0_39] : memref<16x32xf32, #tpu.memory_space<vmem>>, vector<16x32xf32>
    tpu.vector_store %arg17[%c0_38, %c0_39], %44 {strides = array<i32>} : memref<16x32xf32, #tpu.memory_space<vmem>>, vector<16x32xf32>,
    return
  }
}

module attributes {stable_mosaic.version = 11 : i64} {
  func.func @_backbone_kernel(%arg0: i32, %arg1: memref<16x32xf32, #tpu.memory_space<vmem>>, %arg2: memref<1x1x32xf32, #tpu.memory_space<vmem>>, %arg3: memref<1x32x256xbf16, #tpu.memory_space<vmem>>, %arg4: memref<1x4x128xf32, #tpu.memory_space<vmem>>, %arg5: memref<1x1x128xf32, #tpu.memory_space<vmem>>, %arg6: memref<1x128x2xf32, #tpu.memory_space<vmem>>, %arg7: memref<1x128x16xf32, #tpu.memory_space<vmem>>, %arg8: memref<1x128x16xf32, #tpu.memory_space<vmem>>, %arg9: memref<1x2x128xf32, #tpu.memory_space<vmem>>, %arg10: memref<1x1x128xf32, #tpu.memory_space<vmem>>, %arg11: memref<1x16x128xf32, #tpu.memory_space<vmem>>, %arg12: memref<1x1x128xf32, #tpu.memory_space<vmem>>, %arg13: memref<1x128x32xbf16, #tpu.memory_space<vmem>>, %arg14: memref<1x32xf32, #tpu.memory_space<vmem>>, %arg15: memref<32x2xf32, #tpu.memory_space<vmem>>, %arg16: memref<1x2xf32, #tpu.memory_space<vmem>>, %arg17: memref<2x2xf32, #tpu.memory_space<vmem>>, %arg18: memref<16x32xf32, #tpu.memory_space<vmem>>, %arg19: memref<16x16x128xf32, #tpu.memory_space<vmem>>, %arg20: memref<16x16x128xf32, #tpu.memory_space<vmem>>, %arg21: memref<8x2x16xf32, #tpu.memory_space<vmem>>, %arg22: memref<8x2x128xf32, #tpu.memory_space<vmem>>) attributes {dimension_semantics = [#tpu.dimension_semantics<arbitrary>], iteration_bounds = array<i64: 8>, scalar_prefetch = 0 : i64, scratch_operands = 5 : i64, tpu.core_type = #tpu.core_type<tc>, window_params = [{pipeline_mode = #tpu.pipeline_mode<synchronous>, transform_indices = @transform_0, window_bounds = array<i64: 16, 32>}, {transform_indices = @transform_1, window_bounds = array<i64: 1, 1, 32>}, {transform_indices = @transform_2, window_bounds = array<i64: 1, 32, 256>}, {transform_indices = @transform_3, window_bounds = array<i64: 1, 4, 128>}, {transform_indices = @transform_4, window_bounds = array<i64: 1, 1, 128>}, {transform_indices = @transform_5, window_bounds = array<i64: 1, 128, 2>}, {transform_indices = @transform_6, window_bounds = array<i64: 1, 128, 16>}, {transform_indices = @transform_7, window_bounds = array<i64: 1, 128, 16>}, {transform_indices = @transform_8, window_bounds = array<i64: 1, 2, 128>}, {transform_indices = @transform_9, window_bounds = array<i64: 1, 1, 128>}, {transform_indices = @transform_10, window_bounds = array<i64: 1, 16, 128>}, {transform_indices = @transform_11, window_bounds = array<i64: 1, 1, 128>}, {transform_indices = @transform_12, window_bounds = array<i64: 1, 128, 32>}, {pipeline_mode = #tpu.pipeline_mode<synchronous>, transform_indices = @transform_13, window_bounds = array<i64: 1, 32>}, {pipeline_mode = #tpu.pipeline_mode<synchronous>, transform_indices = @transform_14, window_bounds = array<i64: 32, 2>}, {pipeline_mode = #tpu.pipeline_mode<synchronous>, transform_indices = @transform_15, window_bounds = array<i64: 1, 2>}, {pipeline_mode = #tpu.pipeline_mode<synchronous>, transform_indices = @transform_16, window_bounds = array<i64: 2, 2>}]} {
    %c0_i32 = arith.constant 0 : i32
    %0 = arith.cmpi eq, %arg0, %c0_i32 : i32
    %1 = arith.extui %0 : i1 to i32
    %c0_i32_0 = arith.constant 0 : i32
    %2 = arith.cmpi ne, %1, %c0_i32_0 : i32
    scf.if %2 {
      %c0_159 = arith.constant 0 : index
      %c0_160 = arith.constant 0 : index
      %293 = vector.load %arg1[%c0_159, %c0_160] : memref<16x32xf32, #tpu.memory_space<vmem>>, vector<16x32xf32>
      %c0_161 = arith.constant 0 : index
      %c0_162 = arith.constant 0 : index
      %294 = vector.load %arg18[%c0_161, %c0_162] : memref<16x32xf32, #tpu.memory_space<vmem>>, vector<16x32xf32>
      tpu.vector_store %arg18[%c0_161, %c0_162], %293 {strides = array<i32>} : memref<16x32xf32, #tpu.memory_space<vmem>>, vector<16x32xf32>,
    } else {
    }
    %c0 = arith.constant 0 : index
    %c0_1 = arith.constant 0 : index
    %3 = vector.load %arg18[%c0, %c0_1] : memref<16x32xf32, #tpu.memory_space<vmem>>, vector<16x32xf32>
    %4 = arith.mulf %3, %3 : vector<16x32xf32>
    %cst = arith.constant dense<0.000000e+00> : vector<16xf32>
    %5 = vector.multi_reduction <add>, %4, %cst [1] : vector<16x32xf32> to vector<16xf32>
    %6 = vector.shape_cast %5 : vector<16xf32> to vector<16x1xf32>
    %cst_2 = arith.constant 3.200000e+01 : f32
    %7 = vector.broadcast %cst_2 : f32 to vector<16x1xf32>
    %8 = arith.divf %6, %7 : vector<16x1xf32>
    %cst_3 = arith.constant 9.99999974E-6 : f32
    %9 = vector.broadcast %cst_3 : f32 to vector<16x1xf32>
    %10 = arith.addf %8, %9 : vector<16x1xf32>
    %11 = math.rsqrt %10 : vector<16x1xf32>
    %12 = vector.broadcast %11 : vector<16x1xf32> to vector<16x32xf32>
    %13 = arith.mulf %3, %12 : vector<16x32xf32>
    %c0_4 = arith.constant 0 : index
    %c0_5 = arith.constant 0 : index
    %c0_6 = arith.constant 0 : index
    %14 = vector.load %arg2[%c0_4, %c0_5, %c0_6] : memref<1x1x32xf32, #tpu.memory_space<vmem>>, vector<1x1x32xf32>
    %15 = vector.shape_cast %14 : vector<1x1x32xf32> to vector<1x32xf32>
    %16 = vector.broadcast %15 : vector<1x32xf32> to vector<16x32xf32>
    %17 = arith.mulf %13, %16 : vector<16x32xf32>
    %18 = arith.truncf %17 : vector<16x32xf32> to vector<16x32xbf16>
    %c0_7 = arith.constant 0 : index
    %c0_8 = arith.constant 0 : index
    %c0_9 = arith.constant 0 : index
    %19 = vector.load %arg3[%c0_7, %c0_8, %c0_9] : memref<1x32x256xbf16, #tpu.memory_space<vmem>>, vector<1x32x256xbf16>
    %20 = vector.shape_cast %19 : vector<1x32x256xbf16> to vector<32x256xbf16>
    %cst_10 = arith.constant dense<0.000000e+00> : vector<16x256xf32>
    %21 = tpu.matmul %18, %20, %cst_10 {dimension_numbers = #tpu.dot_dimension_numbers<[1], [0], [0], [1], [0, 0, 1, 1], [], []>} : vector<16x32xbf16>, vector<32x256xbf16>, vector<16x256xf32> -> vector<16x256xf32>
    %22 = vector.extract_strided_slice %21 {offsets = [0, 0], sizes = [16, 128], strides = [1, 1]} : vector<16x256xf32> to vector<16x128xf32>
    %23 = vector.extract_strided_slice %21 {offsets = [0, 128], sizes = [16, 128], strides = [1, 1]} : vector<16x256xf32> to vector<16x128xf32>
    %c0_11 = arith.constant 0 : index
    %c0_12 = arith.constant 0 : index
    %c0_13 = arith.constant 0 : index
    %24 = vector.load %arg4[%c0_11, %c0_12, %c0_13] : memref<1x4x128xf32, #tpu.memory_space<vmem>>, vector<1x4x128xf32>
    %25 = vector.shape_cast %24 : vector<1x4x128xf32> to vector<4x128xf32>
    %26 = tpu.iota {dimensions = array<i32: 0>} : vector<16x1xi32>
    %27 = vector.extract_strided_slice %25 {offsets = [3, 0], sizes = [1, 128], strides = [1, 1]} : vector<4x128xf32> to vector<1x128xf32>
    %28 = vector.broadcast %27 : vector<1x128xf32> to vector<16x128xf32>
    %29 = arith.mulf %22, %28 : vector<16x128xf32>
    %c6_i32 = arith.constant 6 : i32
    %30 = tpu.dynamic_rotate %22 by %c6_i32 dim 0 : vector<16x128xf32>, i32 -> vector<16x128xf32>
    %c6_i32_14 = arith.constant 6 : i32
    %31 = vector.broadcast %c6_i32_14 : i32 to vector<16x1xi32>
    %32 = arith.cmpi sge, %26, %31 : vector<16x1xi32>
    %cst_15 = arith.constant 0.000000e+00 : f32
    %33 = vector.shape_cast %32 : vector<16x1xi1> to vector<16x1xi1>
    %34 = vector.broadcast %33 : vector<16x1xi1> to vector<16x128xi1>
    %35 = vector.broadcast %cst_15 : f32 to vector<16x128xf32>
    %36 = arith.select %34, %30, %35 : vector<16x128xi1>, vector<16x128xf32>
    %37 = vector.extract_strided_slice %25 {offsets = [0, 0], sizes = [1, 128], strides = [1, 1]} : vector<4x128xf32> to vector<1x128xf32>
    %38 = vector.broadcast %37 : vector<1x128xf32> to vector<16x128xf32>
    %39 = arith.mulf %36, %38 : vector<16x128xf32>
    %40 = arith.addf %29, %39 : vector<16x128xf32>
    %c4_i32 = arith.constant 4 : i32
    %41 = tpu.dynamic_rotate %22 by %c4_i32 dim 0 : vector<16x128xf32>, i32 -> vector<16x128xf32>
    %c4_i32_16 = arith.constant 4 : i32
    %42 = vector.broadcast %c4_i32_16 : i32 to vector<16x1xi32>
    %43 = arith.cmpi sge, %26, %42 : vector<16x1xi32>
    %cst_17 = arith.constant 0.000000e+00 : f32
    %44 = vector.shape_cast %43 : vector<16x1xi1> to vector<16x1xi1>
    %45 = vector.broadcast %44 : vector<16x1xi1> to vector<16x128xi1>
    %46 = vector.broadcast %cst_17 : f32 to vector<16x128xf32>
    %47 = arith.select %45, %41, %46 : vector<16x128xi1>, vector<16x128xf32>
    %48 = vector.extract_strided_slice %25 {offsets = [1, 0], sizes = [1, 128], strides = [1, 1]} : vector<4x128xf32> to vector<1x128xf32>
    %49 = vector.broadcast %48 : vector<1x128xf32> to vector<16x128xf32>
    %50 = arith.mulf %47, %49 : vector<16x128xf32>
    %51 = arith.addf %40, %50 : vector<16x128xf32>
    %c2_i32 = arith.constant 2 : i32
    %52 = tpu.dynamic_rotate %22 by %c2_i32 dim 0 : vector<16x128xf32>, i32 -> vector<16x128xf32>
    %c2_i32_18 = arith.constant 2 : i32
    %53 = vector.broadcast %c2_i32_18 : i32 to vector<16x1xi32>
    %54 = arith.cmpi sge, %26, %53 : vector<16x1xi32>
    %cst_19 = arith.constant 0.000000e+00 : f32
    %55 = vector.shape_cast %54 : vector<16x1xi1> to vector<16x1xi1>
    %56 = vector.broadcast %55 : vector<16x1xi1> to vector<16x128xi1>
    %57 = vector.broadcast %cst_19 : f32 to vector<16x128xf32>
    %58 = arith.select %56, %52, %57 : vector<16x128xi1>, vector<16x128xf32>
    %59 = vector.extract_strided_slice %25 {offsets = [2, 0], sizes = [1, 128], strides = [1, 1]} : vector<4x128xf32> to vector<1x128xf32>
    %60 = vector.broadcast %59 : vector<1x128xf32> to vector<16x128xf32>
    %61 = arith.mulf %58, %60 : vector<16x128xf32>
    %62 = arith.addf %51, %61 : vector<16x128xf32>
    %c0_20 = arith.constant 0 : index
    %c0_21 = arith.constant 0 : index
    %c0_22 = arith.constant 0 : index
    %63 = vector.load %arg5[%c0_20, %c0_21, %c0_22] : memref<1x1x128xf32, #tpu.memory_space<vmem>>, vector<1x1x128xf32>
    %64 = vector.shape_cast %63 : vector<1x1x128xf32> to vector<1x128xf32>
    %65 = vector.broadcast %64 : vector<1x128xf32> to vector<16x128xf32>
    %66 = arith.addf %62, %65 : vector<16x128xf32>
    %cst_23 = arith.constant 0.000000e+00 : f32
    %67 = vector.broadcast %cst_23 : f32 to vector<16x128xf32>
    %68 = arith.subf %67, %66 : vector<16x128xf32>
    %69 = math.exp %68 : vector<16x128xf32>
    %cst_24 = arith.constant 1.000000e+00 : f32
    %70 = vector.broadcast %cst_24 : f32 to vector<16x128xf32>
    %71 = arith.addf %70, %69 : vector<16x128xf32>
    %72 = tpu.reciprocal %71 {approx = true} : vector<16x128xf32> -> vector<16x128xf32>
    %73 = arith.mulf %66, %72 : vector<16x128xf32>
    %c0_25 = arith.constant 0 : index
    %c0_26 = arith.constant 0 : index
    %c0_27 = arith.constant 0 : index
    %74 = vector.load %arg6[%c0_25, %c0_26, %c0_27] : memref<1x128x2xf32, #tpu.memory_space<vmem>>, vector<1x128x2xf32>
    %75 = vector.shape_cast %74 : vector<1x128x2xf32> to vector<128x2xf32>
    %cst_28 = arith.constant dense<0.000000e+00> : vector<16x2xf32>
    %76 = tpu.matmul %73, %75, %cst_28 {dimension_numbers = #tpu.dot_dimension_numbers<[1], [0], [0], [1], [0, 0, 1, 1], [], []>} : vector<16x128xf32>, vector<128x2xf32>, vector<16x2xf32> -> vector<16x2xf32>
    %c0_29 = arith.constant 0 : index
    %c0_30 = arith.constant 0 : index
    %c0_31 = arith.constant 0 : index
    %77 = vector.load %arg7[%c0_29, %c0_30, %c0_31] : memref<1x128x16xf32, #tpu.memory_space<vmem>>, vector<1x128x16xf32>
    %78 = vector.shape_cast %77 : vector<1x128x16xf32> to vector<128x16xf32>
    %cst_32 = arith.constant dense<0.000000e+00> : vector<16x16xf32>
    %79 = tpu.matmul %73, %78, %cst_32 {dimension_numbers = #tpu.dot_dimension_numbers<[1], [0], [0], [1], [0, 0, 1, 1], [], []>} : vector<16x128xf32>, vector<128x16xf32>, vector<16x16xf32> -> vector<16x16xf32>
    %c0_33 = arith.constant 0 : index
    %c0_34 = arith.constant 0 : index
    %c0_35 = arith.constant 0 : index
    %80 = vector.load %arg8[%c0_33, %c0_34, %c0_35] : memref<1x128x16xf32, #tpu.memory_space<vmem>>, vector<1x128x16xf32>
    %81 = vector.shape_cast %80 : vector<1x128x16xf32> to vector<128x16xf32>
    %cst_36 = arith.constant dense<0.000000e+00> : vector<16x16xf32>
    %82 = tpu.matmul %73, %81, %cst_36 {dimension_numbers = #tpu.dot_dimension_numbers<[1], [0], [0], [1], [0, 0, 1, 1], [], []>} : vector<16x128xf32>, vector<128x16xf32>, vector<16x16xf32> -> vector<16x16xf32>
    %c0_37 = arith.constant 0 : index
    %c0_38 = arith.constant 0 : index
    %c0_39 = arith.constant 0 : index
    %83 = vector.load %arg9[%c0_37, %c0_38, %c0_39] : memref<1x2x128xf32, #tpu.memory_space<vmem>>, vector<1x2x128xf32>
    %84 = vector.shape_cast %83 : vector<1x2x128xf32> to vector<2x128xf32>
    %cst_40 = arith.constant dense<0.000000e+00> : vector<16x128xf32>
    %85 = tpu.matmul %76, %84, %cst_40 {dimension_numbers = #tpu.dot_dimension_numbers<[1], [0], [0], [1], [0, 0, 1, 1], [], []>} : vector<16x2xf32>, vector<2x128xf32>, vector<16x128xf32> -> vector<16x128xf32>
    %c0_41 = arith.constant 0 : index
    %c0_42 = arith.constant 0 : index
    %c0_43 = arith.constant 0 : index
    %86 = vector.load %arg10[%c0_41, %c0_42, %c0_43] : memref<1x1x128xf32, #tpu.memory_space<vmem>>, vector<1x1x128xf32>
    %87 = vector.shape_cast %86 : vector<1x1x128xf32> to vector<1x128xf32>
    %88 = vector.broadcast %87 : vector<1x128xf32> to vector<16x128xf32>
    %89 = arith.addf %85, %88 : vector<16x128xf32>
    %cst_44 = arith.constant 0.000000e+00 : f32
    %90 = vector.broadcast %cst_44 : f32 to vector<16x128xf32>
    %91 = arith.maximumf %89, %90 : vector<16x128xf32>
    %92 = math.absf %89 : vector<16x128xf32>
    %cst_45 = arith.constant 0.000000e+00 : f32
    %93 = vector.broadcast %cst_45 : f32 to vector<16x128xf32>
    %94 = arith.subf %93, %92 : vector<16x128xf32>
    %95 = math.exp %94 : vector<16x128xf32>
    %96 = math.log1p %95 : vector<16x128xf32>
    %97 = arith.addf %91, %96 : vector<16x128xf32>
    %c0_46 = arith.constant 0 : index
    %c0_47 = arith.constant 0 : index
    %c0_48 = arith.constant 0 : index
    %98 = vector.load %arg11[%c0_46, %c0_47, %c0_48] : memref<1x16x128xf32, #tpu.memory_space<vmem>>, vector<1x16x128xf32>
    %99 = vector.shape_cast %98 : vector<1x16x128xf32> to vector<16x128xf32>
    %100 = vector.shape_cast %97 : vector<16x128xf32> to vector<16x1x128xf32>
    %101 = vector.shape_cast %99 : vector<16x128xf32> to vector<1x16x128xf32>
    %102 = vector.broadcast %100 : vector<16x1x128xf32> to vector<16x16x128xf32>
    %103 = vector.broadcast %101 : vector<1x16x128xf32> to vector<16x16x128xf32>
    %104 = arith.mulf %102, %103 : vector<16x16x128xf32>
    %105 = math.exp %104 : vector<16x16x128xf32>
    %c0_49 = arith.constant 0 : index
    %c0_50 = arith.constant 0 : index
    %c0_51 = arith.constant 0 : index
    %106 = vector.load %arg19[%c0_49, %c0_50, %c0_51] : memref<16x16x128xf32, #tpu.memory_space<vmem>>, vector<16x16x128xf32>
    tpu.vector_store %arg19[%c0_49, %c0_50, %c0_51], %105 {strides = array<i32>} : memref<16x16x128xf32, #tpu.memory_space<vmem>>, vector<16x16x128xf32>,
    %107 = arith.mulf %97, %73 : vector<16x128xf32>
    %108 = vector.shape_cast %107 : vector<16x128xf32> to vector<16x1x128xf32>
    %109 = vector.shape_cast %79 : vector<16x16xf32> to vector<16x16x1xf32>
    %110 = vector.broadcast %108 : vector<16x1x128xf32> to vector<16x16x128xf32>
    %111 = vector.broadcast %109 : vector<16x16x1xf32> to vector<16x16x128xf32>
    %112 = arith.mulf %110, %111 : vector<16x16x128xf32>
    %c0_52 = arith.constant 0 : index
    %c0_53 = arith.constant 0 : index
    %c0_54 = arith.constant 0 : index
    %113 = vector.load %arg20[%c0_52, %c0_53, %c0_54] : memref<16x16x128xf32, #tpu.memory_space<vmem>>, vector<16x16x128xf32>
    tpu.vector_store %arg20[%c0_52, %c0_53, %c0_54], %112 {strides = array<i32>} : memref<16x16x128xf32, #tpu.memory_space<vmem>>, vector<16x16x128xf32>,
    %114 = vector.shape_cast %82 : vector<16x16xf32> to vector<8x2x16xf32>
    %c0_55 = arith.constant 0 : index
    %c0_56 = arith.constant 0 : index
    %c0_57 = arith.constant 0 : index
    %115 = vector.load %arg21[%c0_55, %c0_56, %c0_57] : memref<8x2x16xf32, #tpu.memory_space<vmem>>, vector<8x2x16xf32>
    tpu.vector_store %arg21[%c0_55, %c0_56, %c0_57], %114 {strides = array<i32>} : memref<8x2x16xf32, #tpu.memory_space<vmem>>, vector<8x2x16xf32>,
    %cst_58 = arith.constant 0.000000e+00 : f32
    %116 = vector.broadcast %cst_58 : f32 to vector<2x16x128xf32>
    %c0_i32_59 = arith.constant 0 : i32
    %c2_i32_60 = arith.constant 2 : i32
    %117 = arith.muli %c0_i32_59, %c2_i32_60 : i32
    %118 = tpu.assume_multiple %117, 2 : i32
    %119 = arith.index_cast %118 : i32 to index
    %c0_61 = arith.constant 0 : index
    %c0_62 = arith.constant 0 : index
    %120 = vector.load %arg19[%119, %c0_61, %c0_62] : memref<16x16x128xf32, #tpu.memory_space<vmem>>, vector<2x16x128xf32>
    %121 = arith.mulf %120, %116 : vector<2x16x128xf32>
    %122 = arith.index_cast %118 : i32 to index
    %c0_63 = arith.constant 0 : index
    %c0_64 = arith.constant 0 : index
    %123 = vector.load %arg20[%122, %c0_63, %c0_64] : memref<16x16x128xf32, #tpu.memory_space<vmem>>, vector<2x16x128xf32>
    %124 = arith.addf %121, %123 : vector<2x16x128xf32>
    %125 = arith.index_cast %c0_i32_59 : i32 to index
    %c0_65 = arith.constant 0 : index
    %c0_66 = arith.constant 0 : index
    %126 = vector.load %arg21[%125, %c0_65, %c0_66] : memref<8x2x16xf32, #tpu.memory_space<vmem>>, vector<1x2x16xf32>
    %127 = vector.shape_cast %126 : vector<1x2x16xf32> to vector<2x16xf32>
    %128 = vector.shape_cast %127 : vector<2x16xf32> to vector<2x16x1xf32>
    %129 = vector.broadcast %128 : vector<2x16x1xf32> to vector<2x16x128xf32>
    %130 = arith.mulf %124, %129 : vector<2x16x128xf32>
    %cst_67 = arith.constant dense<0.000000e+00> : vector<2x128xf32>
    %131 = vector.multi_reduction <add>, %130, %cst_67 [1] : vector<2x16x128xf32> to vector<2x128xf32>
    %132 = arith.index_cast %c0_i32_59 : i32 to index
    %c0_68 = arith.constant 0 : index
    %c0_69 = arith.constant 0 : index
    %133 = vector.load %arg22[%132, %c0_68, %c0_69] : memref<8x2x128xf32, #tpu.memory_space<vmem>>, vector<1x2x128xf32>
    %134 = vector.shape_cast %133 : vector<1x2x128xf32> to vector<2x128xf32>
    %135 = vector.shape_cast %131 : vector<2x128xf32> to vector<1x2x128xf32>
    tpu.vector_store %arg22[%132, %c0_68, %c0_69], %135 {strides = array<i32>} : memref<8x2x128xf32, #tpu.memory_space<vmem>>, vector<1x2x128xf32>,
    %c1_i32 = arith.constant 1 : i32
    %c2_i32_70 = arith.constant 2 : i32
    %136 = arith.muli %c1_i32, %c2_i32_70 : i32
    %137 = tpu.assume_multiple %136, 2 : i32
    %138 = arith.index_cast %137 : i32 to index
    %c0_71 = arith.constant 0 : index
    %c0_72 = arith.constant 0 : index
    %139 = vector.load %arg19[%138, %c0_71, %c0_72] : memref<16x16x128xf32, #tpu.memory_space<vmem>>, vector<2x16x128xf32>
    %140 = arith.mulf %139, %124 : vector<2x16x128xf32>
    %141 = arith.index_cast %137 : i32 to index
    %c0_73 = arith.constant 0 : index
    %c0_74 = arith.constant 0 : index
    %142 = vector.load %arg20[%141, %c0_73, %c0_74] : memref<16x16x128xf32, #tpu.memory_space<vmem>>, vector<2x16x128xf32>
    %143 = arith.addf %140, %142 : vector<2x16x128xf32>
    %144 = arith.index_cast %c1_i32 : i32 to index
    %c0_75 = arith.constant 0 : index
    %c0_76 = arith.constant 0 : index
    %145 = vector.load %arg21[%144, %c0_75, %c0_76] : memref<8x2x16xf32, #tpu.memory_space<vmem>>, vector<1x2x16xf32>
    %146 = vector.shape_cast %145 : vector<1x2x16xf32> to vector<2x16xf32>
    %147 = vector.shape_cast %146 : vector<2x16xf32> to vector<2x16x1xf32>
    %148 = vector.broadcast %147 : vector<2x16x1xf32> to vector<2x16x128xf32>
    %149 = arith.mulf %143, %148 : vector<2x16x128xf32>
    %cst_77 = arith.constant dense<0.000000e+00> : vector<2x128xf32>
    %150 = vector.multi_reduction <add>, %149, %cst_77 [1] : vector<2x16x128xf32> to vector<2x128xf32>
    %151 = arith.index_cast %c1_i32 : i32 to index
    %c0_78 = arith.constant 0 : index
    %c0_79 = arith.constant 0 : index
    %152 = vector.load %arg22[%151, %c0_78, %c0_79] : memref<8x2x128xf32, #tpu.memory_space<vmem>>, vector<1x2x128xf32>
    %153 = vector.shape_cast %152 : vector<1x2x128xf32> to vector<2x128xf32>
    %154 = vector.shape_cast %150 : vector<2x128xf32> to vector<1x2x128xf32>
    tpu.vector_store %arg22[%151, %c0_78, %c0_79], %154 {strides = array<i32>} : memref<8x2x128xf32, #tpu.memory_space<vmem>>, vector<1x2x128xf32>,
    %c2_i32_80 = arith.constant 2 : i32
    %c2_i32_81 = arith.constant 2 : i32
    %155 = arith.muli %c2_i32_80, %c2_i32_81 : i32
    %156 = tpu.assume_multiple %155, 2 : i32
    %157 = arith.index_cast %156 : i32 to index
    %c0_82 = arith.constant 0 : index
    %c0_83 = arith.constant 0 : index
    %158 = vector.load %arg19[%157, %c0_82, %c0_83] : memref<16x16x128xf32, #tpu.memory_space<vmem>>, vector<2x16x128xf32>
    %159 = arith.mulf %158, %143 : vector<2x16x128xf32>
    %160 = arith.index_cast %156 : i32 to index
    %c0_84 = arith.constant 0 : index
    %c0_85 = arith.constant 0 : index
    %161 = vector.load %arg20[%160, %c0_84, %c0_85] : memref<16x16x128xf32, #tpu.memory_space<vmem>>, vector<2x16x128xf32>
    %162 = arith.addf %159, %161 : vector<2x16x128xf32>
    %163 = arith.index_cast %c2_i32_80 : i32 to index
    %c0_86 = arith.constant 0 : index
    %c0_87 = arith.constant 0 : index
    %164 = vector.load %arg21[%163, %c0_86, %c0_87] : memref<8x2x16xf32, #tpu.memory_space<vmem>>, vector<1x2x16xf32>
    %165 = vector.shape_cast %164 : vector<1x2x16xf32> to vector<2x16xf32>
    %166 = vector.shape_cast %165 : vector<2x16xf32> to vector<2x16x1xf32>
    %167 = vector.broadcast %166 : vector<2x16x1xf32> to vector<2x16x128xf32>
    %168 = arith.mulf %162, %167 : vector<2x16x128xf32>
    %cst_88 = arith.constant dense<0.000000e+00> : vector<2x128xf32>
    %169 = vector.multi_reduction <add>, %168, %cst_88 [1] : vector<2x16x128xf32> to vector<2x128xf32>
    %170 = arith.index_cast %c2_i32_80 : i32 to index
    %c0_89 = arith.constant 0 : index
    %c0_90 = arith.constant 0 : index
    %171 = vector.load %arg22[%170, %c0_89, %c0_90] : memref<8x2x128xf32, #tpu.memory_space<vmem>>, vector<1x2x128xf32>
    %172 = vector.shape_cast %171 : vector<1x2x128xf32> to vector<2x128xf32>
    %173 = vector.shape_cast %169 : vector<2x128xf32> to vector<1x2x128xf32>
    tpu.vector_store %arg22[%170, %c0_89, %c0_90], %173 {strides = array<i32>} : memref<8x2x128xf32, #tpu.memory_space<vmem>>, vector<1x2x128xf32>,
    %c3_i32 = arith.constant 3 : i32
    %c2_i32_91 = arith.constant 2 : i32
    %174 = arith.muli %c3_i32, %c2_i32_91 : i32
    %175 = tpu.assume_multiple %174, 2 : i32
    %176 = arith.index_cast %175 : i32 to index
    %c0_92 = arith.constant 0 : index
    %c0_93 = arith.constant 0 : index
    %177 = vector.load %arg19[%176, %c0_92, %c0_93] : memref<16x16x128xf32, #tpu.memory_space<vmem>>, vector<2x16x128xf32>
    %178 = arith.mulf %177, %162 : vector<2x16x128xf32>
    %179 = arith.index_cast %175 : i32 to index
    %c0_94 = arith.constant 0 : index
    %c0_95 = arith.constant 0 : index
    %180 = vector.load %arg20[%179, %c0_94, %c0_95] : memref<16x16x128xf32, #tpu.memory_space<vmem>>, vector<2x16x128xf32>
    %181 = arith.addf %178, %180 : vector<2x16x128xf32>
    %182 = arith.index_cast %c3_i32 : i32 to index
    %c0_96 = arith.constant 0 : index
    %c0_97 = arith.constant 0 : index
    %183 = vector.load %arg21[%182, %c0_96, %c0_97] : memref<8x2x16xf32, #tpu.memory_space<vmem>>, vector<1x2x16xf32>
    %184 = vector.shape_cast %183 : vector<1x2x16xf32> to vector<2x16xf32>
    %185 = vector.shape_cast %184 : vector<2x16xf32> to vector<2x16x1xf32>
    %186 = vector.broadcast %185 : vector<2x16x1xf32> to vector<2x16x128xf32>
    %187 = arith.mulf %181, %186 : vector<2x16x128xf32>
    %cst_98 = arith.constant dense<0.000000e+00> : vector<2x128xf32>
    %188 = vector.multi_reduction <add>, %187, %cst_98 [1] : vector<2x16x128xf32> to vector<2x128xf32>
    %189 = arith.index_cast %c3_i32 : i32 to index
    %c0_99 = arith.constant 0 : index
    %c0_100 = arith.constant 0 : index
    %190 = vector.load %arg22[%189, %c0_99, %c0_100] : memref<8x2x128xf32, #tpu.memory_space<vmem>>, vector<1x2x128xf32>
    %191 = vector.shape_cast %190 : vector<1x2x128xf32> to vector<2x128xf32>
    %192 = vector.shape_cast %188 : vector<2x128xf32> to vector<1x2x128xf32>
    tpu.vector_store %arg22[%189, %c0_99, %c0_100], %192 {strides = array<i32>} : memref<8x2x128xf32, #tpu.memory_space<vmem>>, vector<1x2x128xf32>,
    %c4_i32_101 = arith.constant 4 : i32
    %c2_i32_102 = arith.constant 2 : i32
    %193 = arith.muli %c4_i32_101, %c2_i32_102 : i32
    %194 = tpu.assume_multiple %193, 2 : i32
    %195 = arith.index_cast %194 : i32 to index
    %c0_103 = arith.constant 0 : index
    %c0_104 = arith.constant 0 : index
    %196 = vector.load %arg19[%195, %c0_103, %c0_104] : memref<16x16x128xf32, #tpu.memory_space<vmem>>, vector<2x16x128xf32>
    %197 = arith.mulf %196, %181 : vector<2x16x128xf32>
    %198 = arith.index_cast %194 : i32 to index
    %c0_105 = arith.constant 0 : index
    %c0_106 = arith.constant 0 : index
    %199 = vector.load %arg20[%198, %c0_105, %c0_106] : memref<16x16x128xf32, #tpu.memory_space<vmem>>, vector<2x16x128xf32>
    %200 = arith.addf %197, %199 : vector<2x16x128xf32>
    %201 = arith.index_cast %c4_i32_101 : i32 to index
    %c0_107 = arith.constant 0 : index
    %c0_108 = arith.constant 0 : index
    %202 = vector.load %arg21[%201, %c0_107, %c0_108] : memref<8x2x16xf32, #tpu.memory_space<vmem>>, vector<1x2x16xf32>
    %203 = vector.shape_cast %202 : vector<1x2x16xf32> to vector<2x16xf32>
    %204 = vector.shape_cast %203 : vector<2x16xf32> to vector<2x16x1xf32>
    %205 = vector.broadcast %204 : vector<2x16x1xf32> to vector<2x16x128xf32>
    %206 = arith.mulf %200, %205 : vector<2x16x128xf32>
    %cst_109 = arith.constant dense<0.000000e+00> : vector<2x128xf32>
    %207 = vector.multi_reduction <add>, %206, %cst_109 [1] : vector<2x16x128xf32> to vector<2x128xf32>
    %208 = arith.index_cast %c4_i32_101 : i32 to index
    %c0_110 = arith.constant 0 : index
    %c0_111 = arith.constant 0 : index
    %209 = vector.load %arg22[%208, %c0_110, %c0_111] : memref<8x2x128xf32, #tpu.memory_space<vmem>>, vector<1x2x128xf32>
    %210 = vector.shape_cast %209 : vector<1x2x128xf32> to vector<2x128xf32>
    %211 = vector.shape_cast %207 : vector<2x128xf32> to vector<1x2x128xf32>
    tpu.vector_store %arg22[%208, %c0_110, %c0_111], %211 {strides = array<i32>} : memref<8x2x128xf32, #tpu.memory_space<vmem>>, vector<1x2x128xf32>,
    %c5_i32 = arith.constant 5 : i32
    %c2_i32_112 = arith.constant 2 : i32
    %212 = arith.muli %c5_i32, %c2_i32_112 : i32
    %213 = tpu.assume_multiple %212, 2 : i32
    %214 = arith.index_cast %213 : i32 to index
    %c0_113 = arith.constant 0 : index
    %c0_114 = arith.constant 0 : index
    %215 = vector.load %arg19[%214, %c0_113, %c0_114] : memref<16x16x128xf32, #tpu.memory_space<vmem>>, vector<2x16x128xf32>
    %216 = arith.mulf %215, %200 : vector<2x16x128xf32>
    %217 = arith.index_cast %213 : i32 to index
    %c0_115 = arith.constant 0 : index
    %c0_116 = arith.constant 0 : index
    %218 = vector.load %arg20[%217, %c0_115, %c0_116] : memref<16x16x128xf32, #tpu.memory_space<vmem>>, vector<2x16x128xf32>
    %219 = arith.addf %216, %218 : vector<2x16x128xf32>
    %220 = arith.index_cast %c5_i32 : i32 to index
    %c0_117 = arith.constant 0 : index
    %c0_118 = arith.constant 0 : index
    %221 = vector.load %arg21[%220, %c0_117, %c0_118] : memref<8x2x16xf32, #tpu.memory_space<vmem>>, vector<1x2x16xf32>
    %222 = vector.shape_cast %221 : vector<1x2x16xf32> to vector<2x16xf32>
    %223 = vector.shape_cast %222 : vector<2x16xf32> to vector<2x16x1xf32>
    %224 = vector.broadcast %223 : vector<2x16x1xf32> to vector<2x16x128xf32>
    %225 = arith.mulf %219, %224 : vector<2x16x128xf32>
    %cst_119 = arith.constant dense<0.000000e+00> : vector<2x128xf32>
    %226 = vector.multi_reduction <add>, %225, %cst_119 [1] : vector<2x16x128xf32> to vector<2x128xf32>
    %227 = arith.index_cast %c5_i32 : i32 to index
    %c0_120 = arith.constant 0 : index
    %c0_121 = arith.constant 0 : index
    %228 = vector.load %arg22[%227, %c0_120, %c0_121] : memref<8x2x128xf32, #tpu.memory_space<vmem>>, vector<1x2x128xf32>
    %229 = vector.shape_cast %228 : vector<1x2x128xf32> to vector<2x128xf32>
    %230 = vector.shape_cast %226 : vector<2x128xf32> to vector<1x2x128xf32>
    tpu.vector_store %arg22[%227, %c0_120, %c0_121], %230 {strides = array<i32>} : memref<8x2x128xf32, #tpu.memory_space<vmem>>, vector<1x2x128xf32>,
    %c6_i32_122 = arith.constant 6 : i32
    %c2_i32_123 = arith.constant 2 : i32
    %231 = arith.muli %c6_i32_122, %c2_i32_123 : i32
    %232 = tpu.assume_multiple %231, 2 : i32
    %233 = arith.index_cast %232 : i32 to index
    %c0_124 = arith.constant 0 : index
    %c0_125 = arith.constant 0 : index
    %234 = vector.load %arg19[%233, %c0_124, %c0_125] : memref<16x16x128xf32, #tpu.memory_space<vmem>>, vector<2x16x128xf32>
    %235 = arith.mulf %234, %219 : vector<2x16x128xf32>
    %236 = arith.index_cast %232 : i32 to index
    %c0_126 = arith.constant 0 : index
    %c0_127 = arith.constant 0 : index
    %237 = vector.load %arg20[%236, %c0_126, %c0_127] : memref<16x16x128xf32, #tpu.memory_space<vmem>>, vector<2x16x128xf32>
    %238 = arith.addf %235, %237 : vector<2x16x128xf32>
    %239 = arith.index_cast %c6_i32_122 : i32 to index
    %c0_128 = arith.constant 0 : index
    %c0_129 = arith.constant 0 : index
    %240 = vector.load %arg21[%239, %c0_128, %c0_129] : memref<8x2x16xf32, #tpu.memory_space<vmem>>, vector<1x2x16xf32>
    %241 = vector.shape_cast %240 : vector<1x2x16xf32> to vector<2x16xf32>
    %242 = vector.shape_cast %241 : vector<2x16xf32> to vector<2x16x1xf32>
    %243 = vector.broadcast %242 : vector<2x16x1xf32> to vector<2x16x128xf32>
    %244 = arith.mulf %238, %243 : vector<2x16x128xf32>
    %cst_130 = arith.constant dense<0.000000e+00> : vector<2x128xf32>
    %245 = vector.multi_reduction <add>, %244, %cst_130 [1] : vector<2x16x128xf32> to vector<2x128xf32>
    %246 = arith.index_cast %c6_i32_122 : i32 to index
    %c0_131 = arith.constant 0 : index
    %c0_132 = arith.constant 0 : index
    %247 = vector.load %arg22[%246, %c0_131, %c0_132] : memref<8x2x128xf32, #tpu.memory_space<vmem>>, vector<1x2x128xf32>
    %248 = vector.shape_cast %247 : vector<1x2x128xf32> to vector<2x128xf32>
    %249 = vector.shape_cast %245 : vector<2x128xf32> to vector<1x2x128xf32>
    tpu.vector_store %arg22[%246, %c0_131, %c0_132], %249 {strides = array<i32>} : memref<8x2x128xf32, #tpu.memory_space<vmem>>, vector<1x2x128xf32>,
    %c7_i32 = arith.constant 7 : i32
    %c2_i32_133 = arith.constant 2 : i32
    %250 = arith.muli %c7_i32, %c2_i32_133 : i32
    %251 = tpu.assume_multiple %250, 2 : i32
    %252 = arith.index_cast %251 : i32 to index
    %c0_134 = arith.constant 0 : index
    %c0_135 = arith.constant 0 : index
    %253 = vector.load %arg19[%252, %c0_134, %c0_135] : memref<16x16x128xf32, #tpu.memory_space<vmem>>, vector<2x16x128xf32>
    %254 = arith.mulf %253, %238 : vector<2x16x128xf32>
    %255 = arith.index_cast %251 : i32 to index
    %c0_136 = arith.constant 0 : index
    %c0_137 = arith.constant 0 : index
    %256 = vector.load %arg20[%255, %c0_136, %c0_137] : memref<16x16x128xf32, #tpu.memory_space<vmem>>, vector<2x16x128xf32>
    %257 = arith.addf %254, %256 : vector<2x16x128xf32>
    %258 = arith.index_cast %c7_i32 : i32 to index
    %c0_138 = arith.constant 0 : index
    %c0_139 = arith.constant 0 : index
    %259 = vector.load %arg21[%258, %c0_138, %c0_139] : memref<8x2x16xf32, #tpu.memory_space<vmem>>, vector<1x2x16xf32>
    %260 = vector.shape_cast %259 : vector<1x2x16xf32> to vector<2x16xf32>
    %261 = vector.shape_cast %260 : vector<2x16xf32> to vector<2x16x1xf32>
    %262 = vector.broadcast %261 : vector<2x16x1xf32> to vector<2x16x128xf32>
    %263 = arith.mulf %257, %262 : vector<2x16x128xf32>
    %cst_140 = arith.constant dense<0.000000e+00> : vector<2x128xf32>
    %264 = vector.multi_reduction <add>, %263, %cst_140 [1] : vector<2x16x128xf32> to vector<2x128xf32>
    %265 = arith.index_cast %c7_i32 : i32 to index
    %c0_141 = arith.constant 0 : index
    %c0_142 = arith.constant 0 : index
    %266 = vector.load %arg22[%265, %c0_141, %c0_142] : memref<8x2x128xf32, #tpu.memory_space<vmem>>, vector<1x2x128xf32>
    %267 = vector.shape_cast %266 : vector<1x2x128xf32> to vector<2x128xf32>
    %268 = vector.shape_cast %264 : vector<2x128xf32> to vector<1x2x128xf32>
    tpu.vector_store %arg22[%265, %c0_141, %c0_142], %268 {strides = array<i32>} : memref<8x2x128xf32, #tpu.memory_space<vmem>>, vector<1x2x128xf32>,
    %c8_i32 = arith.constant 8 : i32
    %c0_143 = arith.constant 0 : index
    %c0_144 = arith.constant 0 : index
    %c0_145 = arith.constant 0 : index
    %269 = vector.load %arg22[%c0_143, %c0_144, %c0_145] : memref<8x2x128xf32, #tpu.memory_space<vmem>>, vector<8x2x128xf32>
    %270 = vector.shape_cast %269 : vector<8x2x128xf32> to vector<16x128xf32>
    %c0_146 = arith.constant 0 : index
    %c0_147 = arith.constant 0 : index
    %c0_148 = arith.constant 0 : index
    %271 = vector.load %arg12[%c0_146, %c0_147, %c0_148] : memref<1x1x128xf32, #tpu.memory_space<vmem>>, vector<1x1x128xf32>
    %272 = vector.shape_cast %271 : vector<1x1x128xf32> to vector<1x128xf32>
    %273 = vector.broadcast %272 : vector<1x128xf32> to vector<16x128xf32>
    %274 = arith.mulf %73, %273 : vector<16x128xf32>
    %275 = arith.addf %270, %274 : vector<16x128xf32>
    %cst_149 = arith.constant 0.000000e+00 : f32
    %276 = vector.broadcast %cst_149 : f32 to vector<16x128xf32>
    %277 = arith.subf %276, %23 : vector<16x128xf32>
    %278 = math.exp %277 : vector<16x128xf32>
    %cst_150 = arith.constant 1.000000e+00 : f32
    %279 = vector.broadcast %cst_150 : f32 to vector<16x128xf32>
    %280 = arith.addf %279, %278 : vector<16x128xf32>
    %281 = tpu.reciprocal %280 {approx = true} : vector<16x128xf32> -> vector<16x128xf32>
    %282 = arith.mulf %23, %281 : vector<16x128xf32>
    %283 = arith.mulf %275, %282 : vector<16x128xf32>
    %284 = arith.truncf %283 : vector<16x128xf32> to vector<16x128xbf16>
    %c0_151 = arith.constant 0 : index
    %c0_152 = arith.constant 0 : index
    %c0_153 = arith.constant 0 : index
    %285 = vector.load %arg13[%c0_151, %c0_152, %c0_153] : memref<1x128x32xbf16, #tpu.memory_space<vmem>>, vector<1x128x32xbf16>
    %286 = vector.shape_cast %285 : vector<1x128x32xbf16> to vector<128x32xbf16>
    %cst_154 = arith.constant dense<0.000000e+00> : vector<16x32xf32>
    %287 = tpu.matmul %284, %286, %cst_154 {dimension_numbers = #tpu.dot_dimension_numbers<[1], [0], [0], [1], [0, 0, 1, 1], [], []>} : vector<16x128xbf16>, vector<128x32xbf16>, vector<16x32xf32> -> vector<16x32xf32>
    %288 = arith.addf %3, %287 : vector<16x32xf32>
    %c0_155 = arith.constant 0 : index
    %c0_156 = arith.constant 0 : index
    %289 = vector.load %arg18[%c0_155, %c0_156] : memref<16x32xf32, #tpu.memory_space<vmem>>, vector<16x32xf32>
    tpu.vector_store %arg18[%c0_155, %c0_156], %288 {strides = array<i32>} : memref<16x32xf32, #tpu.memory_space<vmem>>, vector<16x32xf32>,
    %c7_i32_157 = arith.constant 7 : i32
    %290 = arith.cmpi eq, %arg0, %c7_i32_157 : i32
    %291 = arith.extui %290 : i1 to i32
    %c0_i32_158 = arith.constant 0 : i32
    %292 = arith.cmpi ne, %291, %c0_i32_158 : i32
    scf.if %292 {
      %293 = arith.mulf %288, %288 : vector<16x32xf32>
      %cst_159 = arith.constant dense<0.000000e+00> : vector<16xf32>
      %294 = vector.multi_reduction <add>, %293, %cst_159 [1] : vector<16x32xf32> to vector<16xf32>
      %295 = vector.shape_cast %294 : vector<16xf32> to vector<16x1xf32>
      %cst_160 = arith.constant 3.200000e+01 : f32
      %296 = vector.broadcast %cst_160 : f32 to vector<16x1xf32>
      %297 = arith.divf %295, %296 : vector<16x1xf32>
      %cst_161 = arith.constant 9.99999974E-6 : f32
      %298 = vector.broadcast %cst_161 : f32 to vector<16x1xf32>
      %299 = arith.addf %297, %298 : vector<16x1xf32>
      %300 = math.rsqrt %299 : vector<16x1xf32>
      %301 = vector.broadcast %300 : vector<16x1xf32> to vector<16x32xf32>
      %302 = arith.mulf %288, %301 : vector<16x32xf32>
      %c0_162 = arith.constant 0 : index
      %c0_163 = arith.constant 0 : index
      %303 = vector.load %arg14[%c0_162, %c0_163] : memref<1x32xf32, #tpu.memory_space<vmem>>, vector<1x32xf32>
      %304 = vector.broadcast %303 : vector<1x32xf32> to vector<16x32xf32>
      %305 = arith.mulf %302, %304 : vector<16x32xf32>
      %306 = vector.shape_cast %305 : vector<16x32xf32> to vector<8x2x32xf32>
      %cst_164 = arith.constant dense<0.000000e+00> : vector<2x32xf32>
      %307 = vector.multi_reduction <add>, %306, %cst_164 [0] : vector<8x2x32xf32> to vector<2x32xf32>
      %cst_165 = arith.constant 8.000000e+00 : f32
      %308 = vector.broadcast %cst_165 : f32 to vector<2x32xf32>
      %309 = arith.divf %307, %308 : vector<2x32xf32>
      %c0_166 = arith.constant 0 : index
      %c0_167 = arith.constant 0 : index
      %310 = vector.load %arg15[%c0_166, %c0_167] : memref<32x2xf32, #tpu.memory_space<vmem>>, vector<32x2xf32>
      %cst_168 = arith.constant dense<0.000000e+00> : vector<2x2xf32>
      %311 = tpu.matmul %309, %310, %cst_168 {dimension_numbers = #tpu.dot_dimension_numbers<[1], [0], [0], [1], [0, 0, 1, 1], [], []>} : vector<2x32xf32>, vector<32x2xf32>, vector<2x2xf32> -> vector<2x2xf32>
      %c0_169 = arith.constant 0 : index
      %c0_170 = arith.constant 0 : index
      %312 = vector.load %arg16[%c0_169, %c0_170] : memref<1x2xf32, #tpu.memory_space<vmem>>, vector<1x2xf32>
      %313 = vector.broadcast %312 : vector<1x2xf32> to vector<2x2xf32>
      %314 = arith.addf %311, %313 : vector<2x2xf32>
      %c0_171 = arith.constant 0 : index
      %c0_172 = arith.constant 0 : index
      %315 = vector.load %arg17[%c0_171, %c0_172] : memref<2x2xf32, #tpu.memory_space<vmem>>, vector<2x2xf32>
      tpu.vector_store %arg17[%c0_171, %c0_172], %314 {strides = array<i32>} : memref<2x2xf32, #tpu.memory_space<vmem>>, vector<2x2xf32>,
    } else {
    }
    return
  }
  func.func @transform_0(%arg0: i32) -> (i32, i32) {
    %c0_i32 = arith.constant 0 : i32
    %c0_i32_0 = arith.constant 0 : i32
    %c0_i32_1 = arith.constant 0 : i32
    return %c0_i32, %c0_i32_0 : i32, i32
  }
  func.func @transform_1(%arg0: i32) -> (i32, i32, i32) {
    %c0_i32 = arith.constant 0 : i32
    %c0_i32_0 = arith.constant 0 : i32
    %c0_i32_1 = arith.constant 0 : i32
    return %arg0, %c0_i32, %c0_i32_0 : i32, i32, i32
  }
  func.func @transform_2(%arg0: i32) -> (i32, i32, i32) {
    %c0_i32 = arith.constant 0 : i32
    %c0_i32_0 = arith.constant 0 : i32
    %c0_i32_1 = arith.constant 0 : i32
    return %arg0, %c0_i32, %c0_i32_0 : i32, i32, i32
  }
  func.func @transform_3(%arg0: i32) -> (i32, i32, i32) {
    %c0_i32 = arith.constant 0 : i32
    %c0_i32_0 = arith.constant 0 : i32
    %c0_i32_1 = arith.constant 0 : i32
    return %arg0, %c0_i32, %c0_i32_0 : i32, i32, i32
  }
  func.func @transform_4(%arg0: i32) -> (i32, i32, i32) {
    %c0_i32 = arith.constant 0 : i32
    %c0_i32_0 = arith.constant 0 : i32
    %c0_i32_1 = arith.constant 0 : i32
    return %arg0, %c0_i32, %c0_i32_0 : i32, i32, i32
  }
  func.func @transform_5(%arg0: i32) -> (i32, i32, i32) {
    %c0_i32 = arith.constant 0 : i32
    %c0_i32_0 = arith.constant 0 : i32
    %c0_i32_1 = arith.constant 0 : i32
    return %arg0, %c0_i32, %c0_i32_0 : i32, i32, i32
  }
  func.func @transform_6(%arg0: i32) -> (i32, i32, i32) {
    %c0_i32 = arith.constant 0 : i32
    %c0_i32_0 = arith.constant 0 : i32
    %c0_i32_1 = arith.constant 0 : i32
    return %arg0, %c0_i32, %c0_i32_0 : i32, i32, i32
  }
  func.func @transform_7(%arg0: i32) -> (i32, i32, i32) {
    %c0_i32 = arith.constant 0 : i32
    %c0_i32_0 = arith.constant 0 : i32
    %c0_i32_1 = arith.constant 0 : i32
    return %arg0, %c0_i32, %c0_i32_0 : i32, i32, i32
  }
  func.func @transform_8(%arg0: i32) -> (i32, i32, i32) {
    %c0_i32 = arith.constant 0 : i32
    %c0_i32_0 = arith.constant 0 : i32
    %c0_i32_1 = arith.constant 0 : i32
    return %arg0, %c0_i32, %c0_i32_0 : i32, i32, i32
  }
  func.func @transform_9(%arg0: i32) -> (i32, i32, i32) {
    %c0_i32 = arith.constant 0 : i32
    %c0_i32_0 = arith.constant 0 : i32
    %c0_i32_1 = arith.constant 0 : i32
    return %arg0, %c0_i32, %c0_i32_0 : i32, i32, i32
  }
  func.func @transform_10(%arg0: i32) -> (i32, i32, i32) {
    %c0_i32 = arith.constant 0 : i32
    %c0_i32_0 = arith.constant 0 : i32
    %c0_i32_1 = arith.constant 0 : i32
    return %arg0, %c0_i32, %c0_i32_0 : i32, i32, i32
  }
  func.func @transform_11(%arg0: i32) -> (i32, i32, i32) {
    %c0_i32 = arith.constant 0 : i32
    %c0_i32_0 = arith.constant 0 : i32
    %c0_i32_1 = arith.constant 0 : i32
    return %arg0, %c0_i32, %c0_i32_0 : i32, i32, i32
  }
  func.func @transform_12(%arg0: i32) -> (i32, i32, i32) {
    %c0_i32 = arith.constant 0 : i32
    %c0_i32_0 = arith.constant 0 : i32
    %c0_i32_1 = arith.constant 0 : i32
    return %arg0, %c0_i32, %c0_i32_0 : i32, i32, i32
  }
  func.func @transform_13(%arg0: i32) -> (i32, i32) {
    %c0_i32 = arith.constant 0 : i32
    %c0_i32_0 = arith.constant 0 : i32
    %c0_i32_1 = arith.constant 0 : i32
    return %c0_i32, %c0_i32_0 : i32, i32
  }
  func.func @transform_14(%arg0: i32) -> (i32, i32) {
    %c0_i32 = arith.constant 0 : i32
    %c0_i32_0 = arith.constant 0 : i32
    %c0_i32_1 = arith.constant 0 : i32
    return %c0_i32, %c0_i32_0 : i32, i32
  }
  func.func @transform_15(%arg0: i32) -> (i32, i32) {
    %c0_i32 = arith.constant 0 : i32
    %c0_i32_0 = arith.constant 0 : i32
    %c0_i32_1 = arith.constant 0 : i32
    return %c0_i32, %c0_i32_0 : i32, i32
  }
  func.func @transform_16(%arg0: i32) -> (i32, i32) {
    %c0_i32 = arith.constant 0 : i32
    %c0_i32_0 = arith.constant 0 : i32
    %c0_i32_1 = arith.constant 0 : i32
    return %c0_i32, %c0_i32_0 : i32, i32
  }
}

</mosaic_0001>

<bundles_post_ra>
// kernel: model_fwd.2
= control target key start
LH: loop header
LB: loop body
LE: loop exit
PB: predicated region body
PF: predicated region fallthrough
CT: control target
= control target key end

     0   :  { %vm189_vm0 = vcmask 1043456   ;;  %vm182_vm1 = vcmask 31744   ;;  %v725_v0 = vmov 0   ;;  %vm66_vm2 = vcmask 64512   ;;  %s907_s1 = inlined_call_operand.vmem [shape: f32[16,1], index: 1, kind: input, shape index: {}]   ;;  %s908_s10 = inlined_call_operand.vmem [shape: f32[4,8], index: 10, kind: input, shape index: {}]   ;;  %s909_s2 = inlined_call_operand.vmem [shape: f32[16,4], index: 2, kind: input, shape index: {}]   ;;  %s910_s9 = inlined_call_operand.vmem [shape: f32[8,8], index: 9, kind: input, shape index: {}]   ;;  %s911_s5 = inlined_call_operand.vmem [shape: f32[8,8], index: 5, kind: input, shape index: {}]   ;;  %s912_s0 = inlined_call_operand.vmem [shape: f32[16,8], index: 0, kind: input, shape index: {}]   ;;  %s913_s3 = inlined_call_operand.vmem [shape: f32[16,1], index: 3, kind: input, shape index: {}]   ;;  %s914_s7 = inlined_call_operand.vmem [shape: f32[1,8], index: 7, kind: input, shape index: {}]   ;;  %s915_s8 = inlined_call_operand.vmem [shape: f32[1,8], index: 8, kind: input, shape index: {}]   ;;  %s916_s14 = inlined_call_operand.vmem [shape: f32[8,32], index: 14, kind: input, shape index: {}]   ;;  %s917_s11 = inlined_call_operand.vmem [shape: f32[1,8], index: 11, kind: input, shape index: {}]   ;;  %s918_s6 = inlined_call_operand.vmem [shape: f32[1,8], index: 6, kind: input, shape index: {}]   ;;  %s919_s12 = inlined_call_operand.vmem [shape: f32[8,12], index: 12, kind: input, shape index: {}]   ;;  %s920_s4 = inlined_call_operand.vmem [shape: f32[2,8], index: 4, kind: input, shape index: {}]   ;;  %s921_s15 = inlined_call_operand.vmem [shape: f32[12,32], index: 15, kind: input, shape index: {}]   ;;  %s922_s13 = inlined_call_operand.vmem [shape: f32[1,12], index: 13, kind: input, shape index: {}]   ;;  %s923_s16 = inlined_call_operand.vmem [shape: f32[1,32], index: 16, kind: input, shape index: {}]   ;;  %s924_s17 = inlined_call_operand.vmem [shape: f32[16,32], index: 17, kind: output, shape index: {}]  }
   0x1   :  { %926 = sst [smem:[#allocation2_spill]] %s907_s1  ;;  %723 = vset.pattern.permute.xlu0 %v725_v0  ;;  %724 = vset.pattern.permute.xlu1 %v725_v0  ;;  %v179_v3 = vld [vmem:[%s909_s2] sm:$0xff]  ;;  %v180_v4 = vld [vmem:[%s909_s2 + $0x8] sm:$0xff]  ;;  %v726_v23 = vmov 0.0   ;;  %vm727_vm3 = vmmov 0   ;;  %vm728_vm4 = vmmov 1   ;;  %v629_v52 = vlaneseq }
   0x2   :  { %927 = sst [smem:[#allocation3_spill]] %s908_s10  ;;  %s928_s26 = sld [smem:[#allocation2_spill]]  ;;  %686 = vmatprep.mubr.msk.f32.mxu1 %vm182_vm1, %v179_v3  ;;  %v178_v6 = vld [vmem:[%s910_s9] sm:$0xff]  ;;  %v57_v9 = vld [vmem:[%s912_s0 + $0x8] sm:$0xff]  ;;  %vm713_vm5 = vmpackc.low %vm189_vm0, %vm728_vm4  ;;  %v729_v43 = vmov 0.0|0.0   ;;  %vm547_vm6 = vcmask 97280  }
   0x3   :  { %s929_s29 = sld [smem:[#allocation3_spill]]  ;;  %v58_v7 = vld [vmem:[%s911_s5] sm:$0xff]  ;;  %v359_v11 = vld [vmem:[%s913_s3 + $0x8] sm:$0xff]  ;;  %v730_v50 = vmov 1983009808   ;;  %v630_v54 = vshrl.u32 %v629_v52, 7 }
   0x4   :  { %679 = vmatprep.subr.mxu0 %v58_v7  ;;  %v56_v8 = vld [vmem:[%s912_s0] sm:$0xff]  ;;  %v546_v41 = vld [vmem:[%s921_s15 + $0x8] sm:$0xf]  ;;  %v627_v51 = vunpack.c.l.s4 %v730_v50  ;;  %vm637_vm7 = vcmask 261120  }
   0x5   :  { %680 = vmatpush3.msra.mxu0 %v58_v7  ;;  %681 = vmatprep.mubr.msk.f32.mxu0 %vm66_vm2, %v56_v8  ;;  %v358_v10 = vld [vmem:[%s913_s3] sm:$0xff] }
   0x6   :  { %682 = vmatmul.mubr.msk.f32.vlgmr.msra.gmra.mrb[0].mxu0 %vm66_vm2, %v57_v9  ;;  %362 = vperm.xlu1 %724, %v358_v10   ;;  %v647_v12 = vld [vmem:[%s914_s7] ss:$0 sm:$0xff]  ;;  %v628_v53 = vunpack.c.0.s8 %v627_v51 }
   0x7   :  { %v648_v13 = vld [vmem:[%s915_s8] ss:$0 sm:$0xff] }
   0x8   :  { %v148_v1 = vld [vmem:[%s928_s26] sm:$0xff]  ;;  %v149_v5 = vld [vmem:[%s928_s26 + $0x8] sm:$0xff]  ;;  %v631_v55 = vsub.s32 %v628_v53, %v630_v54 }
   0x9   :  { %v181_v2 = vld [vmem:[%s929_s29] sm:$0xf]  ;;  %153 = vperm.xlu0 %723, %v148_v1  }
   0xa   :  { %684 = vmatprep.subr.msk.mxu1 %vm189_vm0, %v181_v2  ;;  %367 = vperm.xlu1 %724, %v359_v11   ;;  %v374_v22 = vld [vmem:[%s916_s14] sm:$0xff] }
   0xb   :  { %685 = vmatpush3.msk.msra.mxu1 %vm189_vm0, %v181_v2  ;;  %694 = vmatprep.subr.mxu0 %v374_v22  ;;  %v654_v25 = vld [vmem:[%s917_s11] ss:$0 sm:$0xff] }
   0xc   :  { %689 = vmatprep.subr.mxu1 %v178_v6  ;;  %687 = vmatmul.mubr.msk.f32.vlgmr.msra.gmra.mrb[0].mxu1 %vm182_vm1, %v180_v4  ;;  %v644_v26 = vld [vmem:[%s918_s6] ss:$0 sm:$0xff] }
   0xd   :  { %690 = vmatpush3.msra.mxu1 %v178_v6  ;;  %158 = vperm.xlu0 %723, %v149_v5   ;;  %v464_v38 = vld [vmem:[%s919_s12] sm:$0xff] }
   0xe   :  { %695 = vmatpush3.msra.mxu0 %v374_v22  ;;  %v463_v39 = vld [vmem:[%s920_s4] sm:$0x3]  ;;  %711 = vmatprep.subr.bf16.mxu1 %v729_v43 }
   0xf   :  { %699 = vmatprep.subr.mxu0 %v726_v23  ;;  %v545_v40 = vld [vmem:[%s921_s15] sm:$0xff] }
  0x10   :  { %v712_v42 = vpack.c.bf16 %v546_v41, %v545_v40  ;;  %v658_v46 = vld [vmem:[%s922_s13] ss:$0 sm:$0xff] }
  0x11   :  { %v655_v59 = vld [vmem:[%s923_s16] ss:$0 sm:$0xff] }
  0x85   :  { %v363_v24 = vpop.permute.xlu1 %362 }
  0x88   :  { %v154_v14 = vpop.permute.xlu0 %153 }
  0x89   :  { %v167_v15 = vmul.f32 %v647_v12, %v154_v14  ;;  %v368_v31 = vpop.permute.xlu1 %367 }
  0x8b   :  { %v176_v16 = vadd.f32 %v648_v13, %v167_v15 }
  0x8c   :  { %v159_v17 = vpop.permute.xlu0 %158 }
  0x8d   :  { %v168_v18 = vmul.f32 %v647_v12, %v159_v17  ;;  %691 = vmatprep.mubr.msk.f32.mxu1 %vm66_vm2, %v176_v16 }
  0x8f   :  { %v177_v19 = vadd.f32 %v648_v13, %v168_v18 }
  0x91   :  { %692 = vmatmul.mubr.msk.f32.vlgmr.msra.gmra.mrb[0].mxu1 %vm66_vm2, %v177_v19 }
  0x92   :  { %708 = vmatprep.mubr.msk.f32.mxu1 %vm727_vm3, %v726_v23  ;;  %714 = vmatpush3.bf16.msk.msra.mxu1 %vm713_vm5, %v712_v42 }
  0xd9   :  { %v683_v20 = vpop.f32.mrb[0].mxu0 }
  0xda   :  { %v139_v21 = vpop.f32.mrb[1].mxu0  ;;  %v145_v29 = vadd.f32 %v683_v20, %v644_v26 }
  0xdb   :  { %v140_v33 = vadd.f32 %v644_v26, %v139_v21 }
 0x164   :  { %v693_v27 = vpop.f32.mrb[0].mxu1 }
 0x165   :  { %v357_v28 = vadd.f32 %v693_v27, %v654_v25  ;;  %v340_v30 = vpop.f32.mrb[1].mxu1 }
 0x166   :  { %v356_v32 = vadd.f32 %v654_v25, %v340_v30 }
 0x167   :  { %v371_v34 = vmul.f32 %v368_v31, %v357_v28 }
 0x168   :  { %v370_v35 = vmul.f32 %v363_v24, %v356_v32 }
 0x169   :  { %v373_v36 = vadd.f32 %v371_v34, %v145_v29 }
 0x16a   :  { %v372_v37 = vadd.f32 %v370_v35, %v140_v33 }
 0x16c   :  { %696 = vmatprep.mubr.msk.f32.mxu0 %vm66_vm2, %v372_v37 }
 0x16d   :  { %697 = vmatmul.mubr.msk.f32.vlgmr.msra.gmra.mrb[2].mxu0 %vm66_vm2, %v373_v36 }
 0x16e   :  { %700 = vmatpush3.msra.mxu0 %v464_v38  ;;  %701 = vmatprep.mubr.msk.f32.mxu0 %vm727_vm3, %v726_v23 }
 0x171   :  { %702 = vmatmul.mubr.msk.f32.vlgmr.msra.gmra.mrb[4].mxu0 %vm66_vm2, %v463_v39 }
 0x240   :  { %v698_v44 = vpop.f32.mrb[2].mxu0 }
 0x241   :  { %v454_v45 = vpop.f32.mrb[3].mxu0  ;;  %v460_v61 = vadd.f32 %v698_v44, %v655_v59 }
 0x242   :  { %v455_v62 = vadd.f32 %v655_v59, %v454_v45 }
 0x244   :  { %v541_v47 = vpop.f32.mrb[4].mxu0 }
 0x245   :  { %v542_v48 = vadd.f32 %v658_v46, %v541_v47  ;;  %v703_v49 = vpop.f32.mrb[5].mxu0 }
 0x247   :  { %709 = vmatmul.mubr.msk.f32.vlgmr.msra.gmra.mrb[2].mxu1 %vm547_vm6, %v542_v48 }
 0x31a   :  { %v620_v56 = vpop.f32.mrb[2].mxu1 }
 0x31b   :  { %v625_v57 = vcombine.low %v620_v56, %v620_v56  ;;  %v710_v58 = vpop.f32.mrb[3].mxu1 }
 0x31d   :  { %v632_v60 = vrot.slane %v625_v57, %v631_v55 }
 0x31f   :  { %v633_v63 = vcombine.low %v632_v60, %v632_v60 }
 0x321   :  { %v635_v0 = vadd.f32 %v633_v63, %v455_v62  ;;  %v636_v1 = vadd.f32 %v633_v63, %v460_v61 }
 0x323   :  { %638 = vst.msk [vmem:[%s924_s17] sm:$0xff] %vm637_vm7, %v635_v0  ;;  %639 = vst.msk [vmem:[%s924_s17 + $0x8] sm:$0xff] %vm637_vm7, %v636_v1 }

// kernel: model_fwd.3
= control target key start
LH: loop header
LB: loop body
LE: loop exit
PB: predicated region body
PF: predicated region fallthrough
CT: control target
= control target key end

     0   :  { %s4778_s0 = inlined_call_operand.vmem [shape: f32[16,32], index: 0, kind: input, shape index: {}]   ;;  %s4779_s1 = inlined_call_operand.vmem [shape: f32[8,1,32], index: 1, kind: input, shape index: {}]   ;;  %s4780_s2 = inlined_call_operand.vmem [shape: bf16[8,32,256], index: 2, kind: input, shape index: {}]   ;;  %s4781_s3 = inlined_call_operand.vmem [shape: f32[8,4,128], index: 3, kind: input, shape index: {}]   ;;  %s4782_s4 = inlined_call_operand.vmem [shape: f32[8,1,128], index: 4, kind: input, shape index: {}]   ;;  %s4783_s5 = inlined_call_operand.vmem [shape: f32[8,128,2], index: 5, kind: input, shape index: {}]   ;;  %s4784_s6 = inlined_call_operand.vmem [shape: f32[8,128,16], index: 6, kind: input, shape index: {}]   ;;  %s4785_s7 = inlined_call_operand.vmem [shape: f32[8,128,16], index: 7, kind: input, shape index: {}]   ;;  %s4786_s8 = inlined_call_operand.vmem [shape: f32[8,2,128], index: 8, kind: input, shape index: {}]   ;;  %s4787_s9 = inlined_call_operand.vmem [shape: f32[8,1,128], index: 9, kind: input, shape index: {}]   ;;  %s4788_s10 = inlined_call_operand.vmem [shape: f32[8,16,128], index: 10, kind: input, shape index: {}]   ;;  %s4789_s11 = inlined_call_operand.vmem [shape: f32[8,1,128], index: 11, kind: input, shape index: {}]   ;;  %s4790_s12 = inlined_call_operand.vmem [shape: bf16[8,128,32], index: 12, kind: input, shape index: {}]   ;;  %s4791_s13 = inlined_call_operand.vmem [shape: f32[1,32], index: 13, kind: input, shape index: {}]   ;;  %s4792_s14 = inlined_call_operand.vmem [shape: f32[32,2], index: 14, kind: input, shape index: {}]   ;;  %s4793_s15 = inlined_call_operand.vmem [shape: f32[1,2], index: 15, kind: input, shape index: {}]   ;;  %s4794_s16 = inlined_call_operand.hbm [shape: f32[2,2], index: 16, kind: output, shape index: {}]  }
   0x1   :  { %4811 = sst [smem:[#allocation49_spill]] %s4778_s0 }
   0x2   :  { %4812 = sst [smem:[#allocation50_spill]] %s4780_s2 }
   0x3   :  { %4813 = sst [smem:[#allocation51_spill]] %s4781_s3 }
   0x4   :  { %4814 = sst [smem:[#allocation52_spill]] %s4783_s5 }
   0x5   :  { %4815 = sst [smem:[#allocation53_spill]] %s4784_s6 }
   0x6   :  { %4816 = sst [smem:[#allocation54_spill]] %s4785_s7 }
   0x7   :  { %4817 = sst [smem:[#allocation55_spill]] %s4791_s13 }
   0x8   :  { %4818 = sst [smem:[#allocation56_spill]] %s4792_s14 }
   0x9   :  { %4819 = sst [smem:[#allocation57_spill]] %s4793_s15 }
   0xa   :  { %4820 = sst [smem:[#allocation58_spill]] %s4794_s16 }
   0xb   :  { %21 = vsyncpa [#allocation8], 0  ;;  %s3897_s21 = smov 0  }
   0xc LB: > { %4821 = sst [smem:[#allocation10_spill]] %s3801_s21  ;;  %s3903_s22 = sadd.s32 4294967295, %s3801_s21   ;;  %s3801_s21 = sphi %s3897_s21, %s27_s21  }
   0xd   : > { %p3266_p0 = scmp.ge.s32.totalorder %s3801_s21, 1  ;;  %p558_p1 = scmp.lt.s32.totalorder %s3801_s21, 9 }
   0xf   : > { %p559_p2 = pnand %p3266_p0, %p558_p1 }
  0x11   : > { %562 = sbr.rel (%p559_p2) target bundleno = 1739 (0x6cb), region = 84 }
  0x18   : > { %p648_p3 = scmp.lt.s32.totalorder %s3903_s22, 7  ;;  %s4822_s2 = sld [smem:[#allocation50_spill]] }
  0x19   : > { %s4823_s3 = sld [smem:[#allocation51_spill]]  ;;  %s4824_s5 = sld [smem:[#allocation52_spill]] }
  0x1a   : > { %s3909_s23 = scalar_select %p648_p3, %s3903_s22, 7 }
  0x1b   : > { %s4825_s6 = sld [smem:[#allocation53_spill]]  ;;  %s4826_s7 = sld [smem:[#allocation54_spill]] }
  0x1c   : > { %s3310_s27 = sshll.u32 %s3909_s23, 5  ;;  %s3269_s0 = sshll.u32 %s3909_s23, 2 }
  0x1d   : > { %s3311_s21 = sshll.u32 %s3909_s23, 7  ;;  %s3276_s16 = sshll.u32 %s3909_s23, 1 }
  0x1e   : > { %s3919_s30 = scalar_lea.vmem %s4822_s2, %s3310_s27  ;;  %s3951_s24 = scalar_lea.vmem %s4786_s8, %s3276_s16 }
  0x1f   : > { %s3925_s19 = scalar_lea.vmem %s4823_s3, %s3269_s0  ;;  %s3936_s13 = scalar_lea.vmem %s4824_s5, %s3311_s21 }
  0x20   : > { %s684_s15 = scalar_lea.vmem %s4787_s9, %s3909_s23  ;;  %s3314_s26 = sshll.u32 %s3909_s23, 4 }
  0x21   : > { %s3941_s29 = scalar_lea.vmem %s4825_s6, %s3311_s21  ;;  %s3946_s0 = scalar_lea.vmem %s4826_s7, %s3311_s21 }
  0x22   : > { %s3961_s28 = scalar_lea.vmem %s4788_s10, %s3314_s26  ;;  %s692_s2 = scalar_lea.vmem %s4789_s11, %s3909_s23 }
  0x23   : > { %s3315_s21 = sshll.u32 %s3909_s23, 6  ;;  %p3281_p4 = scmp.ne.s32.totalorder %s3903_s22, 0 }
  0x24   : > { %s3971_s16 = scalar_lea.vmem %s4790_s12, %s3315_s21  ;;  %s4827_s18 = sld [smem:[#allocation49_spill]] (!%p3281_p4)  ;;  %vm705_vm0 = vcmask (!%p3281_p4), 261120  }
  0x25   : > { %702 = sbr.rel (%p3281_p4) target bundleno = 44 (0x2c), region = 88 }
  0x2a   : > { %v703_v0 = vld [vmem:[%s4827_s18] sm:$0xff] (!%p3281_p4)  ;;  %v704_v1 = vld [vmem:[%s4827_s18 + $0x8] sm:$0xff] (!%p3281_p4) }
  0x2b   : > { %706 = vst.msk [vmem:[#allocation2] sm:$0xff] (!%p3281_p4), %vm705_vm0, %v703_v0  ;;  %707 = vst.msk [vmem:[#allocation2 + $0x8] sm:$0xff] (!%p3281_p4), %vm705_vm0, %v704_v1 }
  0x2c PF: > { %vm712_vm1 = vcmask 261120   ;;  %v3653_v8 = vld [vmem:[%s3919_s30 + $0x4] ss:$8 sps:$4 sm:$0xff]   ;;  %v3655_v9 = vld [vmem:[%s3919_s30] ss:$8 sps:$4 sm:$0xff]   ;;  %v3803_v11 = vmov 0  }
  0x2d   : > { %v3656_v10 = vld [vmem:[%s3919_s30 + $0x14] ss:$8 sps:$4 sm:$0xff]   ;;  %765 = vmatprep.subr.bf16.mxu1 %v3653_v8  ;;  %797 = vmatprep.mubr.bf16.mxu1 %v3803_v11  ;;  %v3658_v12 = vld [vmem:[%s3919_s30 + $0x10] ss:$8 sps:$4 sm:$0xff]   ;;  %s4828_s30 = scalar_lea.vmem %s4779_s1, %s3909_s23  ;;  %v902_v27 = vld [vmem:[%s3936_s13] sm:$0xff]  ;;  %vm1190_vm2 = vcmask 1041408  }
  0x2e   : > { %766 = vmatpush1.bf16.msra.mxu1 %v3655_v9  ;;  %v3282_v22 = vld [vmem:[%s4828_s30] ss:$0 sm:$0xff]  ;;  %v903_v28 = vld [vmem:[%s3936_s13 + $0x8] sm:$0xff]  ;;  %v904_v33 = vld [vmem:[%s3936_s13 + $0x10] sm:$0xff]  ;;  %vm1183_vm9 = vcmask 15360   ;;  %vm2075_vm10 = vcmask 123904  }
  0x2f   : > { %767 = vmatprep.subr.bf16.mxu1 %v3656_v10  ;;  %v3528_v29 = vpack.c.bf16 %v903_v28, %v902_v27  ;;  %v993_v30 = vld [vmem:[%s3941_s29] sm:$0xff]  ;;  %v994_v31 = vld [vmem:[%s3941_s29 + $0x8] sm:$0xff]  ;;  %v905_v34 = vld [vmem:[%s3936_s13 + $0x18] sm:$0xff]  ;;  %vm2146_vm13 = vcmask 1041409   ;;  %vm3807_vm14 = vmmov 0   ;;  %p3302_p5 = scmp.ne.s32.totalorder %s3903_s22, 7 }
  0x30   : > { %v3560_v32 = vpack.c.bf16 %v994_v31, %v993_v30  ;;  %v3532_v35 = vpack.c.bf16 %v905_v34, %v904_v33  ;;  %v995_v36 = vld [vmem:[%s3941_s29 + $0x10] sm:$0xff]  ;;  %v996_v37 = vld [vmem:[%s3941_s29 + $0x18] sm:$0xff]  ;;  %v906_v39 = vld [vmem:[%s3936_s13 + $0x20] sm:$0xff]  ;;  %vm3809_vm15 = vmmov (!%p3302_p5), 0   ;;  %s4911_s14 = sld [smem:[#allocation55_spill]] (!%p3302_p5)  ;;  %vm2979_vm0 = vcmask (!%p3302_p5), 254976  }
  0x31   : > { %v3564_v38 = vpack.c.bf16 %v996_v37, %v995_v36  ;;  %v907_v40 = vld [vmem:[%s3936_s13 + $0x28] sm:$0xff]  ;;  %v997_v42 = vld [vmem:[%s3941_s29 + $0x20] sm:$0xff]  ;;  %v908_v45 = vld [vmem:[%s3936_s13 + $0x30] sm:$0xff]  ;;  %s4913_s30 = sld [smem:[#allocation57_spill]] (!%p3302_p5) }
  0x32   : > { %v708_v2 = vld [vmem:[#allocation2] sm:$0xff]  ;;  %v709_v3 = vld [vmem:[#allocation2 + $0x8] sm:$0xff]  ;;  %768 = vmatpush1.bf16.msra.mxu1 %v3658_v12  ;;  %3561 = vmatprep.subr.bf16.mxu0 %v3560_v32  ;;  %v3536_v41 = vpack.c.bf16 %v907_v40, %v906_v39  ;;  %v909_v46 = vld [vmem:[%s3936_s13 + $0x38] sm:$0xff] }
  0x33   : > { %v710_v4 = vmul.f32 %v708_v2, %v708_v2  ;;  %v711_v5 = vmul.f32 %v709_v3, %v709_v3  ;;  %3529 = vmatprep.subr.bf16.mxu1 %v3528_v29  ;;  %3563 = vmatpush3.bf16.msra.mxu0 %v3560_v32  ;;  %v998_v43 = vld [vmem:[%s3941_s29 + $0x28] sm:$0xff]  ;;  %v3540_v47 = vpack.c.bf16 %v909_v46, %v908_v45  ;;  %v999_v48 = vld [vmem:[%s3941_s29 + $0x30] sm:$0xff]  ;;  %v1000_v49 = vld [vmem:[%s3941_s29 + $0x38] sm:$0xff] }
  0x34   : > { %3565 = vmatprep.subr.bf16.mxu0 %v3564_v38  ;;  %v3568_v44 = vpack.c.bf16 %v998_v43, %v997_v42  ;;  %v3572_v50 = vpack.c.bf16 %v1000_v49, %v999_v48  ;;  %v910_v51 = vld [vmem:[%s3936_s13 + $0x40] sm:$0xff]  ;;  %v911_v52 = vld [vmem:[%s3936_s13 + $0x48] sm:$0xff]  ;;  %v912_v57 = vld [vmem:[%s3936_s13 + $0x50] sm:$0xff] }
  0x35   : > { %v713_v6 = vsel %vm712_vm1, %v710_v4, 0.0  ;;  %v716_v7 = vsel %vm712_vm1, %v711_v5, 0.0  ;;  %v3544_v53 = vpack.c.bf16 %v911_v52, %v910_v51  ;;  %v1001_v54 = vld [vmem:[%s3941_s29 + $0x40] sm:$0xff]  ;;  %v1002_v55 = vld [vmem:[%s3941_s29 + $0x48] sm:$0xff]  ;;  %v913_v58 = vld [vmem:[%s3936_s13 + $0x58] sm:$0xff] }
  0x36   : > { %714 = vadd.xlane.f32.xlu0 %v713_v6  ;;  %v3576_v56 = vpack.c.bf16 %v1002_v55, %v1001_v54  ;;  %v3548_v59 = vpack.c.bf16 %v913_v58, %v912_v57  ;;  %v1003_v60 = vld [vmem:[%s3941_s29 + $0x50] sm:$0xff]  ;;  %v1004_v61 = vld [vmem:[%s3941_s29 + $0x58] sm:$0xff]  ;;  %v914_v63 = vld [vmem:[%s3936_s13 + $0x60] sm:$0xff] }
  0x37   : > { %3567 = vmatpush3.bf16.msra.mxu0 %v3564_v38  ;;  %v3580_v62 = vpack.c.bf16 %v1004_v61, %v1003_v60  ;;  %v915_v0 = vld [vmem:[%s3936_s13 + $0x68] sm:$0xff]  ;;  %v916_v4 = vld [vmem:[%s3936_s13 + $0x70] sm:$0xff]  ;;  %v917_v6 = vld [vmem:[%s3936_s13 + $0x78] sm:$0xff] }
  0x38   : > { %3569 = vmatprep.subr.bf16.mxu0 %v3568_v44  ;;  %v3552_v1 = vpack.c.bf16 %v915_v0, %v914_v63  ;;  %v1008_v8 = vld [vmem:[%s3941_s29 + $0x78] sm:$0xff]  ;;  %v3556_v9 = vpack.c.bf16 %v917_v6, %v916_v4  ;;  %v1084_v11 = vld [vmem:[%s3946_s0] sm:$0xff]  ;;  %v1085_v12 = vld [vmem:[%s3946_s0 + $0x8] sm:$0xff] }
  0x3a   : > { %717 = vadd.xlane.f32.xlu0 %v716_v7  ;;  %v1007_v7 = vld [vmem:[%s3941_s29 + $0x70] sm:$0xff] }
  0x3b   : > { %3571 = vmatpush3.bf16.msra.mxu0 %v3568_v44  ;;  %v3588_v10 = vpack.c.bf16 %v1008_v8, %v1007_v7  ;;  %v1086_v7 = vld [vmem:[%s3946_s0 + $0x10] sm:$0xff]  ;;  %v1087_v8 = vld [vmem:[%s3946_s0 + $0x18] sm:$0xff] }
  0x3c   : > { %3573 = vmatprep.subr.bf16.mxu0 %v3572_v50 }
  0x3f   : > { %3575 = vmatpush3.bf16.msra.mxu0 %v3572_v50 }
  0x40   : > { %3577 = vmatprep.subr.bf16.mxu0 %v3576_v56 }
  0x43   : > { %3579 = vmatpush3.bf16.msra.mxu0 %v3576_v56 }
  0x44   : > { %3581 = vmatprep.subr.bf16.mxu0 %v3580_v62 }
  0x47   : > { %3583 = vmatpush3.bf16.msra.mxu0 %v3580_v62 }
  0xc3   : > { %v715_v13 = vpop.xlane.xlu0 %714 }
  0xc4   : > { %v720_v14 = vmul.f32 0.03125, %v715_v13  ;;  %v4026_v13 = vpack.c.bf16 %v1085_v12, %v1084_v11  ;;  %v3596_v12 = vpack.c.bf16 %v1087_v8, %v1086_v7 }
  0xc6   : > { %v722_v15 = vadd.f32 1e-05, %v720_v14  ;;  %v4030_v14 = vld [vmem:[%s3951_s24] sm:$0x3] }
  0xc7   : > { %v718_v16 = vpop.xlane.xlu0 %717 }
  0xc8   : > { %3667 = vrsqrt.f32 %v722_v15  ;;  %v721_v17 = vmul.f32 0.03125, %v718_v16  ;;  %v809_v15 = vlaneseq }
  0xca   : > { %v723_v18 = vadd.f32 1e-05, %v721_v17  ;;  %v4034_v16 = vshrl.u32 %v809_v15, 7  ;;  %v1088_v15 = vld [vmem:[%s3946_s0 + $0x20] sm:$0xff] }
  0xcc   : > { %3669 = vrsqrt.f32 %v723_v18  ;;  %v4037_v17 = vsub.s32 3, %v4034_v16  ;;  %v4040_v18 = vsub.s32 0, %v4034_v16  ;;  %vm820_vm3 = vcmp.lt.s32.totalorder %v4034_v16, 6 }
  0xcd   : > { %vm841_vm4 = vcmp.lt.s32.totalorder %v4034_v16, 4  ;;  %vm823_vm5 = vcmp.ge.s32.totalorder %v4034_v16, 6  ;;  %vm844_vm6 = vcmp.ge.s32.totalorder %v4034_v16, 4  ;;  %vm862_vm7 = vcmp.lt.s32.totalorder %v4034_v16, 2 }
  0xce   : > { %vm865_vm8 = vcmp.ge.s32.totalorder %v4034_v16, 2 }
  0xd2   : > { %v3668_v19 = vpop.eup %3667 }
  0xd3   : > { %v726_v20 = vmul.f32 %v3668_v19, %v708_v2  ;;  %v1005_v2 = vld [vmem:[%s3941_s29 + $0x60] sm:$0xff] }
  0xd4   : > { %v808_v19 = vld [vmem:[%s3925_s19] sm:$0xf] }
  0xd5   : > { %v735_v24 = vmul.f32 %v3282_v22, %v726_v20  ;;  %v4044_v20 = vsub.s32 1, %v4034_v16 }
  0xd6   : > { %v3670_v21 = vpop.eup %3669 }
  0xd7   : > { %v727_v23 = vmul.f32 %v3670_v21, %v709_v3  ;;  %v1006_v3 = vld [vmem:[%s3941_s29 + $0x68] sm:$0xff]  ;;  %v855_v28 = vrot.slane %v808_v19, %v4044_v20  ;;  %s4831_s29 = scalar_lea.vmem %s4782_s4, %s3909_s23 }
  0xd8   : > { %v3584_v5 = vpack.c.bf16 %v1006_v3, %v1005_v2  ;;  %v3288_v57 = vld [vmem:[%s4831_s29] ss:$0 sm:$0xff] }
  0xd9   : > { %v736_v25 = vmul.f32 %v3282_v22, %v727_v23  ;;  %v4047_v22 = vsub.s32 2, %v4034_v16  ;;  %v815_v23 = vrot.slane %v808_v19, %v4037_v17 }
  0xda   : > { %3585 = vmatprep.subr.bf16.mxu0 %v3584_v5 }
  0xdb   : > { %v737_v26 = vpack.c.bf16 %v736_v25, %v735_v24  ;;  %3587 = vmatpush3.bf16.msra.mxu0 %v3584_v5  ;;  %v834_v25 = vrot.slane %v808_v19, %v4040_v18 }
  0xdc   : > { %3589 = vmatprep.subr.bf16.mxu0 %v3588_v10 }
  0xdd   : > { %3287 = vmatmul.mubr.msk.bf16.vlgmr.msra.gmra.mrb[0].mxu1 %vm712_vm1, %v737_v26 }
  0xde   : > { %3531 = vmatpush3.bf16.msra.mxu1 %v3528_v29 }
  0xdf   : > { %3533 = vmatprep.subr.bf16.mxu1 %v3532_v35  ;;  %3591 = vmatpush3.bf16.msra.mxu0 %v3588_v10 }
  0xe0   : > { %3492 = vmatprep.subr.msk.mxu0 %vm1190_vm2, %v4030_v14 }
  0xe2   : > { %3535 = vmatpush3.bf16.msra.mxu1 %v3532_v35  ;;  %v876_v35 = vrot.slane %v808_v19, %v4047_v22  ;;  %v1089_v19 = vld [vmem:[%s3946_s0 + $0x28] sm:$0xff] }
  0xe3   : > { %3537 = vmatprep.subr.bf16.mxu1 %v3536_v41 }
  0xe6   : > { %3539 = vmatpush3.bf16.msra.mxu1 %v3536_v41 }
  0xe7   : > { %3541 = vmatprep.subr.bf16.mxu1 %v3540_v47 }
  0xea   : > { %3543 = vmatpush3.bf16.msra.mxu1 %v3540_v47 }
  0xeb   : > { %3545 = vmatprep.subr.bf16.mxu1 %v3544_v53 }
  0xee   : > { %3547 = vmatpush3.bf16.msra.mxu1 %v3544_v53 }
  0xef   : > { %3549 = vmatprep.subr.bf16.mxu1 %v3548_v59 }
  0xf2   : > { %3551 = vmatpush3.bf16.msra.mxu1 %v3548_v59 }
  0xf3   : > { %3553 = vmatprep.subr.bf16.mxu1 %v3552_v1 }
  0xf6   : > { %3555 = vmatpush3.bf16.msra.mxu1 %v3552_v1 }
  0xf7   : > { %3557 = vmatprep.subr.bf16.mxu1 %v3556_v9 }
  0xfa   : > { %3559 = vmatpush3.bf16.msra.mxu1 %v3556_v9 }
  0xfb   : > { %3593 = vmatprep.subr.bf16.mxu1 %v4026_v13 }
 0x1b0   : > { %v799_v21 = vpop.f32.mrb[0].mxu1 }
 0x1b1   : > { %v4050_v24 = vpop.f32.mrb[1].mxu1  ;;  %v818_v26 = vrot.slane %v799_v21, 2  ;;  %v839_v29 = vrot.slane %v799_v21, 4  ;;  %v860_v34 = vrot.slane %v799_v21, 6  ;;  %v816_v44 = vmul.f32 %v815_v23, %v799_v21 }
 0x1b2   : > { %4829 = vst [vmem:[#allocation11_spill] sm:$0xff] %v4050_v24  ;;  %v803_v27 = vpop.f32.mrb[2].mxu1  ;;  %v3600_v21 = vpack.c.bf16 %v1089_v19, %v1088_v15 }
 0x1b3   : > { %v819_v30 = vrot.slane %v803_v27, 2  ;;  %v840_v31 = vrot.slane %v803_v27, 4  ;;  %v861_v32 = vrot.slane %v803_v27, 6  ;;  %v4058_v33 = vpop.f32.mrb[3].mxu1  ;;  %v817_v40 = vmul.f32 %v815_v23, %v803_v27  ;;  %v1090_v23 = vld [vmem:[%s3946_s0 + $0x30] sm:$0xff]  ;;  %v1092_v27 = vld [vmem:[%s3946_s0 + $0x40] sm:$0xff] }
 0x1b4   : > { %4830 = vst [vmem:[#allocation12_spill] sm:$0xff] %v4058_v33 }
 0x1b5   : > { %v821_v36 = vsel %vm820_vm3, %v818_v26, %v819_v30  ;;  %v822_v37 = vsel %vm820_vm3, %v819_v30, %v818_v26  ;;  %v842_v38 = vsel %vm841_vm4, %v839_v29, %v840_v31  ;;  %v843_v39 = vsel %vm841_vm4, %v840_v31, %v839_v29  ;;  %v1094_v29 = vld [vmem:[%s3946_s0 + $0x50] sm:$0xff]  ;;  %v1095_v30 = vld [vmem:[%s3946_s0 + $0x58] sm:$0xff] }
 0x1b6   : > { %v829_v41 = vsel %vm823_vm5, %v822_v37, 0.0  ;;  %v836_v42 = vmul.f32 %v834_v25, %v821_v36  ;;  %v850_v43 = vsel %vm844_vm6, %v843_v39, 0.0  ;;  %v863_v46 = vsel %vm862_vm7, %v860_v34, %v861_v32  ;;  %v1099_v36 = vld [vmem:[%s3946_s0 + $0x78] sm:$0xff] }
 0x1b7   : > { %v835_v45 = vmul.f32 %v834_v25, %v829_v41  ;;  %v857_v48 = vmul.f32 %v855_v28, %v842_v38  ;;  %v864_v49 = vsel %vm862_vm7, %v861_v32, %v860_v34  ;;  %v856_v51 = vmul.f32 %v855_v28, %v850_v43  ;;  %v1091_v25 = vld [vmem:[%s3946_s0 + $0x38] sm:$0xff]  ;;  %v1093_v28 = vld [vmem:[%s3946_s0 + $0x48] sm:$0xff] }
 0x1b8   : > { %v838_v47 = vadd.f32 %v836_v42, %v817_v40  ;;  %v871_v52 = vsel %vm865_vm8, %v864_v49, 0.0  ;;  %v878_v54 = vmul.f32 %v876_v35, %v863_v46  ;;  %v3604_v26 = vpack.c.bf16 %v1091_v25, %v1090_v23  ;;  %v1097_v32 = vld [vmem:[%s3946_s0 + $0x68] sm:$0xff] }
 0x1b9   : > { %v837_v50 = vadd.f32 %v835_v45, %v816_v44  ;;  %v877_v56 = vmul.f32 %v876_v35, %v871_v52  ;;  %v3612_v31 = vpack.c.bf16 %v1095_v30, %v1094_v29  ;;  %v1098_v35 = vld [vmem:[%s3946_s0 + $0x70] sm:$0xff]  ;;  %v1757_v46 = vsub.s32 4, %v4034_v16 }
 0x1ba   : > { %v859_v53 = vadd.f32 %v857_v48, %v838_v47  ;;  %v3620_v37 = vpack.c.bf16 %v1099_v36, %v1098_v35  ;;  %v1768_v48 = vsub.s32 5, %v4034_v16 }
 0x1bb   : > { %v858_v55 = vadd.f32 %v856_v51, %v837_v50  ;;  %v1779_v50 = vsub.s32 6, %v4034_v16  ;;  %v3804_v51 = vmov 1983009808  }
 0x1bc   : > { %v880_v58 = vadd.f32 %v878_v54, %v859_v53  ;;  %v2035_v52 = vunpack.c.l.s4 %v3804_v51  ;;  %v1790_v54 = vsub.s32 7, %v4034_v16 }
 0x1bd   : > { %v879_v59 = vadd.f32 %v877_v56, %v858_v55 }
 0x1be   : > { %v889_v60 = vadd.f32 %v3288_v57, %v880_v58  ;;  %v2036_v55 = vunpack.c.0.s8 %v2035_v52 }
 0x1bf   : > { %v888_v61 = vadd.f32 %v3288_v57, %v879_v59 }
 0x1c0   : > { %v891_v62 = vsub.f32 0.0, %v889_v60  ;;  %v4124_v57 = vsub.s32 %v2036_v55, %v4034_v16 }
 0x1c1   : > { %v890_v63 = vsub.f32 0.0, %v888_v61 }
 0x1c2   : > { %v894_v0 = vmul.f32 1.442695, %v891_v62  ;;  %4834 = vst [vmem:[#allocation15_spill] sm:$0xff] %v4124_v57 }
 0x1c3   : > { %v892_v1 = vmul.f32 1.442695, %v890_v63 }
 0x1c4   : > { %3671 = vpow2.f32 %v894_v0 }
 0x1c5   : > { %3673 = vpow2.f32 %v892_v1 }
 0x1ce   : > { %v3672_v2 = vpop.eup %3671 }
 0x1cf   : > { %v3674_v3 = vpop.eup %3673  ;;  %v897_v4 = vadd.f32 1.0, %v3672_v2 }
 0x1d0   : > { %v896_v5 = vadd.f32 1.0, %v3674_v3 }
 0x1d1   : > { %3675 = vrcp.f32 %v897_v4 }
 0x1d2   : > { %3677 = vrcp.f32 %v896_v5 }
 0x1db   : > { %v3676_v6 = vpop.eup %3675 }
 0x1dc   : > { %v3678_v9 = vpop.eup %3677  ;;  %v4090_v11 = vmul.f32 %v3676_v6, %v889_v60 }
 0x1dd   : > { %v4088_v10 = vmul.f32 %v3678_v9, %v888_v61 }
 0x1de   : > { %4833 = vst [vmem:[#allocation14_spill] sm:$0xff] %v4090_v11 }
 0x1df   : > { %4832 = vst [vmem:[#allocation13_spill] sm:$0xff] %v4088_v10  ;;  %3419 = vmatprep.mubr.f32.mxu1 %v4088_v10  ;;  %3454 = vmatprep.mubr.f32.mxu0 %v4088_v10 }
 0x1e0   : > { %3420 = vmatmul.mubr.f32.vlgmr.msra.gmra.mrb[4].mxu1 %v4090_v11  ;;  %3455 = vmatmul.mubr.f32.vlgmr.msra.gmra.mrb[0].mxu0 %v4090_v11 }
 0x1e1   : > { %3595 = vmatpush3.bf16.msra.mxu1 %v4026_v13  ;;  %3489 = vmatprep.mubr.f32.mxu1 %v4088_v10  ;;  %v3608_v13 = vpack.c.bf16 %v1093_v28, %v1092_v27 }
 0x1e2   : > { %3597 = vmatprep.subr.bf16.mxu1 %v3596_v12  ;;  %3493 = vmatpush3.msk.msra.mxu0 %vm1190_vm2, %v4030_v14  ;;  %v1096_v14 = vld [vmem:[%s3946_s0 + $0x60] sm:$0xff]  ;;  %vm3081_vm2 = vcmask (!%p3302_p5), 9216  }
 0x1e3   : > { %v3616_v34 = vpack.c.bf16 %v1097_v32, %v1096_v14 }
 0x1e5   : > { %3599 = vmatpush3.bf16.msra.mxu1 %v3596_v12 }
 0x1e6   : > { %3601 = vmatprep.subr.bf16.mxu1 %v3600_v21 }
 0x1e9   : > { %3603 = vmatpush3.bf16.msra.mxu1 %v3600_v21 }
 0x1ea   : > { %3605 = vmatprep.subr.bf16.mxu1 %v3604_v26 }
 0x1ed   : > { %3607 = vmatpush3.bf16.msra.mxu1 %v3604_v26 }
 0x1ee   : > { %3609 = vmatprep.subr.bf16.mxu1 %v3608_v13 }
 0x1f1   : > { %3611 = vmatpush3.bf16.msra.mxu1 %v3608_v13 }
 0x1f2   : > { %3613 = vmatprep.subr.bf16.mxu1 %v3612_v31 }
 0x1f5   : > { %3615 = vmatpush3.bf16.msra.mxu1 %v3612_v31 }
 0x1f6   : > { %3617 = vmatprep.subr.bf16.mxu1 %v3616_v34 }
 0x1f9   : > { %3619 = vmatpush3.bf16.msra.mxu1 %v3616_v34 }
 0x1fa   : > { %3621 = vmatprep.subr.bf16.mxu1 %v3620_v37 }
 0x1fd   : > { %3623 = vmatpush3.bf16.msra.mxu1 %v3620_v37 }
 0x200   : > { %3490 = vmatmul.mubr.f32.vlgmr.msra.gmra.mrb[6].mxu1 %v4090_v11 }
 0x2b3   : > { %v3421_v38 = vpop.f32.mrb[4].mxu1  ;;  %v3456_v39 = vpop.f32.mrb[0].mxu0 }
 0x2b4   : > { %v984_v40 = vpop.f32.mrb[5].mxu1  ;;  %v4113_v41 = vpop.f32.mrb[1].mxu0  ;;  %v1802_v42 = vrot.slane %v3456_v39, %v4040_v18  ;;  %v1813_v43 = vrot.slane %v3456_v39, %v4044_v20  ;;  %v1824_v44 = vrot.slane %v3456_v39, %v4047_v22  ;;  %v1835_v45 = vrot.slane %v3456_v39, %v4037_v17 }
 0x2b5   : > { %3494 = vmatprep.mubr.msk.f32.mxu0 %vm1183_vm9, %v984_v40  ;;  %v1846_v47 = vrot.slane %v3456_v39, %v1757_v46  ;;  %v1857_v49 = vrot.slane %v3456_v39, %v1768_v48  ;;  %v1868_v53 = vrot.slane %v3456_v39, %v1779_v50  ;;  %v1879_v56 = vrot.slane %v3456_v39, %v1790_v54 }
 0x2b6   : > { %1808 = vbcast.lane.b32.xlu0 %v1802_v42, 264  ;;  %1804 = vbcast.lane.b32.xlu1 %v1802_v42, 256  ;;  %v1725_v62 = vrot.slane %v4113_v41, %v4044_v20  ;;  %v1714_v63 = vrot.slane %v4113_v41, %v4040_v18  ;;  %v1758_v7 = vrot.slane %v4113_v41, %v1757_v46 }
 0x2b7   : > { %3495 = vmatmul.mubr.msk.f32.vlgmr.msra.gmra.mrb[2].mxu0 %vm1183_vm9, %v3421_v38  ;;  %v1769_v9 = vrot.slane %v4113_v41, %v1768_v48  ;;  %v1780_v12 = vrot.slane %v4113_v41, %v1779_v50  ;;  %v1736_v15 = vrot.slane %v4113_v41, %v4047_v22  ;;  %v1791_v19 = vrot.slane %v4113_v41, %v1790_v54 }
 0x2b8   : > { %v1747_v23 = vrot.slane %v4113_v41, %v4037_v17 }
 0x2ba   : > { %1819 = vbcast.lane.b32.xlu0 %v1813_v43, 264  ;;  %1815 = vbcast.lane.b32.xlu1 %v1813_v43, 256 }
 0x2be   : > { %1830 = vbcast.lane.b32.xlu0 %v1824_v44, 264  ;;  %1826 = vbcast.lane.b32.xlu1 %v1824_v44, 256 }
 0x2c2   : > { %1841 = vbcast.lane.b32.xlu0 %v1835_v45, 264  ;;  %1837 = vbcast.lane.b32.xlu1 %v1835_v45, 256 }
 0x2c6   : > { %1852 = vbcast.lane.b32.xlu0 %v1846_v47, 264  ;;  %1848 = vbcast.lane.b32.xlu1 %v1846_v47, 256 }
 0x2ca   : > { %1863 = vbcast.lane.b32.xlu0 %v1857_v49, 264  ;;  %1859 = vbcast.lane.b32.xlu1 %v1857_v49, 256 }
 0x2ce   : > { %1874 = vbcast.lane.b32.xlu0 %v1868_v53, 264  ;;  %1870 = vbcast.lane.b32.xlu1 %v1868_v53, 256 }
 0x2d2   : > { %1885 = vbcast.lane.b32.xlu0 %v1879_v56, 264  ;;  %1881 = vbcast.lane.b32.xlu1 %v1879_v56, 256 }
 0x2d3   : > { %v3491_v58 = vpop.f32.mrb[6].mxu1 }
 0x2d4   : > { %v2050_v59 = vcombine.high %v3491_v58, %v3491_v58  ;;  %v2057_v60 = vrot.slane %v3491_v58, %v4124_v57  ;;  %v1166_v61 = vpop.f32.mrb[7].mxu1 }
 0x2d5   : > { %v2033_v0 = vcombine.high %v1166_v61, %v1166_v61  ;;  %v2040_v1 = vrot.slane %v1166_v61, %v4124_v57 }
 0x2d6   : > { %v2064_v2 = vrot.slane %v2050_v59, %v4124_v57  ;;  %v2065_v3 = vcombine.high %v2057_v60, %v2057_v60  ;;  %2080 = vst.msk [vmem:[#allocation5 + $0x8] sm:$0x3] %vm2075_vm10, %v2057_v60  ;;  %1727 = vbcast.lane.b32.xlu0 %v1725_v62, 256  ;;  %1716 = vbcast.lane.b32.xlu1 %v1714_v63, 256 }
 0x2d7   : > { %v2047_v4 = vrot.slane %v2033_v0, %v4124_v57  ;;  %v2048_v5 = vcombine.high %v2040_v1, %v2040_v1  ;;  %2076 = vst.msk [vmem:[#allocation5] sm:$0x3] %vm2075_vm10, %v2040_v1  ;;  %v3289_v1 = vld [vmem:[%s684_s15] ss:$0 sm:$0xff] }
 0x2d8   : > { %v2066_v6 = vcombine.high %v2064_v2, %v2064_v2  ;;  %2081 = vst.msk [vmem:[#allocation5 + $0xa] sm:$0x3] %vm2075_vm10, %v2065_v3  ;;  %2082 = vst.msk [vmem:[#allocation5 + $0xc] sm:$0x3] %vm2075_vm10, %v2064_v2 }
 0x2d9   : > { %v2049_v8 = vcombine.high %v2047_v4, %v2047_v4  ;;  %2077 = vst.msk [vmem:[#allocation5 + $0x2] sm:$0x3] %vm2075_vm10, %v2048_v5  ;;  %2078 = vst.msk [vmem:[#allocation5 + $0x4] sm:$0x3] %vm2075_vm10, %v2047_v4 }
 0x2da   : > { %2083 = vst.msk [vmem:[#allocation5 + $0xe] sm:$0x3] %vm2075_vm10, %v2066_v6  ;;  %1764 = vbcast.lane.b32.xlu0 %v1758_v7, 264  ;;  %1720 = vbcast.lane.b32.xlu1 %v1714_v63, 264 }
 0x2db   : > { %2079 = vst.msk [vmem:[#allocation5 + $0x6] sm:$0x3] %vm2075_vm10, %v2049_v8 }
 0x2dd   : > { %v2371_v21 = vld [vmem:[#allocation5 + $0x8] sm:$0x3] }
 0x2de   : > { %1775 = vbcast.lane.b32.xlu0 %v1769_v9, 264  ;;  %1731 = vbcast.lane.b32.xlu1 %v1725_v62, 264  ;;  %v2375_v25 = vrot.slane %v2371_v21, %v4040_v18  ;;  %v2386_v26 = vrot.slane %v2371_v21, %v4044_v20  ;;  %v2103_v27 = vld [vmem:[#allocation5] sm:$0x3] }
 0x2df   : > { %v2107_v22 = vrot.slane %v2103_v27, %v4040_v18  ;;  %v2118_v28 = vrot.slane %v2103_v27, %v4044_v20  ;;  %v2438_v13 = vld [vmem:[#allocation5 + $0xa] sm:$0x3]  ;;  %v2505_v30 = vld [vmem:[#allocation5 + $0xc] sm:$0x3] }
 0x2e0   : > { %v2442_v17 = vrot.slane %v2438_v13, %v4040_v18  ;;  %v2453_v29 = vrot.slane %v2438_v13, %v4044_v20  ;;  %v2509_v31 = vrot.slane %v2505_v30, %v4040_v18  ;;  %v2520_v14 = vrot.slane %v2505_v30, %v4044_v20  ;;  %v2170_v32 = vld [vmem:[#allocation5 + $0x2] sm:$0x3]  ;;  %v2237_v36 = vld [vmem:[#allocation5 + $0x4] sm:$0x3] }
 0x2e1   : > { %v2174_v34 = vrot.slane %v2170_v32, %v4040_v18  ;;  %v2185_v35 = vrot.slane %v2170_v32, %v4044_v20  ;;  %v2241_v37 = vrot.slane %v2237_v36, %v4040_v18  ;;  %v2252_v38 = vrot.slane %v2237_v36, %v4044_v20  ;;  %v2572_v39 = vld [vmem:[#allocation5 + $0xe] sm:$0x3] }
 0x2e2   : > { %1786 = vbcast.lane.b32.xlu0 %v1780_v12, 264  ;;  %1738 = vbcast.lane.b32.xlu1 %v1736_v15, 256  ;;  %v2576_v40 = vrot.slane %v2572_v39, %v4040_v18  ;;  %v2304_v41 = vld [vmem:[#allocation5 + $0x6] sm:$0x3]  ;;  %v2587_v44 = vrot.slane %v2572_v39, %v4044_v20 }
 0x2e3   : > { %v2308_v42 = vrot.slane %v2304_v41, %v4040_v18  ;;  %v2319_v43 = vrot.slane %v2304_v41, %v4044_v20 }
 0x2e6   : > { %1797 = vbcast.lane.b32.xlu0 %v1791_v19, 264  ;;  %1742 = vbcast.lane.b32.xlu1 %v1736_v15, 264 }
 0x2ea   : > { %1749 = vbcast.lane.b32.xlu1 %v1747_v23, 256  ;;  %2381 = vbcast.lane.b32.xlu0 %v2375_v25, 264 }
 0x2ee   : > { %1753 = vbcast.lane.b32.xlu1 %v1747_v23, 264  ;;  %2392 = vbcast.lane.b32.xlu0 %v2386_v26, 264 }
 0x2f2   : > { %1760 = vbcast.lane.b32.xlu1 %v1758_v7, 256  ;;  %2113 = vbcast.lane.b32.xlu0 %v2107_v22, 264 }
 0x2f6   : > { %1771 = vbcast.lane.b32.xlu1 %v1769_v9, 256  ;;  %2124 = vbcast.lane.b32.xlu0 %v2118_v28, 264 }
 0x2fa   : > { %1782 = vbcast.lane.b32.xlu1 %v1780_v12, 256  ;;  %2448 = vbcast.lane.b32.xlu0 %v2442_v17, 264 }
 0x2fe   : > { %1793 = vbcast.lane.b32.xlu1 %v1791_v19, 256  ;;  %2459 = vbcast.lane.b32.xlu0 %v2453_v29, 264 }
 0x302   : > { %2377 = vbcast.lane.b32.xlu1 %v2375_v25, 256  ;;  %2515 = vbcast.lane.b32.xlu0 %v2509_v31, 264 }
 0x306   : > { %2388 = vbcast.lane.b32.xlu1 %v2386_v26, 256  ;;  %2526 = vbcast.lane.b32.xlu0 %v2520_v14, 264 }
 0x30a   : > { %2109 = vbcast.lane.b32.xlu1 %v2107_v22, 256  ;;  %2180 = vbcast.lane.b32.xlu0 %v2174_v34, 264 }
 0x30e   : > { %2120 = vbcast.lane.b32.xlu1 %v2118_v28, 256  ;;  %2191 = vbcast.lane.b32.xlu0 %v2185_v35, 264 }
 0x312   : > { %2444 = vbcast.lane.b32.xlu1 %v2442_v17, 256  ;;  %2247 = vbcast.lane.b32.xlu0 %v2241_v37, 264 }
 0x316   : > { %2455 = vbcast.lane.b32.xlu1 %v2453_v29, 256  ;;  %2258 = vbcast.lane.b32.xlu0 %v2252_v38, 264 }
 0x31a   : > { %2511 = vbcast.lane.b32.xlu1 %v2509_v31, 256  ;;  %2582 = vbcast.lane.b32.xlu0 %v2576_v40, 264 }
 0x31e   : > { %2522 = vbcast.lane.b32.xlu1 %v2520_v14, 256  ;;  %2314 = vbcast.lane.b32.xlu0 %v2308_v42, 264 }
 0x322   : > { %2176 = vbcast.lane.b32.xlu1 %v2174_v34, 256  ;;  %2325 = vbcast.lane.b32.xlu0 %v2319_v43, 264  ;;  %v3805_v34 = vmov 1966171168  }
 0x326   : > { %2187 = vbcast.lane.b32.xlu1 %v2185_v35, 256  ;;  %2593 = vbcast.lane.b32.xlu0 %v2587_v44, 264  ;;  %v1305_v35 = vunpack.c.l.s4 %v3805_v34 }
 0x328   : > { %v4166_v45 = vpop.permute.xlu1 %1804  ;;  %v4174_v49 = vpop.permute.xlu0 %1808 }
 0x32a   : > { %2243 = vbcast.lane.b32.xlu1 %v2241_v37, 256 }
 0x32c   : > { %v4168_v46 = vpop.permute.xlu1 %1815  ;;  %v4178_v50 = vpop.permute.xlu0 %1819 }
 0x32d   : > { %4835 = vst [vmem:[#allocation16_spill] sm:$0xff] %v4168_v46  ;;  %4837 = vst [vmem:[#allocation18_spill] sm:$0xff] %v4178_v50 }
 0x32e   : > { %2254 = vbcast.lane.b32.xlu1 %v2252_v38, 256  ;;  %v1306_v38 = vunpack.c.0.s8 %v1305_v35 }
 0x330   : > { %v4170_v47 = vpop.permute.xlu1 %1826  ;;  %v4182_v52 = vpop.permute.xlu0 %1830 }
 0x332   : > { %2578 = vbcast.lane.b32.xlu1 %v2576_v40, 256 }
 0x334   : > { %v4172_v48 = vpop.permute.xlu1 %1837  ;;  %v4186_v54 = vpop.permute.xlu0 %1841 }
 0x335   : > { %4836 = vst [vmem:[#allocation17_spill] sm:$0xff] %v4172_v48  ;;  %4840 = vst [vmem:[#allocation21_spill] sm:$0xff] %v4186_v54 }
 0x336   : > { %2310 = vbcast.lane.b32.xlu1 %v2308_v42, 256 }
 0x338   : > { %v4176_v20 = vpop.permute.xlu1 %1848  ;;  %v4190_v56 = vpop.permute.xlu0 %1852 }
 0x33a   : > { %2321 = vbcast.lane.b32.xlu1 %v2319_v43, 256 }
 0x33c   : > { %v4180_v51 = vpop.permute.xlu1 %1859  ;;  %v4194_v59 = vpop.permute.xlu0 %1863 }
 0x33d   : > { %4838 = vst [vmem:[#allocation19_spill] sm:$0xff] %v4180_v51  ;;  %4842 = vst [vmem:[#allocation23_spill] sm:$0xff] %v4194_v59 }
 0x33e   : > { %2589 = vbcast.lane.b32.xlu1 %v2587_v44, 256 }
 0x340   : > { %v4184_v53 = vpop.permute.xlu1 %1870  ;;  %v4198_v61 = vpop.permute.xlu0 %1874 }
 0x341   : > { %4839 = vst [vmem:[#allocation20_spill] sm:$0xff] %v4184_v53  ;;  %4843 = vst [vmem:[#allocation24_spill] sm:$0xff] %v4198_v61 }
 0x344   : > { %v4188_v55 = vpop.permute.xlu1 %1881  ;;  %v4202_v63 = vpop.permute.xlu0 %1885 }
 0x345   : > { %4841 = vst [vmem:[#allocation22_spill] sm:$0xff] %v4188_v55  ;;  %4844 = vst [vmem:[#allocation25_spill] sm:$0xff] %v4202_v63 }
 0x348   : > { %v4192_v58 = vpop.permute.xlu1 %1716  ;;  %v4211_v2 = vpop.permute.xlu0 %1727 }
 0x34c   : > { %v4196_v60 = vpop.permute.xlu1 %1720  ;;  %v4215_v19 = vpop.permute.xlu0 %1764 }
 0x350   : > { %v4200_v62 = vpop.permute.xlu1 %1731  ;;  %v4219_v26 = vpop.permute.xlu0 %1775 }
 0x354   : > { %v4204_v0 = vpop.permute.xlu1 %1738  ;;  %v4223_v28 = vpop.permute.xlu0 %1786 }
 0x358   : > { %v4213_v4 = vpop.permute.xlu1 %1742  ;;  %v4227_v31 = vpop.permute.xlu0 %1797 }
 0x359   : > { %4845 = vst [vmem:[#allocation26_spill] sm:$0xff] %v4227_v31 }
 0x35c   : > { %v4217_v21 = vpop.permute.xlu1 %1749  ;;  %v4231_v41 = vpop.permute.xlu0 %2381 }
 0x35d   : > { %4847 = vst [vmem:[#allocation28_spill] sm:$0xff] %v4231_v41 }
 0x360   : > { %v4221_v27 = vpop.permute.xlu1 %1753  ;;  %v4240_v57 = vpop.permute.xlu0 %2392 }
 0x361   : > { %4848 = vst [vmem:[#allocation29_spill] sm:$0xff] %v4240_v57 }
 0x364   : > { %v4225_v13 = vpop.permute.xlu1 %1760 }
 0x368   : > { %v4229_v14 = vpop.permute.xlu1 %1771 }
 0x369   : > { %4846 = vst [vmem:[#allocation27_spill] sm:$0xff] %v4229_v14 }
 0x36c   : > { %v4233_v42 = vpop.permute.xlu1 %1782 }
 0x38a   : > { %v3496_v3 = vpop.f32.mrb[2].mxu0 }
 0x38b   : > { %v1266_v5 = vadd.f32 %v3496_v3, %v3289_v1  ;;  %v1260_v6 = vpop.f32.mrb[3].mxu0 }
 0x38c   : > { %v1261_v7 = vadd.f32 %v3289_v1, %v1260_v6  ;;  %v2688_v1 = vsub.f32 0.0, %v4050_v24  ;;  %v2689_v6 = vsub.f32 0.0, %v4058_v33  ;;  %v4242_v33 = vpop.permute.xlu1 %1793 }
 0x38d   : > { %v1272_v8 = vand.u32 2147483647, %v1266_v5  ;;  %4849 = vst [vmem:[#allocation30_spill] sm:$0xff] %v4242_v33 }
 0x38e   : > { %v1271_v9 = vand.u32 2147483647, %v1261_v7 }
 0x38f   : > { %v1274_v12 = vsub.f32 0.0, %v1272_v8 }
 0x390   : > { %v1273_v15 = vsub.f32 0.0, %v1271_v9 }
 0x391   : > { %v1277_v23 = vmul.f32 1.442695, %v1274_v12  ;;  %v4238_v12 = vsub.s32 %v1306_v38, %v4034_v16 }
 0x392   : > { %v1275_v25 = vmul.f32 1.442695, %v1273_v15  ;;  %v1270_v15 = vmax.f32 %v1266_v5, 0.0 }
 0x393   : > { %3679 = vpow2.f32 %v1277_v23 }
 0x394   : > { %3681 = vpow2.f32 %v1275_v25 }
 0x39d   : > { %v3680_v22 = vpop.eup %3679 }
 0x39e   : > { %v3682_v17 = vpop.eup %3681  ;;  %v1288_v29 = vadd.f32 1.0, %v3680_v22  ;;  %v1291_v32 = vmul.f32 -0.5, %v3680_v22  ;;  %v1294_v39 = vand.u32 2147483647, %v3680_v22 }
 0x39f   : > { %v1279_v30 = vadd.f32 1.0, %v3682_v17  ;;  %v1282_v36 = vmul.f32 -0.5, %v3682_v17  ;;  %v1285_v43 = vand.u32 2147483647, %v3682_v17 }
 0x3a0   : > { %3683 = vlog2.f32 %v1288_v29  ;;  %v1292_v37 = vadd.f32 1.0, %v1291_v32  ;;  %vm1295_vm11 = vcmp.lt.f32.partialorder %v1294_v39, 0.0004427343  ;;  %v2690_v32 = vmul.f32 1.442695, %v2688_v1 }
 0x3a1   : > { %3685 = vlog2.f32 %v1279_v30  ;;  %v1283_v40 = vadd.f32 1.0, %v1282_v36  ;;  %v1269_v30 = vmax.f32 %v1261_v7, 0.0  ;;  %vm1286_vm12 = vcmp.lt.f32.partialorder %v1285_v43, 0.0004427343 }
 0x3a2   : > { %v1293_v9 = vmul.f32 %v3680_v22, %v1292_v37  ;;  %v2692_v36 = vmul.f32 1.442695, %v2689_v6  ;;  %3687 = vpow2.f32 %v2690_v32  ;;  %v4264_v6 = vld [vmem:[%s3961_s28 + $0x8] sm:$0xff] }
 0x3a3   : > { %v1284_v25 = vmul.f32 %v3682_v17, %v1283_v40 }
 0x3a4   : > { %3689 = vpow2.f32 %v2692_v36 }
 0x3aa   : > { %v3684_v44 = vpop.eup %3683 }
 0x3ab   : > { %v3686_v3 = vpop.eup %3685  ;;  %v1290_v8 = vmul.f32 0.6931472, %v3684_v44 }
 0x3ac   : > { %v1281_v23 = vmul.f32 0.6931472, %v3686_v3  ;;  %v4261_v3 = vld [vmem:[%s3961_s28] sm:$0xff]  ;;  %v4311_v51 = vpop.eup %3687  ;;  %s4910_s28 = sld [smem:[#allocation56_spill]] (!%p3302_p5) }
 0x3ad   : > { %v1296_v29 = vsel %vm1295_vm11, %v1293_v9, %v1290_v8  ;;  %4854 = vst [vmem:[#allocation35_spill] sm:$0xff] %v4311_v51 }
 0x3ae   : > { %v1298_v34 = vadd.f32 %v1296_v29, %v1270_v15  ;;  %v1287_v35 = vsel %vm1286_vm12, %v1284_v25, %v1281_v23  ;;  %v4268_v25 = vpop.permute.xlu0 %2113  ;;  %v4270_v29 = vpop.permute.xlu1 %2377 }
 0x3af   : > { %v1297_v22 = vadd.f32 %v1287_v35, %v1269_v30  ;;  %4851 = vst [vmem:[#allocation32_spill] sm:$0xff] %v4270_v29  ;;  %v4317_v54 = vpop.eup %3689 }
 0x3b0   : > { %v1352_v16 = vcombine.high %v1298_v34, %v1298_v34  ;;  %v1359_v5 = vrot.slane %v1298_v34, %v4238_v12  ;;  %v4246_v37 = vmul.f32 %v1298_v34, %v4090_v11  ;;  %4855 = vst [vmem:[#allocation36_spill] sm:$0xff] %v4317_v54 }
 0x3b1   : > { %v1303_v17 = vcombine.high %v1297_v22, %v1297_v22  ;;  %v1310_v7 = vrot.slane %v1297_v22, %v4238_v12  ;;  %v4258_v1 = vmul.f32 %v1297_v22, %v4088_v10 }
 0x3b2   : > { %v1366_v38 = vrot.slane %v1352_v16, %v4238_v12  ;;  %v1367_v39 = vcombine.high %v1359_v5, %v1359_v5  ;;  %v1375_v40 = vrot.slane %v1359_v5, %v4238_v12  ;;  %v4255_v44 = vrot.slane %v4246_v37, %v4238_v12  ;;  %v4306_v55 = vpop.permute.xlu0 %2124  ;;  %v4308_v53 = vpop.permute.xlu1 %2388 }
 0x3b3   : > { %v1317_v32 = vrot.slane %v1303_v17, %v4238_v12  ;;  %v1318_v34 = vcombine.high %v1310_v7, %v1310_v7  ;;  %v1326_v35 = vrot.slane %v1310_v7, %v4238_v12  ;;  %4853 = vst [vmem:[#allocation34_spill] sm:$0xff] %v4308_v53 }
 0x3b4   : > { %4850 = vst [vmem:[#allocation31_spill] sm:$0xff] %v4255_v44  ;;  %v1368_v8 = vcombine.high %v1366_v38, %v1366_v38  ;;  %v1382_v9 = vrot.slane %v1366_v38, %v4238_v12  ;;  %v1389_v15 = vrot.slane %v1367_v39, %v4238_v12  ;;  %v1397_v23 = vcombine.high %v1375_v40, %v1375_v40 }
 0x3b5   : > { %v1436_v30 = vrot.slane %v1375_v40, %v4040_v18  ;;  %v1319_v10 = vcombine.high %v1317_v32, %v1317_v32  ;;  %v1333_v59 = vrot.slane %v1317_v32, %v4238_v12  ;;  %v1348_v51 = vcombine.high %v1326_v35, %v1326_v35 }
 0x3b6   : > { %v4276_v36 = vrot.slane %v1368_v8, %v4238_v12  ;;  %v1398_v22 = vcombine.high %v1382_v9, %v1382_v9  ;;  %v1399_v16 = vcombine.high %v1389_v15, %v1389_v15  ;;  %v1440_v5 = vrot.slane %v1389_v15, %v4040_v18  ;;  %v4324_v46 = vpop.permute.xlu0 %2448 }
 0x3b7   : > { %v1444_v38 = vrot.slane %v1397_v23, %v4040_v18  ;;  %v1497_v39 = vmul.f32 %v1436_v30, %v4261_v3  ;;  %v1498_v43 = vmul.f32 %v1436_v30, %v4264_v6  ;;  %v4286_v7 = vrot.slane %v1382_v9, %v4040_v18  ;;  %4856 = vst [vmem:[#allocation37_spill] sm:$0xff] %v4324_v46 }
 0x3b8   : > { %4852 = vst [vmem:[#allocation33_spill] sm:$0xff] %v4276_v36  ;;  %v1448_v17 = vrot.slane %v1399_v16, %v4040_v18  ;;  %v4290_v8 = vrot.slane %v4276_v36, %v4040_v18  ;;  %v4294_v15 = vrot.slane %v4255_v44, %v4238_v12  ;;  %v1499_v23 = vmul.f32 %v1440_v5, %v4261_v3 }
 0x3b9   : > { %v1500_v30 = vmul.f32 %v1440_v5, %v4264_v6  ;;  %v1501_v11 = vmul.f32 %v1444_v38, %v4261_v3  ;;  %v1502_v40 = vmul.f32 %v1444_v38, %v4264_v6  ;;  %v4303_v16 = vrot.slane %v1398_v22, %v4040_v18 }
 0x3ba   : > { %v1504_v24 = vmul.f32 %v1448_v17, %v4264_v6  ;;  %v1545_v63 = vmul.f32 1.442695, %v1497_v39  ;;  %v1547_v57 = vmul.f32 1.442695, %v1498_v43  ;;  %v1549_v5 = vmul.f32 1.442695, %v1499_v23 }
 0x3bb   : > { %v1503_v38 = vmul.f32 %v1448_v17, %v4261_v3  ;;  %v1506_v22 = vmul.f32 %v4286_v7, %v4264_v6  ;;  %v1551_v9 = vmul.f32 1.442695, %v1500_v30  ;;  %v1340_v36 = vrot.slane %v1318_v34, %v4238_v12 }
 0x3bc   : > { %v1508_v53 = vmul.f32 %v4290_v8, %v4264_v6  ;;  %3691 = vpow2.f32 %v1545_v63  ;;  %v1553_v43 = vmul.f32 1.442695, %v1501_v11  ;;  %v1555_v39 = vmul.f32 1.442695, %v1502_v40  ;;  %v4326_v63 = vpop.permute.xlu1 %2109 }
 0x3bd   : > { %3693 = vpow2.f32 %v1547_v57  ;;  %v1559_v32 = vmul.f32 1.442695, %v1504_v24  ;;  %v1347_v23 = vrot.slane %v1319_v10, %v4238_v12  ;;  %v1349_v17 = vcombine.high %v1333_v59, %v1333_v59 }
 0x3be   : > { %3695 = vpow2.f32 %v1549_v5  ;;  %v1350_v48 = vcombine.high %v1340_v36, %v1340_v36  ;;  %v1404_v30 = vrot.slane %v1326_v35, %v4040_v18  ;;  %v1563_v34 = vmul.f32 1.442695, %v1506_v22 }
 0x3bf   : > { %3697 = vpow2.f32 %v1551_v9  ;;  %v1351_v50 = vcombine.high %v1347_v23, %v1347_v23  ;;  %v1408_v54 = vrot.slane %v1340_v36, %v4040_v18  ;;  %v4328_v11 = vmul.f32 1.442695, %v1503_v38 }
 0x3c0   : > { %3699 = vpow2.f32 %v1553_v43  ;;  %v1412_v24 = vrot.slane %v1348_v51, %v4040_v18  ;;  %v1416_v10 = vrot.slane %v1350_v48, %v4040_v18  ;;  %v1420_v57 = vrot.slane %v1333_v59, %v4040_v18 }
 0x3c1   : > { %3701 = vpow2.f32 %v1555_v39  ;;  %v1424_v35 = vrot.slane %v1347_v23, %v4040_v18  ;;  %v1428_v40 = vrot.slane %v1349_v17, %v4040_v18  ;;  %v1481_v36 = vmul.f32 %v1404_v30, %v4261_v3 }
 0x3c2   : > { %3703 = vpow2.f32 %v1559_v32  ;;  %v1482_v9 = vmul.f32 %v1404_v30, %v4264_v6  ;;  %v1483_v5 = vmul.f32 %v1408_v54, %v4261_v3  ;;  %v4338_v38 = vmul.f32 1.442695, %v1508_v53 }
 0x3c3   : > { %3705 = vpow2.f32 %v1563_v34  ;;  %v1432_v51 = vrot.slane %v1351_v50, %v4040_v18  ;;  %v1484_v48 = vmul.f32 %v1408_v54, %v4264_v6  ;;  %v1485_v59 = vmul.f32 %v1412_v24, %v4261_v3  ;;  %v4352_v50 = vpop.permute.xlu0 %2459  ;;  %v4354_v54 = vpop.permute.xlu1 %2120 }
 0x3c4   : > { %4857 = vst [vmem:[#allocation38_spill] sm:$0xff] %v4338_v38  ;;  %v1486_v22 = vmul.f32 %v1412_v24, %v4264_v6  ;;  %v1487_v43 = vmul.f32 %v1416_v10, %v4261_v3  ;;  %v1488_v39 = vmul.f32 %v1416_v10, %v4264_v6  ;;  %v1489_v32 = vmul.f32 %v1420_v57, %v4261_v3 }
 0x3c5   : > { %v1490_v23 = vmul.f32 %v1420_v57, %v4264_v6  ;;  %v1491_v17 = vmul.f32 %v1424_v35, %v4261_v3  ;;  %v1492_v53 = vmul.f32 %v1424_v35, %v4264_v6  ;;  %4859 = vst [vmem:[#allocation40_spill] sm:$0xff] %v4352_v50  ;;  %v1493_v34 = vmul.f32 %v1428_v40, %v4261_v3 }
 0x3c6   : > { %v4350_v30 = vpop.eup %3691  ;;  %v1513_v24 = vmul.f32 1.442695, %v1481_v36  ;;  %v1515_v46 = vmul.f32 1.442695, %v1482_v9  ;;  %v1517_v31 = vmul.f32 1.442695, %v1483_v5  ;;  %v1494_v29 = vmul.f32 %v1428_v40, %v4264_v6 }
 0x3c7   : > { %4858 = vst [vmem:[#allocation39_spill] sm:$0xff] %v4350_v30  ;;  %v4357_v10 = vpop.eup %3693  ;;  %v1495_v57 = vmul.f32 %v1432_v51, %v4261_v3  ;;  %v1519_v33 = vmul.f32 1.442695, %v1484_v48  ;;  %v1613_v35 = vcombine.high %v4258_v1, %v4258_v1  ;;  %v1496_v50 = vmul.f32 %v1432_v51, %v4264_v6 }
 0x3c8   : > { %4860 = vst [vmem:[#allocation41_spill] sm:$0xff] %v4357_v10  ;;  %v4363_v14 = vpop.eup %3695  ;;  %3707 = vpow2.f32 %v1513_v24  ;;  %v1521_v41 = vmul.f32 1.442695, %v1485_v59  ;;  %v1523_v38 = vmul.f32 1.442695, %v1486_v22  ;;  %v1620_v51 = vrot.slane %v4258_v1, %v4238_v12 }
 0x3c9   : > { %4861 = vst [vmem:[#allocation42_spill] sm:$0xff] %v4363_v14  ;;  %v4366_v36 = vpop.eup %3697  ;;  %3709 = vpow2.f32 %v1515_v46  ;;  %v1525_v9 = vmul.f32 1.442695, %v1487_v43  ;;  %v1527_v5 = vmul.f32 1.442695, %v1488_v39  ;;  %v1627_v59 = vrot.slane %v1613_v35, %v4238_v12  ;;  %v4377_v46 = vpop.permute.xlu0 %2515 }
 0x3ca   : > { %4862 = vst [vmem:[#allocation43_spill] sm:$0xff] %v4366_v36  ;;  %v1529_v61 = vmul.f32 1.442695, %v1489_v32  ;;  %v4368_v40 = vpop.eup %3699  ;;  %3711 = vpow2.f32 %v1517_v31  ;;  %v1531_v48 = vmul.f32 1.442695, %v1490_v23  ;;  %4864 = vst [vmem:[#allocation45_spill] sm:$0xff] %v4377_v46  ;;  %v4379_v43 = vpop.permute.xlu1 %2444  ;;  %v1505_v39 = vmul.f32 %v4286_v7, %v4261_v3 }
 0x3cb   : > { %v1533_v30 = vmul.f32 1.442695, %v1491_v17  ;;  %v1535_v10 = vmul.f32 1.442695, %v1492_v53  ;;  %v4370_v44 = vpop.eup %3701  ;;  %3713 = vpow2.f32 %v1519_v33  ;;  %v1537_v14 = vmul.f32 1.442695, %v1493_v34 }
 0x3cc   : > { %v4375_v22 = vpop.eup %3703  ;;  %3715 = vpow2.f32 %v1521_v41  ;;  %v1539_v31 = vmul.f32 1.442695, %v1494_v29  ;;  %v4865_v33 = vcombine.high %v4246_v37, %v4246_v37  ;;  %v1628_v23 = vcombine.high %v1620_v51, %v1620_v51 }
 0x3cd   : > { %4863 = vst [vmem:[#allocation44_spill] sm:$0xff] %v4375_v22  ;;  %v4389_v1 = vpop.eup %3705  ;;  %3717 = vpow2.f32 %v1523_v38  ;;  %v1629_v17 = vcombine.high %v1627_v59, %v1627_v59  ;;  %v1636_v53 = vrot.slane %v1620_v51, %v4238_v12  ;;  %v1541_v34 = vmul.f32 1.442695, %v1495_v57  ;;  %v4405_v51 = vpop.permute.xlu0 %2526 }
 0x3ce   : > { %v4387_v32 = vrot.slane %v4865_v33, %v4238_v12  ;;  %3719 = vpow2.f32 %v1525_v9  ;;  %v1543_v41 = vmul.f32 1.442695, %v1496_v50  ;;  %v1643_v29 = vrot.slane %v1627_v59, %v4238_v12  ;;  %4866 = vst [vmem:[#allocation46_spill] sm:$0xff] %v4405_v51  ;;  %v4407_v59 = vpop.permute.xlu1 %2455 }
 0x3cf   : > { %3721 = vpow2.f32 %v1527_v5  ;;  %v1650_v7 = vrot.slane %v1628_v23, %v4238_v12  ;;  %v4395_v24 = vrot.slane %v1629_v17, %v4238_v12  ;;  %v1658_v37 = vcombine.high %v1636_v53, %v1636_v53  ;;  %4867 = vst [vmem:[#allocation47_spill] sm:$0xff] %v4407_v59 }
 0x3d0   : > { %3723 = vpow2.f32 %v1529_v61  ;;  %v1890_v35 = vrot.slane %v1636_v53, %v4040_v18  ;;  %v1561_v38 = vmul.f32 1.442695, %v1505_v39  ;;  %v1707_v33 = vcombine.high %v4294_v15, %v4294_v15 }
 0x3d1   : > { %3725 = vpow2.f32 %v1531_v48  ;;  %v1660_v9 = vcombine.high %v1650_v7, %v1650_v7  ;;  %v1894_v50 = vrot.slane %v1650_v7, %v4040_v18  ;;  %v4403_v57 = vrot.slane %v4387_v32, %v4238_v12 }
 0x3d2   : > { %v3708_v5 = vpop.eup %3707  ;;  %3727 = vpow2.f32 %v1533_v30  ;;  %v1659_v61 = vcombine.high %v1643_v29, %v1643_v29  ;;  %v1898_v39 = vrot.slane %v1658_v37, %v4040_v18  ;;  %v1906_v23 = vrot.slane %v1643_v29, %v4040_v18 }
 0x3d3   : > { %v3710_v17 = vpop.eup %3709  ;;  %3729 = vpow2.f32 %v1535_v10  ;;  %v1902_v53 = vrot.slane %v1660_v9, %v4040_v18  ;;  %v4416_v7 = vrot.slane %v4395_v24, %v4040_v18  ;;  %v1967_v30 = vmul.f32 %v1890_v35, %v4192_v58 }
 0x3d4   : > { %v3712_v51 = vpop.eup %3711  ;;  %3731 = vpow2.f32 %v1537_v14  ;;  %v1968_v59 = vmul.f32 %v1890_v35, %v4196_v60  ;;  %v1969_v37 = vmul.f32 %v1894_v50, %v4211_v2  ;;  %v1970_v10 = vmul.f32 %v1894_v50, %v4200_v62  ;;  %v4431_v50 = vpop.permute.xlu0 %2180 }
 0x3d5   : > { %v3714_v29 = vpop.eup %3713  ;;  %3733 = vpow2.f32 %v1539_v31  ;;  %v1971_v48 = vmul.f32 %v1898_v39, %v4204_v0  ;;  %v1972_v9 = vmul.f32 %v1898_v39, %v4213_v4  ;;  %v4425_v36 = vmul.f32 %v1902_v53, %v4217_v21 }
 0x3d6   : > { %v3716_v22 = vpop.eup %3715  ;;  %v1974_v14 = vmul.f32 %v1902_v53, %v4221_v27  ;;  %v4429_v58 = vmul.f32 %v1906_v23, %v4225_v13  ;;  %v2090_v60 = vmul.f32 0.0, %v3708_v5  ;;  %3735 = vpow2.f32 %v1541_v34  ;;  %v4438_v27 = vpop.permute.xlu1 %2511 }
 0x3d7   : > { %v3718_v35 = vpop.eup %3717  ;;  %v2091_v2 = vmul.f32 0.0, %v3710_v17  ;;  %v2092_v31 = vmul.f32 0.0, %v3712_v51  ;;  %v2093_v46 = vmul.f32 0.0, %v3714_v29  ;;  %3737 = vpow2.f32 %v1543_v41 }
 0x3d8   : > { %v3720_v62 = vpop.eup %3719  ;;  %v1976_v0 = vmul.f32 %v1906_v23, %v4215_v19  ;;  %v4436_v4 = vmul.f32 %v4416_v7, %v4219_v26  ;;  %v2099_v21 = vadd.f32 %v2090_v60, %v1967_v30  ;;  %v1914_v51 = vrot.slane %v1659_v61, %v4040_v18  ;;  %v4459_v60 = vpop.permute.xlu0 %2191 }
 0x3d9   : > { %v3722_v13 = vpop.eup %3721  ;;  %v2100_v5 = vadd.f32 %v2091_v2, %v1968_v59  ;;  %v2101_v39 = vadd.f32 %v2092_v31, %v1969_v37  ;;  %v2102_v34 = vadd.f32 %v2093_v46, %v1970_v10  ;;  %3739 = vpow2.f32 %v1561_v38 }
 0x3da   : > { %v3724_v17 = vpop.eup %3723  ;;  %v2126_v53 = vmul.f32 %v4326_v63, %v2099_v21  ;;  %v2156_v29 = vmul.f32 %v3716_v22, %v2099_v21  ;;  %v1922_v19 = vrot.slane %v4294_v15, %v4040_v18  ;;  %v1930_v63 = vrot.slane %v1707_v33, %v4040_v18  ;;  %v4467_v31 = vpop.permute.xlu1 %2522 }
 0x3db   : > { %v3726_v41 = vpop.eup %3725  ;;  %v2127_v26 = vmul.f32 %v4268_v25, %v2100_v5  ;;  %v2128_v23 = vmul.f32 %v4354_v54, %v2101_v39  ;;  %v2129_v30 = vmul.f32 %v4306_v55, %v2102_v34  ;;  %v2157_v59 = vmul.f32 %v3718_v35, %v2100_v5 }
 0x3dc   : > { %v4447_v37 = vpop.eup %3727  ;;  %v2159_v46 = vmul.f32 %v3722_v13, %v2102_v34  ;;  %v4449_v61 = vadd.f32 %v2156_v29, %v1971_v48  ;;  %v1938_v22 = vrot.slane %v4403_v57, %v4040_v18  ;;  %v1979_v54 = vmul.f32 %v1914_v51, %v4233_v42 }
 0x3dd   : > { %v4454_v38 = vpop.eup %3729  ;;  %v2130_v15 = vadd.f32 %v2127_v26, %v2126_v53  ;;  %v2137_v10 = vadd.f32 %v2129_v30, %v2128_v23  ;;  %v4456_v25 = vadd.f32 %v2157_v59, %v1972_v9  ;;  %v4461_v35 = vmul.f32 %v3720_v62, %v2101_v39  ;;  %v4498_v30 = vpop.permute.xlu0 %2247 }
 0x3de   : > { %v3732_v55 = vpop.eup %3731  ;;  %v4463_v48 = vadd.f32 %v2159_v46, %v1974_v14  ;;  %v1980_v33 = vmul.f32 %v1914_v51, %v4223_v28  ;;  %v1983_v2 = vmul.f32 %v1922_v19, %v4166_v45  ;;  %v1984_v42 = vmul.f32 %v1922_v19, %v4174_v49  ;;  %v2177_v46 = vpop.permute.xlu1 %2176 }
 0x3df   : > { %v3734_v21 = vpop.eup %3733  ;;  %v2131_v13 = vrot.slane %v2130_v15, 4  ;;  %v2138_v5 = vrot.slane %v2137_v10, 4  ;;  %v2224_v9 = vmul.f32 %v3726_v41, %v4456_v25  ;;  %v4472_v34 = vmul.f32 %v1930_v63, %v4170_v47 }
 0x3e0   : > { %v2223_v62 = vmul.f32 %v3724_v17, %v4449_v61  ;;  %v1510_v14 = vmul.f32 %v4303_v16, %v4264_v6  ;;  %v1708_v45 = vcombine.high %v4403_v57, %v4403_v57  ;;  %v4479_v28 = vpop.eup %3735  ;;  %v1507_v49 = vmul.f32 %v4290_v8, %v4261_v3 }
 0x3e1   : > { %v2132_v39 = vadd.f32 %v2131_v13, %v2130_v15  ;;  %v2139_v51 = vadd.f32 %v2138_v5, %v2137_v10  ;;  %v4481_v53 = vadd.f32 %v2224_v9, %v1976_v0  ;;  %v4485_v29 = vpop.eup %3737  ;;  %v1988_v47 = vmul.f32 %v1930_v63, %v4182_v52  ;;  %v4871_v9 = vld [vmem:[#allocation41_spill] sm:$0xff] }
 0x3e2   : > { %v4489_v17 = vmul.f32 %v1938_v22, %v4176_v20  ;;  %v4492_v19 = vadd.f32 %v2223_v62, %v4429_v58  ;;  %v1571_v57 = vmul.f32 1.442695, %v1510_v14  ;;  %v4495_v0 = vmul.f32 %v1938_v22, %v4190_v56  ;;  %v4869_v22 = vld [vmem:[#allocation31_spill] sm:$0xff] }
 0x3e3   : > { %v2133_v41 = vrot.slane %v2132_v39, 2  ;;  %v2140_v26 = vrot.slane %v2139_v51, 2  ;;  %v2291_v23 = vmul.f32 %v3734_v21, %v4481_v53  ;;  %v3740_v8 = vpop.eup %3739  ;;  %v4502_v20 = vrot.slane %v1708_v45, %v4040_v18 }
 0x3e4   : > { %v2290_v52 = vmul.f32 %v3732_v55, %v4492_v19  ;;  %v1565_v59 = vmul.f32 1.442695, %v1507_v49  ;;  %v1678_v58 = vcombine.high %v4387_v32, %v4387_v32  ;;  %3741 = vpow2.f32 %v4328_v11  ;;  %v4874_v49 = vld [vmem:[#allocation24_spill] sm:$0xff] }
 0x3e5   : > { %4868 = vst [vmem:[#allocation48_spill] sm:$0xff] %v4502_v20  ;;  %v2134_v63 = vadd.f32 %v2133_v41, %v2132_v39  ;;  %v2141_v15 = vadd.f32 %v2140_v26, %v2139_v51  ;;  %v4506_v10 = vadd.f32 %v2291_v23, %v1980_v33  ;;  %3743 = vpow2.f32 %v1571_v57  ;;  %v4873_v33 = vld [vmem:[#allocation39_spill] sm:$0xff]  ;;  %v4875_v41 = vld [vmem:[#allocation38_spill] sm:$0xff]  ;;  %v4530_v26 = vpop.permute.xlu0 %2258 }
 0x3e6   : > { %v4509_v56 = vadd.f32 %v2290_v52, %v1979_v54  ;;  %v4870_v55 = vcombine.high %v4869_v22, %v4869_v22  ;;  %v4516_v13 = vrot.slane %v1678_v58, %v4238_v12  ;;  %v4872_v11 = vcombine.high %v4395_v24, %v4395_v24  ;;  %v4876_v22 = vld [vmem:[#allocation28_spill] sm:$0xff] }
 0x3e7   : > { %v2135_v5 = vrot.slane %v2134_v63, 1  ;;  %v2142_v32 = vrot.slane %v2141_v15, 1  ;;  %v2358_v62 = vmul.f32 %v4871_v9, %v4506_v10  ;;  %3745 = vpow2.f32 %v1565_v59  ;;  %v2188_v59 = vpop.permute.xlu1 %2187 }
 0x3e8   : > { %v1699_v21 = vrot.slane %v4870_v55, %v4238_v12  ;;  %v1918_v54 = vrot.slane %v4872_v11, %v4040_v18  ;;  %v2357_v14 = vmul.f32 %v4873_v33, %v4509_v56  ;;  %v1996_v57 = vmul.f32 %v4502_v20, %v4874_v49  ;;  %v4881_v33 = vld [vmem:[#allocation16_spill] sm:$0xff]  ;;  %v4882_v49 = vld [vmem:[#allocation18_spill] sm:$0xff] }
 0x3e9   : > { %v2143_v51 = vadd.f32 %v2142_v32, %v2141_v15  ;;  %v2367_v12 = vadd.f32 %v2358_v62, %v1984_v42  ;;  %3747 = vpow2.f32 %v4875_v41  ;;  %v2136_v23 = vadd.f32 %v2135_v5, %v2134_v63  ;;  %v4877_v42 = vld [vmem:[#allocation27_spill] sm:$0xff]  ;;  %v4878_v32 = vld [vmem:[#allocation30_spill] sm:$0xff]  ;;  %v4879_v62 = vld [vmem:[#allocation32_spill] sm:$0xff] }
 0x3ea   : > { %v1709_v45 = vcombine.high %v1699_v21, %v1699_v21  ;;  %v1926_v39 = vrot.slane %v1699_v21, %v4040_v18  ;;  %v2366_v52 = vadd.f32 %v2357_v14, %v1983_v2  ;;  %v1942_v58 = vrot.slane %v4516_v13, %v4040_v18  ;;  %v4880_v2 = vld [vmem:[#allocation26_spill] sm:$0xff] }
 0x3eb   : > { %v2395_v55 = vmul.f32 %v4876_v22, %v2367_v12  ;;  %v2425_v15 = vmul.f32 %v4370_v44, %v2367_v12  ;;  %v1977_v21 = vmul.f32 %v4416_v7, %v4877_v42  ;;  %v1981_v9 = vmul.f32 %v1918_v54, %v4878_v32  ;;  %v4883_v22 = vld [vmem:[#allocation17_spill] sm:$0xff] }
 0x3ec   : > { %v1934_v24 = vrot.slane %v1709_v45, %v4040_v18  ;;  %v2394_v11 = vmul.f32 %v4879_v62, %v2366_v52  ;;  %v2424_v63 = vmul.f32 %v4368_v40, %v2366_v52  ;;  %v1982_v5 = vmul.f32 %v1918_v54, %v4880_v2  ;;  %v4885_v42 = vld [vmem:[#allocation21_spill] sm:$0xff]  ;;  %v4569_v62 = vpop.permute.xlu1 %2243 }
 0x3ed   : > { %v4544_v14 = vmul.f32 %v1926_v39, %v4881_v33  ;;  %v2434_v45 = vadd.f32 %v2425_v15, %v1988_v47  ;;  %v1986_v41 = vmul.f32 %v1926_v39, %v4882_v49  ;;  %v2147_v44 = vsel %vm2146_vm13, %v2143_v51, %v2136_v23  ;;  %v4884_v47 = vld [vmem:[#allocation37_spill] sm:$0xff] }
 0x3ee   : > { %v4548_v20 = vmul.f32 %v1934_v24, %v4883_v22  ;;  %v2398_v7 = vadd.f32 %v2395_v55, %v2394_v11  ;;  %v2433_v12 = vadd.f32 %v2424_v63, %v4472_v34  ;;  %2149 = vst [vmem:[#allocation6] sm:$0x3] %v2147_v44  ;;  %v2167_v40 = vadd.f32 %v4461_v35, %v4425_v36  ;;  %v4556_v52 = vpop.eup %3741  ;;  %v4566_v35 = vpop.permute.xlu0 %2582  ;;  %v4886_v33 = vld [vmem:[#allocation45_spill] sm:$0xff] }
 0x3ef   : > { %v2226_v54 = vmul.f32 %v4454_v38, %v4463_v48  ;;  %v2462_v15 = vmul.f32 %v4884_v47, %v2434_v45  ;;  %v2492_v39 = vmul.f32 %v4389_v1, %v2434_v45  ;;  %v4561_v32 = vmul.f32 %v1934_v24, %v4885_v42  ;;  %v3744_v34 = vpop.eup %3743 }
 0x3f0   : > { %v2194_v51 = vmul.f32 %v4431_v50, %v4456_v25  ;;  %v2399_v23 = vrot.slane %v2398_v7, 4  ;;  %v2461_v55 = vmul.f32 %v4379_v43, %v2433_v12  ;;  %v2491_v36 = vmul.f32 %v3740_v8, %v2433_v12 }
 0x3f1   : > { %v2225_v38 = vmul.f32 %v4447_v37, %v2167_v40  ;;  %v2501_v11 = vadd.f32 %v2492_v39, %v4495_v0  ;;  %v4573_v1 = vadd.f32 %v2226_v54, %v4436_v4  ;;  %v2193_v24 = vmul.f32 %v2177_v46, %v4449_v61  ;;  %v4578_v25 = vpop.eup %3745  ;;  %v4887_v39 = vld [vmem:[#allocation19_spill] sm:$0xff] }
 0x3f2   : > { %v2196_v50 = vmul.f32 %v4459_v60, %v4463_v48  ;;  %v2400_v43 = vadd.f32 %v2399_v23, %v2398_v7  ;;  %v2465_v8 = vadd.f32 %v2462_v15, %v2461_v55  ;;  %v4581_v63 = vadd.f32 %v2491_v36, %v4489_v17  ;;  %v4596_v15 = vpop.permute.xlu1 %2254 }
 0x3f3   : > { %v4583_v37 = vadd.f32 %v2225_v38, %v1977_v21  ;;  %v3748_v2 = vpop.eup %3747  ;;  %v2529_v0 = vmul.f32 %v4886_v33, %v2501_v11  ;;  %v2559_v45 = vmul.f32 %v3744_v34, %v2501_v11  ;;  %v2293_v4 = vmul.f32 %v4485_v29, %v4573_v1  ;;  %v2315_v29 = vpop.permute.xlu0 %2314  ;;  %v4889_v34 = vld [vmem:[#allocation43_spill] sm:$0xff]  ;;  %v4891_v11 = vld [vmem:[#allocation33_spill] sm:$0xff] }
 0x3f4   : > { %v2197_v61 = vadd.f32 %v2194_v51, %v2193_v24  ;;  %v2401_v46 = vrot.slane %v2400_v43, 2  ;;  %v2466_v49 = vrot.slane %v2465_v8, 4  ;;  %v2528_v60 = vmul.f32 %v4438_v27, %v4581_v63  ;;  %v4888_v51 = vld [vmem:[#allocation23_spill] sm:$0xff] }
 0x3f5   : > { %v2292_v48 = vmul.f32 %v4479_v28, %v4583_v37  ;;  %v4592_v17 = vadd.f32 %v2559_v45, %v1996_v57  ;;  %v2302_v21 = vadd.f32 %v2293_v4, %v1982_v5  ;;  %v2195_v44 = vmul.f32 %v2188_v59, %v2167_v40  ;;  %v4890_v5 = vld [vmem:[#allocation42_spill] sm:$0xff]  ;;  %v4893_v45 = vld [vmem:[#allocation29_spill] sm:$0xff] }
 0x3f6   : > { %v2198_v22 = vrot.slane %v2197_v61, 4  ;;  %v2402_v7 = vadd.f32 %v2401_v46, %v2400_v43  ;;  %v2467_v12 = vadd.f32 %v2466_v49, %v2465_v8  ;;  %v2532_v54 = vadd.f32 %v2529_v0, %v2528_v60 }
 0x3f7   : > { %v4594_v47 = vadd.f32 %v2292_v48, %v1981_v9  ;;  %v1993_v42 = vmul.f32 %v1942_v58, %v4887_v39  ;;  %v1994_v27 = vmul.f32 %v1942_v58, %v4888_v51  ;;  %v2360_v23 = vmul.f32 %v4889_v34, %v2302_v21 }
 0x3f8   : > { %v2199_v28 = vadd.f32 %v2198_v22, %v2197_v61  ;;  %v2468_v57 = vrot.slane %v2467_v12, 2  ;;  %v2533_v55 = vrot.slane %v2532_v54, 4  ;;  %v4604_v40 = vmul.f32 %v2315_v29, %v4506_v10  ;;  %v4894_v61 = vld [vmem:[#allocation44_spill] sm:$0xff]  ;;  %v4617_v29 = vpop.permute.xlu1 %2578 }
 0x3f9   : > { %v2359_v59 = vmul.f32 %v4890_v5, %v4594_v47  ;;  %v2369_v9 = vadd.f32 %v2360_v23, %v1986_v41  ;;  %v2204_v38 = vadd.f32 %v2196_v50, %v2195_v44  ;;  %v4892_v24 = vcombine.high %v4891_v11, %v4891_v11  ;;  %v4895_v50 = vld [vmem:[#allocation34_spill] sm:$0xff]  ;;  %v2326_v44 = vpop.permute.xlu0 %2325 }
 0x3fa   : > { %v2200_v36 = vrot.slane %v2199_v28, 2  ;;  %v2403_v58 = vrot.slane %v2402_v7, 1  ;;  %v2469_v8 = vadd.f32 %v2468_v57, %v2467_v12  ;;  %v2534_v33 = vadd.f32 %v2533_v55, %v2532_v54  ;;  %v4896_v55 = vld [vmem:[#allocation40_spill] sm:$0xff] }
 0x3fb   : > { %v4610_v43 = vrot.slane %v4892_v24, %v4040_v18  ;;  %v2368_v0 = vadd.f32 %v2359_v59, %v4544_v14  ;;  %v2397_v4 = vmul.f32 %v4893_v45, %v2369_v9  ;;  %v2427_v46 = vmul.f32 %v4894_v61, %v2369_v9  ;;  %v4898_v45 = vld [vmem:[#allocation46_spill] sm:$0xff] }
 0x3fc   : > { %v2201_v10 = vadd.f32 %v2200_v36, %v2199_v28  ;;  %v2205_v49 = vrot.slane %v2204_v38, 4  ;;  %v2470_v41 = vrot.slane %v2469_v8, 1  ;;  %v2535_v60 = vrot.slane %v2534_v33, 2 }
 0x3fd   : > { %v2396_v48 = vmul.f32 %v4895_v50, %v2368_v0  ;;  %v2426_v22 = vmul.f32 %v4556_v52, %v2368_v0  ;;  %v2436_v12 = vadd.f32 %v2427_v46, %v4561_v32  ;;  %v2330_v54 = vmul.f32 %v2326_v44, %v2302_v21  ;;  %v4897_v32 = vld [vmem:[#allocation47_spill] sm:$0xff] }
 0x3fe   : > { %v2206_v39 = vadd.f32 %v2205_v49, %v2204_v38  ;;  %v1512_v14 = vmul.f32 %v4610_v43, %v4264_v6  ;;  %v2404_v51 = vadd.f32 %v2403_v58, %v2402_v7  ;;  %v2202_v28 = vrot.slane %v2201_v10, 1 }
 0x3ff   : > { %v2405_v34 = vadd.f32 %v2397_v4, %v2396_v48  ;;  %v2435_v23 = vadd.f32 %v2426_v22, %v4548_v20  ;;  %v4623_v57 = vadd.f32 %v2470_v41, %v2469_v8  ;;  %v2464_v5 = vmul.f32 %v4896_v55, %v2436_v12  ;;  %v4899_v22 = vld [vmem:[#allocation25_spill] sm:$0xff] }
 0x400   : > { %v2494_v52 = vmul.f32 %v3748_v2, %v2436_v12  ;;  %v2207_v59 = vrot.slane %v2206_v39, 2  ;;  %v4626_v9 = vadd.f32 %v2535_v60, %v2534_v33  ;;  %v1575_v7 = vmul.f32 1.442695, %v1512_v14  ;;  %v2311_v2 = vpop.permute.xlu1 %2310 }
 0x401   : > { %v2406_v36 = vrot.slane %v2405_v34, 4  ;;  %v2463_v21 = vmul.f32 %v4897_v32, %v2435_v23  ;;  %v2493_v38 = vmul.f32 %v4578_v25, %v2435_v23  ;;  %v1710_v20 = vcombine.high %v4516_v13, %v4516_v13 }
 0x402   : > { %v2503_v11 = vadd.f32 %v2494_v52, %v1994_v27  ;;  %v2208_v6 = vadd.f32 %v2207_v59, %v2206_v39  ;;  %v2203_v0 = vadd.f32 %v2202_v28, %v2201_v10  ;;  %3749 = vpow2.f32 %v1575_v7 }
 0x403   : > { %v2407_v24 = vadd.f32 %v2406_v36, %v2405_v34  ;;  %v2472_v58 = vadd.f32 %v2464_v5, %v2463_v21  ;;  %v4632_v8 = vadd.f32 %v2493_v38, %v1993_v42  ;;  %v4636_v61 = vrot.slane %v1710_v20, %v4040_v18 }
 0x404   : > { %v2531_v33 = vmul.f32 %v4898_v45, %v2503_v11  ;;  %v2209_v4 = vrot.slane %v2208_v6, 1  ;;  %v2261_v13 = vmul.f32 %v4498_v30, %v4481_v53  ;;  %v2537_v42 = vrot.slane %v4626_v9, 1 }
 0x405   : > { %v2408_v25 = vrot.slane %v2407_v24, 2  ;;  %v2473_v27 = vrot.slane %v2472_v58, 4  ;;  %v2530_v46 = vmul.f32 %v4467_v31, %v4632_v8  ;;  %v2260_v10 = vmul.f32 %v4569_v62, %v4492_v19 }
 0x406   : > { %v2210_v49 = vadd.f32 %v2209_v4, %v2208_v6  ;;  %v2263_v41 = vmul.f32 %v4530_v26, %v4573_v1  ;;  %v2262_v48 = vmul.f32 %v4596_v15, %v4583_v37  ;;  %v1998_v53 = vmul.f32 %v4636_v61, %v4899_v22  ;;  %v2322_v1 = vpop.permute.xlu1 %2321 }
 0x407   : > { %v2409_v60 = vadd.f32 %v2408_v25, %v2407_v24  ;;  %v2474_v18 = vadd.f32 %v2473_v27, %v2472_v58  ;;  %v2539_v50 = vadd.f32 %v2531_v33, %v2530_v46  ;;  %v2264_v30 = vadd.f32 %v2261_v13, %v2260_v10 }
 0x408   : > { %v2213_v31 = vsel %vm2146_vm13, %v2210_v49, %v2203_v0  ;;  %v1509_v44 = vmul.f32 %v4303_v16, %v4261_v3  ;;  %v2271_v26 = vadd.f32 %v2263_v41, %v2262_v48  ;;  %v2327_v34 = vmul.f32 %v2311_v2, %v4509_v56 }
 0x409   : > { %v2410_v12 = vrot.slane %v2409_v60, 1  ;;  %v2475_v19 = vrot.slane %v2474_v18, 2  ;;  %v2540_v62 = vrot.slane %v2539_v50, 4  ;;  %2216 = vst [vmem:[#allocation6 + $0x2] sm:$0x3] %v2213_v31  ;;  %v2265_v39 = vrot.slane %v2264_v30, 4 }
 0x40a   : > { %v1569_v14 = vmul.f32 1.442695, %v1509_v44  ;;  %v2329_v37 = vmul.f32 %v2322_v1, %v4594_v47  ;;  %v2272_v55 = vrot.slane %v2271_v26, 4  ;;  %v2331_v16 = vadd.f32 %v4604_v40, %v2327_v34  ;;  %v4901_v44 = vld [vmem:[#allocation20_spill] sm:$0xff] }
 0x40b   : > { %v2411_v15 = vadd.f32 %v2410_v12, %v2409_v60  ;;  %v2476_v23 = vadd.f32 %v2475_v19, %v2474_v18  ;;  %v2541_v28 = vadd.f32 %v2540_v62, %v2539_v50  ;;  %v2266_v5 = vadd.f32 %v2265_v39, %v2264_v30  ;;  %v4902_v12 = vld [vmem:[#allocation48_spill] sm:$0xff] }
 0x40c   : > { %3751 = vpow2.f32 %v1569_v14  ;;  %v2338_v52 = vadd.f32 %v2330_v54, %v2329_v37  ;;  %v2273_v21 = vadd.f32 %v2272_v55, %v2271_v26  ;;  %v3750_v38 = vpop.eup %3749  ;;  %v2332_v56 = vrot.slane %v2331_v16, 4  ;;  %v3661_v37 = vld [vmem:[%s3971_s16 + $0x10] sm:$0xff]  }
 0x40d   : > { %v2414_v59 = vsel %vm2146_vm13, %v2411_v15, %v2404_v51  ;;  %v2477_v36 = vrot.slane %v2476_v23, 1  ;;  %v2542_v32 = vrot.slane %v2541_v28, 2  ;;  %v2267_v6 = vrot.slane %v2266_v5, 2 }
 0x40e   : > { %2417 = vst [vmem:[#allocation6 + $0x8] sm:$0x3] %v2414_v59  ;;  %v2339_v7 = vrot.slane %v2338_v52, 4  ;;  %v1511_v47 = vmul.f32 %v4610_v43, %v4261_v3  ;;  %v2561_v58 = vmul.f32 %v3750_v38, %v2503_v11  ;;  %v2274_v0 = vrot.slane %v2273_v21, 2  ;;  %v3659_v3 = vld [vmem:[%s3971_s16] sm:$0xff]  }
 0x40f   : > { %v2478_v20 = vadd.f32 %v2477_v36, %v2476_v23  ;;  %v2543_v24 = vadd.f32 %v2542_v32, %v2541_v28  ;;  %v2268_v40 = vadd.f32 %v2267_v6, %v2266_v5  ;;  %v2333_v54 = vadd.f32 %v2332_v56, %v2331_v16  ;;  %v4903_v23 = vld [vmem:[#allocation36_spill] sm:$0xff]  ;;  %v4904_v5 = vld [vmem:[#allocation22_spill] sm:$0xff]  ;;  %v2594_v16 = vpop.permute.xlu0 %2593  ;;  %v2590_v32 = vpop.permute.xlu1 %2589 }
 0x410   : > { %v2340_v2 = vadd.f32 %v2339_v7, %v2338_v52  ;;  %v1573_v51 = vmul.f32 1.442695, %v1511_v47  ;;  %v2570_v4 = vadd.f32 %v2561_v58, %v1998_v53  ;;  %v2275_v25 = vadd.f32 %v2274_v0, %v2273_v21  ;;  %v3660_v53 = vld [vmem:[%s3971_s16 + $0x8] sm:$0xff]   ;;  %v3662_v52 = vld [vmem:[%s3971_s16 + $0x18] sm:$0xff]  }
 0x411   : > { %v2481_v45 = vsel %vm2146_vm13, %v2478_v20, %v4623_v57  ;;  %v2544_v33 = vrot.slane %v2543_v24, 1  ;;  %v2269_v27 = vrot.slane %v2268_v40, 1  ;;  %v2334_v46 = vrot.slane %v2333_v54, 2  ;;  %v4905_v7 = vld [vmem:[#allocation13_spill] sm:$0xff] }
 0x412   : > { %2484 = vst [vmem:[#allocation6 + $0xa] sm:$0x3] %v2481_v45  ;;  %v2341_v13 = vrot.slane %v2340_v2, 2  ;;  %3753 = vpow2.f32 %v1573_v51  ;;  %v2538_v43 = vadd.f32 %v2537_v42, %v4626_v9  ;;  %v2276_v49 = vrot.slane %v2275_v25, 1  ;;  %v4900_v9 = vld [vmem:[#allocation35_spill] sm:$0xff]  ;;  %v3664_v58 = vld [vmem:[%s3971_s16 + $0x28] sm:$0xff]  }
 0x413   : > { %v2545_v11 = vadd.f32 %v2544_v33, %v2543_v24  ;;  %v2335_v10 = vadd.f32 %v2334_v46, %v2333_v54  ;;  %v2270_v18 = vadd.f32 %v2269_v27, %v2268_v40  ;;  %v3806_v50 = vmov 0.0   ;;  %v4906_v54 = vld [vmem:[#allocation11_spill] sm:$0xff] }
 0x414   : > { %v2342_v41 = vadd.f32 %v2341_v13, %v2340_v2  ;;  %v2277_v57 = vadd.f32 %v2276_v49, %v2275_v25  ;;  %3497 = vmatprep.subr.bf16.mxu0 %v3806_v50  ;;  %3513 = vmatprep.mubr.msk.bf16.mxu0 %vm3807_vm14, %v3806_v50  ;;  %v2694_v42 = vadd.f32 1.0, %v4900_v9  ;;  %v1995_v19 = vmul.f32 %v4902_v12, %v4901_v44  ;;  %v4907_v25 = vld [vmem:[#allocation14_spill] sm:$0xff]  ;;  %v4909_v49 = vld [vmem:[#allocation12_spill] sm:$0xff] }
 0x415   : > { %v2548_v60 = vsel %vm2146_vm13, %v2545_v11, %v2538_v43  ;;  %v2336_v31 = vrot.slane %v2335_v10, 1  ;;  %3498 = vmatpush3.bf16.msra.mxu0 %v3659_v3  ;;  %v2596_v39 = vmul.f32 %v4566_v35, %v4592_v17  ;;  %v2695_v28 = vadd.f32 1.0, %v4903_v23  ;;  %v4908_v43 = vld [vmem:[#allocation15_spill] sm:$0xff] }
 0x416   : > { %v3752_v48 = vpop.eup %3751  ;;  %2551 = vst [vmem:[#allocation6 + $0xc] sm:$0x3] %v2548_v60  ;;  %v2343_v22 = vrot.slane %v2342_v41, 1  ;;  %v2280_v30 = vsel %vm2146_vm13, %v2277_v57, %v2270_v18  ;;  %3499 = vmatprep.subr.bf16.mxu0 %v3806_v50  ;;  %3755 = vrcp.f32 %v2694_v42  ;;  %v1997_v35 = vmul.f32 %v4636_v61, %v4904_v5  ;;  %v3293_v61 = vld [vmem:[%s692_s2] ss:$0 sm:$0xff]  ;;  %v3666_v60 = vld [vmem:[%s3971_s16 + $0x38] sm:$0xff]  }
 0x417   : > { %v2558_v62 = vmul.f32 %v3752_v48, %v4581_v63  ;;  %2283 = vst [vmem:[#allocation6 + $0x4] sm:$0x3] %v2280_v30  ;;  %v2337_v26 = vadd.f32 %v2336_v31, %v2335_v10  ;;  %v2598_v59 = vmul.f32 %v2594_v16, %v2570_v4  ;;  %3757 = vrcp.f32 %v2695_v28  ;;  %v3665_v4 = vld [vmem:[%s3971_s16 + $0x30] sm:$0xff]  }
 0x418   : > { %v2344_v1 = vadd.f32 %v2343_v22, %v2342_v41  ;;  %v2634_v47 = vmul.f32 %v3293_v61, %v4905_v7  ;;  %v2635_v27 = vmul.f32 %v3293_v61, %v4907_v25 }
 0x419   : > { %v2567_v14 = vadd.f32 %v2558_v62, %v1995_v19  ;;  %3500 = vmatpush3.bf16.msra.mxu0 %v3660_v53  ;;  %v2620_v19 = vld [vmem:[#allocation6 + $0x2] sm:$0x3] }
 0x41a   : > { %v2347_v34 = vsel %vm2146_vm13, %v2344_v1, %v2337_v26  ;;  %3501 = vmatprep.subr.bf16.mxu0 %v3806_v50  ;;  %v2638_v51 = vcombine.high %v2634_v47, %v2634_v47  ;;  %v2645_v18 = vrot.slane %v2634_v47, %v4908_v43  ;;  %v2662_v57 = vrot.slane %v2635_v27, %v4908_v43  ;;  %v2624_v26 = vld [vmem:[#allocation6 + $0xa] sm:$0x3] }
 0x41b   : > { %v2595_v15 = vmul.f32 %v4617_v29, %v2567_v14  ;;  %2350 = vst [vmem:[#allocation6 + $0x6] sm:$0x3] %v2347_v34  ;;  %v2655_v53 = vcombine.high %v2635_v27, %v2635_v27  ;;  %v2619_v34 = vld [vmem:[#allocation6] sm:$0x3] }
 0x41c   : > { %v3754_v63 = vpop.eup %3753  ;;  %v2652_v11 = vrot.slane %v2638_v51, %v4908_v43  ;;  %v2670_v14 = vcombine.high %v2662_v57, %v2662_v57 }
 0x41d   : > { %v2599_v55 = vadd.f32 %v2596_v39, %v2595_v15  ;;  %v2560_v17 = vmul.f32 %v3754_v63, %v4632_v8  ;;  %3502 = vmatpush3.bf16.msra.mxu0 %v3661_v37  ;;  %v3663_v8 = vld [vmem:[%s3971_s16 + $0x20] sm:$0xff]   ;;  %v2653_v39 = vcombine.high %v2645_v18, %v2645_v18  ;;  %v2623_v37 = vld [vmem:[#allocation6 + $0x8] sm:$0x3]  ;;  %v2669_v15 = vrot.slane %v2655_v53, %v4908_v43  ;;  %v2999_v53 = vld [vmem:[%s4910_s28 + $0x10] sm:$0xff] (!%p3302_p5) }
 0x41e   : > { %3503 = vmatprep.subr.bf16.mxu0 %v3806_v50  ;;  %v2654_v42 = vcombine.high %v2652_v11, %v2652_v11  ;;  %v2621_v62 = vld [vmem:[#allocation6 + $0x4] sm:$0x3] }
 0x41f   : > { %v2600_v36 = vrot.slane %v2599_v55, 4  ;;  %v2569_v29 = vadd.f32 %v2560_v17, %v1997_v35  ;;  %v2681_v23 = vadd.f32 %v2653_v39, %v2620_v19  ;;  %v2682_v28 = vadd.f32 %v2652_v11, %v2621_v62  ;;  %v2625_v17 = vld [vmem:[#allocation6 + $0xc] sm:$0x3] }
 0x420   : > { %v3756_v20 = vpop.eup %3755 }
 0x421   : > { %v2601_v21 = vadd.f32 %v2600_v36, %v2599_v55  ;;  %v2597_v38 = vmul.f32 %v2590_v32, %v2569_v29  ;;  %3504 = vmatpush3.bf16.msra.mxu0 %v3662_v52  ;;  %v2698_v2 = vmul.f32 %v3756_v20, %v4906_v54  ;;  %v3758_v33 = vpop.eup %3757  ;;  %v2685_v55 = vadd.f32 %v2670_v14, %v2624_v26 }
 0x422   : > { %3505 = vmatprep.subr.bf16.mxu0 %v3806_v50  ;;  %v2699_v10 = vmul.f32 %v3758_v33, %v4909_v49  ;;  %v2622_v22 = vld [vmem:[#allocation6 + $0x6] sm:$0x3]  ;;  %v2680_v52 = vadd.f32 %v2645_v18, %v2619_v34  ;;  %v2671_v29 = vcombine.high %v2669_v15, %v2669_v15  ;;  %v2686_v32 = vadd.f32 %v2669_v15, %v2625_v17  ;;  %v3303_v34 = vld [vmem:[%s4911_s14] ss:$0 sm:$0xff] (!%p3302_p5) }
 0x423   : > { %v2602_v6 = vrot.slane %v2601_v21, 2  ;;  %v2606_v56 = vadd.f32 %v2598_v59, %v2597_v38  ;;  %v2702_v3 = vcombine.high %v2698_v2, %v2698_v2  ;;  %v2709_v30 = vrot.slane %v2698_v2, %v4908_v43 }
 0x424   : > { %v2719_v44 = vcombine.high %v2699_v10, %v2699_v10  ;;  %v2726_v1 = vrot.slane %v2699_v10, %v4908_v43  ;;  %v2684_v59 = vadd.f32 %v2662_v57, %v2623_v37  ;;  %v3760_v10 = vld [vmem:[#allocation2 + $0x8] sm:$0xff] }
 0x425   : > { %v2607_v24 = vrot.slane %v2606_v56, 4  ;;  %3506 = vmatpush3.bf16.msra.mxu0 %v3663_v8  ;;  %v2603_v0 = vadd.f32 %v2602_v6, %v2601_v21  ;;  %v2716_v9 = vrot.slane %v2702_v3, %v4908_v43  ;;  %v2717_v5 = vcombine.high %v2709_v30, %v2709_v30 }
 0x426   : > { %3507 = vmatprep.subr.bf16.mxu0 %v3806_v50  ;;  %v2733_v35 = vrot.slane %v2719_v44, %v4908_v43  ;;  %v2734_v16 = vcombine.high %v2726_v1, %v2726_v1  ;;  %v2744_v7 = vmul.f32 %v2709_v30, %v2680_v52  ;;  %v2748_v47 = vmul.f32 %v2726_v1, %v2684_v59  ;;  %v3000_v30 = vld [vmem:[%s4910_s28 + $0x18] sm:$0xff] (!%p3302_p5) }
 0x427   : > { %v2608_v40 = vadd.f32 %v2607_v24, %v2606_v56  ;;  %v2604_v46 = vrot.slane %v2603_v0, 1  ;;  %v2718_v63 = vcombine.high %v2716_v9, %v2716_v9  ;;  %v2745_v21 = vmul.f32 %v2717_v5, %v2681_v23 }
 0x428   : > { %v2746_v38 = vmul.f32 %v2716_v9, %v2682_v28  ;;  %v2749_v61 = vmul.f32 %v2734_v16, %v2685_v55  ;;  %v2735_v8 = vcombine.high %v2733_v35, %v2733_v35  ;;  %v2750_v24 = vmul.f32 %v2733_v35, %v2686_v32  ;;  %v4912_v28 = vld [vmem:[#allocation15_spill] sm:$0xff] (!%p3302_p5) }
 0x429   : > { %v2609_v45 = vrot.slane %v2608_v40, 2  ;;  %3508 = vmatpush3.bf16.msra.mxu0 %v3664_v58  ;;  %v2605_v48 = vadd.f32 %v2604_v46, %v2603_v0  ;;  %v2760_v0 = vcombine.low %v2744_v7, %v2745_v21  ;;  %v3808_v9 = vmov (!%p3302_p5), 0.0|0.0  }
 0x42a   : > { %3509 = vmatprep.subr.bf16.mxu0 %v3806_v50  ;;  %v3810_v44 = vmov (!%p3302_p5), 0.0  }
 0x42b   : > { %v2610_v13 = vadd.f32 %v2609_v45, %v2608_v40  ;;  %v2777_v40 = vcombine.low %v2748_v47, %v2749_v61  ;;  %v2768_v51 = vrot.slane %v2760_v0, %v4908_v43 }
 0x42d   : > { %v2611_v41 = vrot.slane %v2610_v13, 1  ;;  %3510 = vmatpush3.bf16.msra.mxu0 %v3665_v4  ;;  %v2785_v45 = vrot.slane %v2777_v40, %v4908_v43 }
 0x42e   : > { %3511 = vmatprep.subr.bf16.mxu0 %v3806_v50  ;;  %v2683_v50 = vadd.f32 %v2654_v42, %v2622_v22  ;;  %v2998_v22 = vld [vmem:[%s4910_s28 + $0x8] sm:$0xff] (!%p3302_p5) }
 0x42f   : > { %v2612_v31 = vadd.f32 %v2611_v41, %v2610_v13  ;;  %v3759_v13 = vld [vmem:[#allocation2] sm:$0xff] }
 0x430   : > { %v2747_v36 = vmul.f32 %v2718_v63, %v2683_v50 }
 0x431   : > { %v2615_v12 = vsel %vm2146_vm13, %v2612_v31, %v2605_v48  ;;  %3512 = vmatpush3.bf16.msra.mxu0 %v3666_v60  ;;  %v2997_v31 = vld [vmem:[%s4910_s28] sm:$0xff] (!%p3302_p5) }
 0x432   : > { %2618 = vst [vmem:[#allocation6 + $0xe] sm:$0x3] %v2615_v12  ;;  %v2761_v20 = vcombine.low %v2746_v38, %v2747_v36  ;;  %3624 = vmatprep.subr.bf16.mxu0 (!%p3302_p5), %v3808_v9  ;;  %v3625_v42 = vpack.c.bf16 (!%p3302_p5), %v2998_v22, %v2997_v31  ;;  %v3628_v12 = vpack.c.bf16 (!%p3302_p5), %v3000_v30, %v2999_v53 }
 0x434   : > { %v2775_v54 = vrot.slane %v2761_v20, %v4908_v43 }
 0x436   : > { %v2776_v4 = vcombine.low %v2768_v51, %v2775_v54 }
 0x439   : > { %v2626_v6 = vld [vmem:[#allocation6 + $0xe] sm:$0x3] }
 0x43a   : > { %v2687_v56 = vadd.f32 %v2671_v29, %v2626_v6 }
 0x43c   : > { %v2751_v58 = vmul.f32 %v2735_v8, %v2687_v56 }
 0x43e   : > { %v2778_v2 = vcombine.low %v2750_v24, %v2751_v58 }
 0x440   : > { %v2792_v33 = vrot.slane %v2778_v2, %v4908_v43 }
 0x442   : > { %v2793_v25 = vcombine.low %v2785_v45, %v2792_v33  ;;  %v3304_v33 = vld [vmem:[%s4913_s30] ss:$0 sm:$0xff] (!%p3302_p5) }
 0x444   : > { %v2796_v27 = vpack.c.bf16 %v2793_v25, %v2776_v4 }
 0x446   : > { %3514 = vmatmul.mubr.bf16.vlgmr.msra.gmra.mrb[4].mxu0 %v2796_v27 }
 0x447   : > { %3525 = vmatprep.mubr.msk.f32.mxu0 (!%p3302_p5), %vm3809_vm15, %v3810_v44  ;;  %3626 = vmatpush3.bf16.msra.mxu0 (!%p3302_p5), %v3625_v42 }
 0x448   : > { %3627 = vmatprep.subr.bf16.mxu0 (!%p3302_p5), %v3808_v9 }
 0x44b   : > { %3629 = vmatpush3.bf16.msra.mxu0 (!%p3302_p5), %v3628_v12 }
 0x518   : > { %2909 = sbr.rel (%p3302_p5) target bundleno = 1708 (0x6ac), region = 92 }
 0x519   : > { %v2895_v46 = vpop.f32.mrb[4].mxu0 }
 0x51a   : > { %v2902_v3 = vadd.f32 %v3759_v13, %v2895_v46  ;;  %v3515_v11 = vpop.f32.mrb[5].mxu0 }
 0x51b   : > { %v2898_v49 = vpop.f32.mrb[6].mxu0 }
 0x51c   : > { %2904 = vst.msk [vmem:[#allocation2] sm:$0xff] %vm712_vm1, %v2902_v3  ;;  %v2903_v41 = vadd.f32 %v3760_v10, %v2898_v49  ;;  %v3516_v60 = vpop.f32.mrb[7].mxu0  ;;  %v2910_v43 = vmul.f32 (!%p3302_p5), %v2902_v3, %v2902_v3 }
 0x51e   : > { %2905 = vst.msk [vmem:[#allocation2 + $0x8] sm:$0xff] %vm712_vm1, %v2903_v41  ;;  %v2911_v18 = vmul.f32 (!%p3302_p5), %v2903_v41, %v2903_v41  ;;  %v2912_v57 = vsel (!%p3302_p5), %vm712_vm1, %v2910_v43, 0.0 }
 0x51f   : > { %2913 = vadd.xlane.f32.xlu0 %v2912_v57 }
 0x520   : > { %v2915_v48 = vsel %vm712_vm1, %v2911_v18, 0.0 }
 0x523   : > { %2916 = vadd.xlane.f32.xlu0 %v2915_v48 }
 0x5ac   : > { %v2914_v19 = vpop.xlane.xlu0 %2913 }
 0x5ad   : > { %v2918_v62 = vmul.f32 0.03125, %v2914_v19 }
 0x5af   : > { %v2920_v26 = vadd.f32 1e-05, %v2918_v62 }
 0x5b0   : > { %v2917_v1 = vpop.xlane.xlu0 %2916 }
 0x5b1   : > { %3761 = vrsqrt.f32 %v2920_v26  ;;  %v2919_v39 = vmul.f32 0.03125, %v2917_v1 }
 0x5b3   : > { %v2921_v14 = vadd.f32 1e-05, %v2919_v39 }
 0x5b5   : > { %3763 = vrsqrt.f32 %v2921_v14 }
 0x5bb   : > { %v3762_v50 = vpop.eup %3761 }
 0x5bc   : > { %v2924_v37 = vmul.f32 %v3762_v50, %v2902_v3 }
 0x5be   : > { %v2933_v15 = vmul.f32 %v3303_v34, %v2924_v37 }
 0x5bf   : > { %v3764_v63 = vpop.eup %3763 }
 0x5c0   : > { %v2937_v23 = vcombine.high %v2933_v15, %v2933_v15  ;;  %v2944_v55 = vrot.slane %v2933_v15, %v4912_v28  ;;  %v2925_v5 = vmul.f32 %v3764_v63, %v2903_v41 }
 0x5c2   : > { %v2951_v35 = vrot.slane %v2937_v23, %v4912_v28  ;;  %v2952_v17 = vcombine.high %v2944_v55, %v2944_v55  ;;  %v2934_v16 = vmul.f32 %v3303_v34, %v2925_v5  ;;  %v2980_v59 = vsel %vm2979_vm0, %v2944_v55, 0.0 }
 0x5c4   : > { %v2953_v52 = vcombine.high %v2951_v35, %v2951_v35  ;;  %v2981_v36 = vsel %vm2979_vm0, %v2952_v17, 0.0  ;;  %v2954_v29 = vcombine.high %v2934_v16, %v2934_v16  ;;  %v2961_v21 = vrot.slane %v2934_v16, %v4912_v28 }
 0x5c5   : > { %v2982_v32 = vadd.f32 %v2981_v36, %v2980_v59  ;;  %v2983_v38 = vsel %vm2979_vm0, %v2951_v35, 0.0 }
 0x5c6   : > { %v2969_v8 = vcombine.high %v2961_v21, %v2961_v21  ;;  %v2985_v6 = vsel %vm2979_vm0, %v2953_v52, 0.0  ;;  %v2968_v56 = vrot.slane %v2954_v29, %v4912_v28  ;;  %v2987_v7 = vsel %vm2979_vm0, %v2961_v21, 0.0 }
 0x5c7   : > { %v2984_v61 = vadd.f32 %v2983_v38, %v2982_v32 }
 0x5c8   : > { %v2989_v20 = vsel %vm2979_vm0, %v2969_v8, 0.0  ;;  %v2970_v58 = vcombine.high %v2968_v56, %v2968_v56  ;;  %v2991_v40 = vsel %vm2979_vm0, %v2968_v56, 0.0 }
 0x5c9   : > { %v2986_v47 = vadd.f32 %v2985_v6, %v2984_v61 }
 0x5ca   : > { %v2993_v2 = vsel %vm2979_vm0, %v2970_v58, 0.0 }
 0x5cb   : > { %v2988_v24 = vadd.f32 %v2987_v7, %v2986_v47 }
 0x5cd   : > { %v2990_v0 = vadd.f32 %v2989_v20, %v2988_v24 }
 0x5cf   : > { %v2992_v54 = vadd.f32 %v2991_v40, %v2990_v0 }
 0x5d1   : > { %v2994_v51 = vadd.f32 %v2993_v2, %v2992_v54 }
 0x5d3   : > { %v2996_v45 = vmul.f32 0.125, %v2994_v51 }
 0x5d5   : > { %3526 = vmatmul.mubr.msk.f32.vlgmr.msra.gmra.mrb[0].mxu0 %vm712_vm1, %v2996_v45 }
 0x6a8   : > { %v3077_v4 = vpop.f32.mrb[0].mxu0 }
 0x6a9   : > { %v3078_v25 = vadd.f32 %v3304_v33, %v3077_v4  ;;  %v3527_v27 = vpop.f32.mrb[1].mxu0 }
 0x6ab   : > { %3082 = vst.msk [vmem:[#allocation7] sm:$0x3] %vm3081_vm2, %v3078_v25 }
 0x6ac PF: > { %p3634_p6 = scmp.eq.s32.totalorder %s3903_s22, 7  ;;  %s3811_s13 = smov [#allocation7]  }
 0x6ad   : > { %s3090_s19 = sshll.u32 %s3811_s13, 4  ;;  %s3091_s19 = int_to_ptr.vmem [resolvable:$true] %s3090_s19 }
 0x6ae   : > { %s3765_s29 = scalar_lea.vmem %s3091_s19, 32  ;;  %p3772_p10 = scmp.lt.s32.totalorder %s3091_s19, %s3091_s19 }
 0x6af   : > { %p3766_p7 = scmp.ne.s32.totalorder %s3091_s19, %s3765_s29  ;;  %p3773_p11 = scmp.lt.s32.totalorder %s3765_s29, %s3765_s29 }
 0x6b1   : > { %p3767_p8 = pnand %p3766_p7, %p3634_p6  ;;  %p3774_p12 = por %p3773_p11, %p3772_p10 }
 0x6b3   : > { %p3768_p9 = pneg %p3767_p8 }
 0x6b5   : > { %p3775_p13 = pnand %p3774_p12, %p3768_p9 }
 0x6b7   : > { %3778 = shalt.err (!%p3775_p13)
}
 0x6b8   : > { %s4914_s24 = sld [smem:[#allocation58_spill]] }
 0x6be   : > { %s3779_s15 = scalar_lea.hbm %s4914_s24, 32 }
 0x6bf   : > { %p3780_p0 = scmp.ne.s32.totalorder %s4914_s24, %s3779_s15  ;;  %p3785_p3 = scmp.lt.u32.totalorder %s3779_s15, %s4914_s24 }
 0x6c1   : > { %p3781_p1 = pnand %p3780_p0, %p3634_p6 }
 0x6c3   : > { %p3782_p2 = pneg %p3781_p1 }
 0x6c5   : > { %p3787_p4 = pnand %p3785_p3, %p3782_p2 }
 0x6c7   : > { %3790 = shalt.err (!%p3787_p4)
}
 0x6c8   : > { %3631 = dma.vmem_to_hbm [thread:$0]  (%p3634_p6), %s3091_s19, 32, %s4914_s24, [#allocation8]  }
 0x6c9   : > { %3796 = dma.done.wait (%p3634_p6), [#allocation8], 32  }
 0x6ca   : > { %3798 = vsyncadd (%p3634_p6), [#allocation8], 4294967264 }
 0x6cb PF: > { %s4915_s16 = sld [smem:[#allocation10_spill]] }
 0x6d1   : > { %s27_s21 = sadd.s32 1, %s4915_s16  }
 0x6d2   : > { %p24_p5 = scmp.ge.s32.totalorder %s27_s21, 10  }
 0x6d4   :  { %26 = sbr.rel (!%p24_p5) target bundleno = 12 (0xc), region = 182 }
 0x6db   :  { %3103 = vsyncpa [#allocation8], 1 }
 0x6dc   :  { %3105 = vsyncpa [#allocation8 + $0x1], 1 }

</bundles_post_ra>
